<compile_context>
chip_gen: v7x
topology: tpu7x:2x2x1
jax: 0.10.0
libtpu: 0.0.40
codegen_flags: <defaults>
</compile_context>

<pallas_src>
import jax
import jax.numpy as jnp
import numpy as np
from jax.experimental import pallas as pl
from jax.experimental.pallas import tpu as pltpu

B = 4      # logical batch
BP = 8     # padded batch (f32 sublane count)
T = 8      # opt.T
M = 16     # opt.input_size
HE = 32    # opt.encoder_hidden_size
HD = 32    # opt.decoder_hidden_size


# --------------------------------------------------------------------------
# Pallas kernel: whole forward pass (encoder T steps + decoder T-1 steps).
# --------------------------------------------------------------------------
def _darnn_kernel(
    x_ref,       # (BP, T*M)    x[b, t*M+m]
    y_ref,       # (BP, T-1)
    aw_ref,      # (T*M, M*T)   fused permute + attn_layer_input weight
    wahx_ref,    # (2HE, M*T)   attn_layer_hidden weight, tiled over m
    sw_ref,      # (M*T, M)     attn_layer weight as block-select matrix
    wecat_ref,   # (M+HE, 4HE)  [W_ih; W_hh] encoder LSTM
    w1e_ref,     # (HE, HE)     decoder attn W1 (encoded part)
    w1hc_ref,    # (2HD, T*HE)  decoder attn W1 (hidden/cell part), tiled over t
    w2blk_ref,   # (T*HE, T)    decoder attn W2 as block-select matrix
    e_ref,       # (T, T*HE)    attn-weight lane expansion (0/1)
    g_ref,       # (T*HE, HE)   context group-reduce matrix (0/1)
    wdcat_ref,   # (HE+HD, 4HD) [outer(w_fc_ctx, w_ihd); W_hhd]
    rows_ref,    # (8, T*HE)    packed bias / row-vector params
    scal_ref,    # (3,) SMEM    [b_a, b2, b_ff]
    out_ref,     # (BP, 1)
):
    f32 = jnp.float32
    b_a = scal_ref[0]
    b2 = scal_ref[1]
    b_ff = scal_ref[2]

    x_step = x_ref[...]                                           # (BP, T*M)

    # ------------------------------- Encoder -------------------------------
    # Loop-invariant input-attention term, expanded layout (BP, M*T),
    # bias (b_ai + b_ah[t]) already folded in.
    x_inp = (jnp.dot(x_step, aw_ref[...], preferred_element_type=f32)
             + rows_ref[0:1, :M * T])
    # Hoisted loop-invariant bias broadcast (encoder LSTM gates).
    b_e_full = jnp.broadcast_to(rows_ref[1:2, :4 * HE], (BP, 4 * HE))

    h = jnp.zeros((BP, HE), f32)
    c = jnp.zeros((BP, HE), f32)
    enc_parts = []
    proj_parts = []
    for t in range(T):                                            # fully unrolled
        hc = jnp.concatenate([h, c], axis=1)                      # (BP, 2HE)
        z = jnp.tanh(jnp.dot(hc, wahx_ref[...],
                             preferred_element_type=f32) + x_inp)  # (BP, M*T)
        scores = jnp.dot(z, sw_ref[...],
                         preferred_element_type=f32) + b_a         # (BP, M)
        scores = scores - jnp.max(scores, axis=-1, keepdims=True)
        ez = jnp.exp(scores)
        attn = ez * pl.reciprocal(jnp.sum(ez, axis=-1, keepdims=True),
                                  approx=True)                     # softmax over M
        wi = attn * x_step[:, t * M:(t + 1) * M]                   # weighted input
        gates = (jnp.dot(jnp.concatenate([wi, h], axis=1), wecat_ref[...],
                         preferred_element_type=f32) + b_e_full)   # (BP, 4HE)
        i_g = jax.nn.sigmoid(gates[:, 0 * HE:1 * HE])
        f_g = jax.nn.sigmoid(gates[:, 1 * HE:2 * HE])
        g_g = jnp.tanh(gates[:, 2 * HE:3 * HE])
        o_g = jax.nn.sigmoid(gates[:, 3 * HE:4 * HE])
        c = f_g * c + i_g * g_g
        h = o_g * jnp.tanh(c)
        enc_parts.append(h)
        # off-critical-path: pre-project this encoder state for decoder attn
        proj_parts.append(jnp.dot(h, w1e_ref[...], preferred_element_type=f32))

    enc_2d = jnp.concatenate(enc_parts, axis=1)                    # (BP, T*HE)
    enc_proj = (jnp.concatenate(proj_parts, axis=1)
                + rows_ref[2:3, :T * HE])                          # + b1 (tiled)

    # ------------------------------- Decoder -------------------------------
    y = y_ref[...]                                                 # (BP, T-1)
    b_d_full = jnp.broadcast_to(rows_ref[3:4, :4 * HD], (BP, 4 * HD))

    hd = jnp.zeros((BP, HD), f32)
    cd = jnp.zeros((BP, HD), f32)
    ctx = jnp.zeros((BP, HE), f32)
    for t in range(T - 1):                                         # fully unrolled
        hcd = jnp.concatenate([hd, cd], axis=1)                    # (BP, 2HD)
        zf = jnp.tanh(enc_proj + jnp.dot(hcd, w1hc_ref[...],
                                         preferred_element_type=f32))  # (BP, T*HE)
        sc = jnp.dot(zf, w2blk_ref[...],
                     preferred_element_type=f32) + b2              # (BP, T)
        sc = sc - jnp.max(sc, axis=-1, keepdims=True)
        es = jnp.exp(sc)
        attn = es * pl.reciprocal(jnp.sum(es, axis=-1, keepdims=True),
                                  approx=True)                     # softmax over T
        attn_exp = jnp.dot(attn, e_ref[...],
                           preferred_element_type=f32)             # (BP, T*HE)
        ctx = jnp.dot(attn_exp * enc_2d, g_ref[...],
                      preferred_element_type=f32)                  # (BP, HE)
        gates = (jnp.dot(jnp.concatenate([ctx, hd], axis=1), wdcat_ref[...],
                         preferred_element_type=f32)
                 + y[:, t:t + 1] * rows_ref[4:5, :4 * HD]          # y term of fc
                 + b_d_full)                                       # (BP, 4HD)
        i_g = jax.nn.sigmoid(gates[:, 0 * HD:1 * HD])
        f_g = jax.nn.sigmoid(gates[:, 1 * HD:2 * HD])
        g_g = jnp.tanh(gates[:, 2 * HD:3 * HD])
        o_g = jax.nn.sigmoid(gates[:, 3 * HD:4 * HD])
        cd = f_g * cd + i_g * g_g
        hd = o_g * jnp.tanh(cd)

    # fc_final(cat(hidden[0], context))
    hcat = jnp.concatenate([hd, ctx], axis=1)                      # (BP, HD+HE)
    out_ref[...] = (jnp.sum(hcat * rows_ref[5:6, :HD + HE],
                            axis=-1, keepdims=True) + b_ff)


# --------------------------------------------------------------------------
# Wrapper: parameter re-layout / fusion (PyTorch layout -> kernel layout).
# --------------------------------------------------------------------------
def model_forward(x, y_history, p):
    f32 = jnp.float32
    x = x.astype(f32)
    y_history = y_history.astype(f32)
    bx = x.shape[0]

    # Pad batch to 8 sublanes; flatten time/input into the lane dim.
    x_p = jnp.zeros((BP, T, M), f32).at[:bx].set(x)
    y_p = jnp.zeros((BP, T - 1), f32).at[:bx].set(y_history)
    x_step = x_p.reshape(BP, T * M)                     # x_step[b, t*M+m]

    # ---------------- Encoder weights (expanded layouts) ----------------
    w_ai = p['enc_W_ai'][0]                             # (T,)
    b_ai = p['enc_b_ai'][0]
    b_ah = p['enc_b_ah']                                # (T,)
    w_a = p['enc_W_a'][0]                               # (T,)
    eye_m = jnp.eye(M, dtype=f32)
    # A[t'*M+m', m*T+t] = w_ai[t'] * (m'==m)   (fused permute + attn_layer_input)
    A_w = (w_ai[:, None, None, None] * eye_m[None, :, :, None]
           * jnp.ones((1, 1, 1, T), f32)).reshape(T * M, M * T)
    xinp_bias = jnp.tile(b_ai + b_ah, (M,))             # (M*T,), index m*T+t
    W_ahx = jnp.tile(p['enc_W_ah'].T, (1, M))           # (2HE, M*T)
    # S[m*T+t, m'] = w_a[t] * (m==m')
    S_w = (eye_m[:, None, :] * w_a[None, :, None]).reshape(M * T, M)
    W_ecat = jnp.concatenate([p['enc_W_ih'].T, p['enc_W_hh'].T], axis=0)  # (M+HE,4HE)
    b_e = p['enc_b_ih'] + p['enc_b_hh']                 # (4HE,)

    # ---------------- Decoder weights ----------------
    W1_T = p['dec_W1'].T                                # (2HD+HE, HE)
    w1hc = W1_T[:2 * HD]                                # (2HD, HE)
    w1e = W1_T[2 * HD:]                                 # (HE, HE)
    W1hc_tiled = jnp.tile(w1hc, (1, T))                 # (2HD, T*HE)
    b1_tiled = jnp.tile(p['dec_b1'], (T,))              # (T*HE,)
    w2 = p['dec_W2'][0]                                 # (HE,)
    eye_t = jnp.eye(T, dtype=f32)
    # W2blk[t*HE+h, t'] = w2[h] * (t==t')
    W2_blk = (eye_t[:, None, :] * w2[None, :, None]).reshape(T * HE, T)
    Emat = jnp.repeat(eye_t, HE, axis=1)                # (T, T*HE)
    Gmat = jnp.tile(jnp.eye(HE, dtype=f32), (T, 1))     # (T*HE, HE)

    wfc_ctx = p['dec_W_fc'][0, :HE]                     # (HE,)
    w_fc_y = p['dec_W_fc'][0, HE]                       # scalar
    b_fc = p['dec_b_fc'][0]
    w_ihd = p['dec_W_ih'][:, 0]                         # (4HD,)
    W_dcat = jnp.concatenate([jnp.outer(wfc_ctx, w_ihd), p['dec_W_hh'].T],
                             axis=0)                    # (HE+HD, 4HD)
    w_fcy_row = w_fc_y * w_ihd                          # (4HD,)
    b_drow = b_fc * w_ihd + p['dec_b_ih'] + p['dec_b_hh']  # (4HD,)
    wff_row = p['dec_W_ff'][0]                          # (HD+HE,)

    # ---------------- Packed bias rows + SMEM scalars ----------------
    rows = jnp.zeros((8, T * HE), f32)
    rows = rows.at[0, :M * T].set(xinp_bias)
    rows = rows.at[1, :4 * HE].set(b_e)
    rows = rows.at[2, :T * HE].set(b1_tiled)
    rows = rows.at[3, :4 * HD].set(b_drow)
    rows = rows.at[4, :4 * HD].set(w_fcy_row)
    rows = rows.at[5, :HD + HE].set(wff_row)

    scal = jnp.stack([p['enc_b_a'][0], p['dec_b2'][0],
                      p['dec_b_ff'][0]]).astype(f32)

    vmem = pl.BlockSpec(memory_space=pltpu.MemorySpace.VMEM)
    smem = pl.BlockSpec(memory_space=pltpu.MemorySpace.SMEM)

    out = pl.pallas_call(
        _darnn_kernel,
        out_shape=jax.ShapeDtypeStruct((BP, 1), f32),
        in_specs=[vmem] * 13 + [smem],
        out_specs=vmem,
    )(x_step, y_p, A_w, W_ahx, S_w, W_ecat, w1e, W1hc_tiled,
      W2_blk, Emat, Gmat, W_dcat, rows, scal)
    return out[:bx]


# --------------------------------------------------------------------------
# Deterministic parameter init (PyTorch weight layouts) + pure-JAX reference
# --------------------------------------------------------------------------
def init_params(key):
    ks = jax.random.split(key, 22)

    def nrm(k, shape, scale=0.1):
        return jax.random.normal(k, shape, jnp.float32) * scale

    return {
        # Encoder
        'enc_W_ah': nrm(ks[0], (T, 2 * HE)),       # attn_layer_hidden
        'enc_b_ah': nrm(ks[1], (T,)),
        'enc_W_ai': nrm(ks[2], (1, T)),            # attn_layer_input
        'enc_b_ai': nrm(ks[3], (1,)),
        'enc_W_a': nrm(ks[4], (1, T)),             # attn_layer
        'enc_b_a': nrm(ks[5], (1,)),
        'enc_W_ih': nrm(ks[6], (4 * HE, M)),       # LSTM(input_size=M, hidden=HE)
        'enc_W_hh': nrm(ks[7], (4 * HE, HE)),
        'enc_b_ih': nrm(ks[8], (4 * HE,)),
        'enc_b_hh': nrm(ks[9], (4 * HE,)),
        # Decoder
        'dec_W1': nrm(ks[10], (HE, 2 * HD + HE)),  # attn_layer[0]
        'dec_b1': nrm(ks[11], (HE,)),
        'dec_W2': nrm(ks[12], (1, HE)),            # attn_layer[2]
        'dec_b2': nrm(ks[13], (1,)),
        'dec_W_ih': nrm(ks[14], (4 * HD, 1)),      # LSTM(input_size=1, hidden=HD)
        'dec_W_hh': nrm(ks[15], (4 * HD, HD)),
        'dec_b_ih': nrm(ks[16], (4 * HD,)),
        'dec_b_hh': nrm(ks[17], (4 * HD,)),
        'dec_W_fc': nrm(ks[18], (1, HE + 1), scale=1.0),  # fc.weight.normal_()
        'dec_b_fc': nrm(ks[19], (1,)),
        'dec_W_ff': nrm(ks[20], (1, HD + HE)),     # fc_final
        'dec_b_ff': nrm(ks[21], (1,)),
    }


def reference_forward(x, y_history, p):
    """Pure-JAX mirror of the PyTorch forward (for verification)."""
    # Encoder
    h = jnp.zeros((B, HE)); c = jnp.zeros((B, HE))
    x_inp = x.transpose(0, 2, 1).reshape(-1, T) @ p['enc_W_ai'].T + p['enc_b_ai']
    enc = []
    for t in range(T):
        hc = jnp.concatenate([h, c], -1)
        hid = jnp.repeat(hc[:, None, :], M, axis=1).reshape(-1, 2 * HE)
        zz = jnp.tanh(hid @ p['enc_W_ah'].T + p['enc_b_ah'] + x_inp)
        sc = (zz @ p['enc_W_a'].T + p['enc_b_a']).reshape(B, M)
        attn = jax.nn.softmax(sc, axis=-1)
        wi = attn * x[:, t, :]
        gates = (wi @ p['enc_W_ih'].T + p['enc_b_ih']
                 + h @ p['enc_W_hh'].T + p['enc_b_hh'])
        i = jax.nn.sigmoid(gates[:, :HE]); f = jax.nn.sigmoid(gates[:, HE:2 * HE])
        g = jnp.tanh(gates[:, 2 * HE:3 * HE]); o = jax.nn.sigmoid(gates[:, 3 * HE:])
        c = f * c + i * g; h = o * jnp.tanh(c)
        enc.append(h)
    input_encoded = jnp.stack(enc, axis=1)          # (B, T, HE)
    # Decoder
    h = jnp.zeros((B, HD)); c = jnp.zeros((B, HD)); context = jnp.zeros((B, HE))
    for t in range(T - 1):
        xcat = jnp.concatenate([jnp.repeat(h[:, None, :], T, axis=1),
                                jnp.repeat(c[:, None, :], T, axis=1),
                                input_encoded], axis=-1)
        zz = jnp.tanh(xcat.reshape(-1, 2 * HD + HE) @ p['dec_W1'].T + p['dec_b1'])
        sc = (zz @ p['dec_W2'].T + p['dec_b2']).reshape(B, T)
        attn = jax.nn.softmax(sc, axis=-1)
        context = jnp.einsum('bt,bth->bh', attn, input_encoded)
        y_tild = (jnp.concatenate([context, y_history[:, t:t + 1]], -1)
                  @ p['dec_W_fc'].T + p['dec_b_fc'])
        gates = (y_tild @ p['dec_W_ih'].T + p['dec_b_ih']
                 + h @ p['dec_W_hh'].T + p['dec_b_hh'])
        i = jax.nn.sigmoid(gates[:, :HD]); f = jax.nn.sigmoid(gates[:, HD:2 * HD])
        g = jnp.tanh(gates[:, 2 * HD:3 * HD]); o = jax.nn.sigmoid(gates[:, 3 * HD:])
        c = f * c + i * g; h = o * jnp.tanh(c)
    final = jnp.concatenate([h, context], -1)
    return final @ p['dec_W_ff'].T + p['dec_b_ff']


if __name__ == "__main__":
    key = jax.random.PRNGKey(0)
    kx, ky, kp = jax.random.split(key, 3)
    x = jax.random.normal(kx, (B, T, M), jnp.float32)
    y_history = jax.random.normal(ky, (B, T - 1), jnp.float32)
    params = init_params(kp)

    out = jax.jit(model_forward)(x, y_history, params)
    out = jax.block_until_ready(out)
    assert out.shape == (B, 1)

    ref = jax.block_until_ready(reference_forward(x, y_history, params))
    # Slightly looser tolerance: softmax denominators use the approximate
    # EUP reciprocal (pl.reciprocal(approx=True)).
    if not np.allclose(np.asarray(out), np.asarray(ref), atol=5e-3, rtol=5e-3):
        raise AssertionError(
            "kernel/reference mismatch, max abs diff = "
            f"{np.max(np.abs(np.asarray(out) - np.asarray(ref)))}")

    print("KERNEL_OK")
</pallas_src>

<mosaic_0001>
module attributes {stable_mosaic.version = 11 : i64} {
  func.func @_darnn_kernel(%arg0: memref<8x128xf32, #tpu.memory_space<vmem>>, %arg1: memref<8x7xf32, #tpu.memory_space<vmem>>, %arg2: memref<128x128xf32, #tpu.memory_space<vmem>>, %arg3: memref<64x128xf32, #tpu.memory_space<vmem>>, %arg4: memref<128x16xf32, #tpu.memory_space<vmem>>, %arg5: memref<48x128xf32, #tpu.memory_space<vmem>>, %arg6: memref<32x32xf32, #tpu.memory_space<vmem>>, %arg7: memref<64x256xf32, #tpu.memory_space<vmem>>, %arg8: memref<256x8xf32, #tpu.memory_space<vmem>>, %arg9: memref<8x256xf32, #tpu.memory_space<vmem>>, %arg10: memref<256x32xf32, #tpu.memory_space<vmem>>, %arg11: memref<64x128xf32, #tpu.memory_space<vmem>>, %arg12: memref<8x256xf32, #tpu.memory_space<vmem>>, %arg13: memref<3xf32, #tpu.memory_space<smem>>, %arg14: memref<8x1xf32, #tpu.memory_space<vmem>>) attributes {dimension_semantics = [], scalar_prefetch = 0 : i64, scratch_operands = 0 : i64, tpu.core_type = #tpu.core_type<tc>} {
    %c0 = arith.constant 0 : index
    %0 = memref.load %arg13[%c0] : memref<3xf32, #tpu.memory_space<smem>>
    %c1 = arith.constant 1 : index
    %1 = memref.load %arg13[%c1] : memref<3xf32, #tpu.memory_space<smem>>
    %c2 = arith.constant 2 : index
    %2 = memref.load %arg13[%c2] : memref<3xf32, #tpu.memory_space<smem>>
    %c0_0 = arith.constant 0 : index
    %c0_1 = arith.constant 0 : index
    %3 = vector.load %arg0[%c0_0, %c0_1] : memref<8x128xf32, #tpu.memory_space<vmem>>, vector<8x128xf32>
    %c0_2 = arith.constant 0 : index
    %c0_3 = arith.constant 0 : index
    %4 = vector.load %arg2[%c0_2, %c0_3] : memref<128x128xf32, #tpu.memory_space<vmem>>, vector<128x128xf32>
    %cst = arith.constant dense<0.000000e+00> : vector<8x128xf32>
    %5 = tpu.matmul %3, %4, %cst {dimension_numbers = #tpu.dot_dimension_numbers<[1], [0], [0], [1], [0, 0, 1, 1], [], []>} : vector<8x128xf32>, vector<128x128xf32>, vector<8x128xf32> -> vector<8x128xf32>
    %c0_4 = arith.constant 0 : index
    %c0_5 = arith.constant 0 : index
    %6 = vector.load %arg12[%c0_4, %c0_5] : memref<8x256xf32, #tpu.memory_space<vmem>>, vector<1x128xf32>
    %7 = vector.broadcast %6 : vector<1x128xf32> to vector<8x128xf32>
    %8 = arith.addf %5, %7 : vector<8x128xf32>
    %c1_6 = arith.constant 1 : index
    %c0_7 = arith.constant 0 : index
    %9 = vector.load %arg12[%c1_6, %c0_7] : memref<8x256xf32, #tpu.memory_space<vmem>>, vector<1x128xf32>
    %10 = vector.shape_cast %9 : vector<1x128xf32> to vector<1x128xf32>
    %11 = vector.broadcast %10 : vector<1x128xf32> to vector<8x128xf32>
    %cst_8 = arith.constant 0.000000e+00 : f32
    %12 = vector.broadcast %cst_8 : f32 to vector<8x32xf32>
    %cst_9 = arith.constant 0.000000e+00 : f32
    %13 = vector.broadcast %cst_9 : f32 to vector<8x32xf32>
    %14 = tpu.concatenate %12, %13 in 1 : vector<8x32xf32>, vector<8x32xf32> -> vector<8x64xf32>
    %c0_10 = arith.constant 0 : index
    %c0_11 = arith.constant 0 : index
    %15 = vector.load %arg3[%c0_10, %c0_11] : memref<64x128xf32, #tpu.memory_space<vmem>>, vector<64x128xf32>
    %cst_12 = arith.constant dense<0.000000e+00> : vector<8x128xf32>
    %16 = tpu.matmul %14, %15, %cst_12 {dimension_numbers = #tpu.dot_dimension_numbers<[1], [0], [0], [1], [0, 0, 1, 1], [], []>} : vector<8x64xf32>, vector<64x128xf32>, vector<8x128xf32> -> vector<8x128xf32>
    %17 = arith.addf %16, %8 : vector<8x128xf32>
    %18 = math.tanh %17 : vector<8x128xf32>
    %c0_13 = arith.constant 0 : index
    %c0_14 = arith.constant 0 : index
    %19 = vector.load %arg4[%c0_13, %c0_14] : memref<128x16xf32, #tpu.memory_space<vmem>>, vector<128x16xf32>
    %cst_15 = arith.constant dense<0.000000e+00> : vector<8x16xf32>
    %20 = tpu.matmul %18, %19, %cst_15 {dimension_numbers = #tpu.dot_dimension_numbers<[1], [0], [0], [1], [0, 0, 1, 1], [], []>} : vector<8x128xf32>, vector<128x16xf32>, vector<8x16xf32> -> vector<8x16xf32>
    %21 = vector.broadcast %0 : f32 to vector<8x16xf32>
    %22 = arith.addf %20, %21 : vector<8x16xf32>
    %cst_16 = arith.constant dense<0xFF800000> : vector<8xf32>
    %23 = vector.multi_reduction <maximumf>, %22, %cst_16 [1] : vector<8x16xf32> to vector<8xf32>
    %24 = vector.shape_cast %23 : vector<8xf32> to vector<8x1xf32>
    %25 = vector.broadcast %24 : vector<8x1xf32> to vector<8x16xf32>
    %26 = arith.subf %22, %25 : vector<8x16xf32>
    %27 = math.exp %26 : vector<8x16xf32>
    %cst_17 = arith.constant dense<0.000000e+00> : vector<8xf32>
    %28 = vector.multi_reduction <add>, %27, %cst_17 [1] : vector<8x16xf32> to vector<8xf32>
    %29 = vector.shape_cast %28 : vector<8xf32> to vector<8x1xf32>
    %30 = tpu.reciprocal %29 {approx = true} : vector<8x1xf32> -> vector<8x1xf32>
    %31 = vector.broadcast %30 : vector<8x1xf32> to vector<8x16xf32>
    %32 = arith.mulf %27, %31 : vector<8x16xf32>
    %33 = vector.extract_strided_slice %3 {offsets = [0, 0], sizes = [8, 16], strides = [1, 1]} : vector<8x128xf32> to vector<8x16xf32>
    %34 = arith.mulf %32, %33 : vector<8x16xf32>
    %35 = tpu.concatenate %34, %12 in 1 : vector<8x16xf32>, vector<8x32xf32> -> vector<8x48xf32>
    %c0_18 = arith.constant 0 : index
    %c0_19 = arith.constant 0 : index
    %36 = vector.load %arg5[%c0_18, %c0_19] : memref<48x128xf32, #tpu.memory_space<vmem>>, vector<48x128xf32>
    %cst_20 = arith.constant dense<0.000000e+00> : vector<8x128xf32>
    %37 = tpu.matmul %35, %36, %cst_20 {dimension_numbers = #tpu.dot_dimension_numbers<[1], [0], [0], [1], [0, 0, 1, 1], [], []>} : vector<8x48xf32>, vector<48x128xf32>, vector<8x128xf32> -> vector<8x128xf32>
    %38 = arith.addf %37, %11 : vector<8x128xf32>
    %39 = vector.extract_strided_slice %38 {offsets = [0, 0], sizes = [8, 32], strides = [1, 1]} : vector<8x128xf32> to vector<8x32xf32>
    %40 = arith.negf %39 : vector<8x32xf32>
    %41 = math.exp %40 : vector<8x32xf32>
    %cst_21 = arith.constant 1.000000e+00 : f32
    %42 = vector.broadcast %cst_21 : f32 to vector<8x32xf32>
    %43 = arith.addf %42, %41 : vector<8x32xf32>
    %44 = arith.divf %42, %43 : vector<8x32xf32>
    %45 = vector.extract_strided_slice %38 {offsets = [0, 32], sizes = [8, 32], strides = [1, 1]} : vector<8x128xf32> to vector<8x32xf32>
    %46 = arith.negf %45 : vector<8x32xf32>
    %47 = math.exp %46 : vector<8x32xf32>
    %cst_22 = arith.constant 1.000000e+00 : f32
    %48 = vector.broadcast %cst_22 : f32 to vector<8x32xf32>
    %49 = arith.addf %48, %47 : vector<8x32xf32>
    %50 = arith.divf %48, %49 : vector<8x32xf32>
    %51 = vector.extract_strided_slice %38 {offsets = [0, 64], sizes = [8, 32], strides = [1, 1]} : vector<8x128xf32> to vector<8x32xf32>
    %52 = math.tanh %51 : vector<8x32xf32>
    %53 = vector.extract_strided_slice %38 {offsets = [0, 96], sizes = [8, 32], strides = [1, 1]} : vector<8x128xf32> to vector<8x32xf32>
    %54 = arith.negf %53 : vector<8x32xf32>
    %55 = math.exp %54 : vector<8x32xf32>
    %cst_23 = arith.constant 1.000000e+00 : f32
    %56 = vector.broadcast %cst_23 : f32 to vector<8x32xf32>
    %57 = arith.addf %56, %55 : vector<8x32xf32>
    %58 = arith.divf %56, %57 : vector<8x32xf32>
    %59 = arith.mulf %50, %13 : vector<8x32xf32>
    %60 = arith.mulf %44, %52 : vector<8x32xf32>
    %61 = arith.addf %59, %60 : vector<8x32xf32>
    %62 = math.tanh %61 : vector<8x32xf32>
    %63 = arith.mulf %58, %62 : vector<8x32xf32>
    %c0_24 = arith.constant 0 : index
    %c0_25 = arith.constant 0 : index
    %64 = vector.load %arg6[%c0_24, %c0_25] : memref<32x32xf32, #tpu.memory_space<vmem>>, vector<32x32xf32>
    %cst_26 = arith.constant dense<0.000000e+00> : vector<8x32xf32>
    %65 = tpu.matmul %63, %64, %cst_26 {dimension_numbers = #tpu.dot_dimension_numbers<[1], [0], [0], [1], [0, 0, 1, 1], [], []>} : vector<8x32xf32>, vector<32x32xf32>, vector<8x32xf32> -> vector<8x32xf32>
    %66 = tpu.concatenate %63, %61 in 1 : vector<8x32xf32>, vector<8x32xf32> -> vector<8x64xf32>
    %c0_27 = arith.constant 0 : index
    %c0_28 = arith.constant 0 : index
    %67 = vector.load %arg3[%c0_27, %c0_28] : memref<64x128xf32, #tpu.memory_space<vmem>>, vector<64x128xf32>
    %cst_29 = arith.constant dense<0.000000e+00> : vector<8x128xf32>
    %68 = tpu.matmul %66, %67, %cst_29 {dimension_numbers = #tpu.dot_dimension_numbers<[1], [0], [0], [1], [0, 0, 1, 1], [], []>} : vector<8x64xf32>, vector<64x128xf32>, vector<8x128xf32> -> vector<8x128xf32>
    %69 = arith.addf %68, %8 : vector<8x128xf32>
    %70 = math.tanh %69 : vector<8x128xf32>
    %c0_30 = arith.constant 0 : index
    %c0_31 = arith.constant 0 : index
    %71 = vector.load %arg4[%c0_30, %c0_31] : memref<128x16xf32, #tpu.memory_space<vmem>>, vector<128x16xf32>
    %cst_32 = arith.constant dense<0.000000e+00> : vector<8x16xf32>
    %72 = tpu.matmul %70, %71, %cst_32 {dimension_numbers = #tpu.dot_dimension_numbers<[1], [0], [0], [1], [0, 0, 1, 1], [], []>} : vector<8x128xf32>, vector<128x16xf32>, vector<8x16xf32> -> vector<8x16xf32>
    %73 = vector.broadcast %0 : f32 to vector<8x16xf32>
    %74 = arith.addf %72, %73 : vector<8x16xf32>
    %cst_33 = arith.constant dense<0xFF800000> : vector<8xf32>
    %75 = vector.multi_reduction <maximumf>, %74, %cst_33 [1] : vector<8x16xf32> to vector<8xf32>
    %76 = vector.shape_cast %75 : vector<8xf32> to vector<8x1xf32>
    %77 = vector.broadcast %76 : vector<8x1xf32> to vector<8x16xf32>
    %78 = arith.subf %74, %77 : vector<8x16xf32>
    %79 = math.exp %78 : vector<8x16xf32>
    %cst_34 = arith.constant dense<0.000000e+00> : vector<8xf32>
    %80 = vector.multi_reduction <add>, %79, %cst_34 [1] : vector<8x16xf32> to vector<8xf32>
    %81 = vector.shape_cast %80 : vector<8xf32> to vector<8x1xf32>
    %82 = tpu.reciprocal %81 {approx = true} : vector<8x1xf32> -> vector<8x1xf32>
    %83 = vector.broadcast %82 : vector<8x1xf32> to vector<8x16xf32>
    %84 = arith.mulf %79, %83 : vector<8x16xf32>
    %85 = vector.extract_strided_slice %3 {offsets = [0, 16], sizes = [8, 16], strides = [1, 1]} : vector<8x128xf32> to vector<8x16xf32>
    %86 = arith.mulf %84, %85 : vector<8x16xf32>
    %87 = tpu.concatenate %86, %63 in 1 : vector<8x16xf32>, vector<8x32xf32> -> vector<8x48xf32>
    %c0_35 = arith.constant 0 : index
    %c0_36 = arith.constant 0 : index
    %88 = vector.load %arg5[%c0_35, %c0_36] : memref<48x128xf32, #tpu.memory_space<vmem>>, vector<48x128xf32>
    %cst_37 = arith.constant dense<0.000000e+00> : vector<8x128xf32>
    %89 = tpu.matmul %87, %88, %cst_37 {dimension_numbers = #tpu.dot_dimension_numbers<[1], [0], [0], [1], [0, 0, 1, 1], [], []>} : vector<8x48xf32>, vector<48x128xf32>, vector<8x128xf32> -> vector<8x128xf32>
    %90 = arith.addf %89, %11 : vector<8x128xf32>
    %91 = vector.extract_strided_slice %90 {offsets = [0, 0], sizes = [8, 32], strides = [1, 1]} : vector<8x128xf32> to vector<8x32xf32>
    %92 = arith.negf %91 : vector<8x32xf32>
    %93 = math.exp %92 : vector<8x32xf32>
    %cst_38 = arith.constant 1.000000e+00 : f32
    %94 = vector.broadcast %cst_38 : f32 to vector<8x32xf32>
    %95 = arith.addf %94, %93 : vector<8x32xf32>
    %96 = arith.divf %94, %95 : vector<8x32xf32>
    %97 = vector.extract_strided_slice %90 {offsets = [0, 32], sizes = [8, 32], strides = [1, 1]} : vector<8x128xf32> to vector<8x32xf32>
    %98 = arith.negf %97 : vector<8x32xf32>
    %99 = math.exp %98 : vector<8x32xf32>
    %cst_39 = arith.constant 1.000000e+00 : f32
    %100 = vector.broadcast %cst_39 : f32 to vector<8x32xf32>
    %101 = arith.addf %100, %99 : vector<8x32xf32>
    %102 = arith.divf %100, %101 : vector<8x32xf32>
    %103 = vector.extract_strided_slice %90 {offsets = [0, 64], sizes = [8, 32], strides = [1, 1]} : vector<8x128xf32> to vector<8x32xf32>
    %104 = math.tanh %103 : vector<8x32xf32>
    %105 = vector.extract_strided_slice %90 {offsets = [0, 96], sizes = [8, 32], strides = [1, 1]} : vector<8x128xf32> to vector<8x32xf32>
    %106 = arith.negf %105 : vector<8x32xf32>
    %107 = math.exp %106 : vector<8x32xf32>
    %cst_40 = arith.constant 1.000000e+00 : f32
    %108 = vector.broadcast %cst_40 : f32 to vector<8x32xf32>
    %109 = arith.addf %108, %107 : vector<8x32xf32>
    %110 = arith.divf %108, %109 : vector<8x32xf32>
    %111 = arith.mulf %102, %61 : vector<8x32xf32>
    %112 = arith.mulf %96, %104 : vector<8x32xf32>
    %113 = arith.addf %111, %112 : vector<8x32xf32>
    %114 = math.tanh %113 : vector<8x32xf32>
    %115 = arith.mulf %110, %114 : vector<8x32xf32>
    %c0_41 = arith.constant 0 : index
    %c0_42 = arith.constant 0 : index
    %116 = vector.load %arg6[%c0_41, %c0_42] : memref<32x32xf32, #tpu.memory_space<vmem>>, vector<32x32xf32>
    %cst_43 = arith.constant dense<0.000000e+00> : vector<8x32xf32>
    %117 = tpu.matmul %115, %116, %cst_43 {dimension_numbers = #tpu.dot_dimension_numbers<[1], [0], [0], [1], [0, 0, 1, 1], [], []>} : vector<8x32xf32>, vector<32x32xf32>, vector<8x32xf32> -> vector<8x32xf32>
    %118 = tpu.concatenate %115, %113 in 1 : vector<8x32xf32>, vector<8x32xf32> -> vector<8x64xf32>
    %c0_44 = arith.constant 0 : index
    %c0_45 = arith.constant 0 : index
    %119 = vector.load %arg3[%c0_44, %c0_45] : memref<64x128xf32, #tpu.memory_space<vmem>>, vector<64x128xf32>
    %cst_46 = arith.constant dense<0.000000e+00> : vector<8x128xf32>
    %120 = tpu.matmul %118, %119, %cst_46 {dimension_numbers = #tpu.dot_dimension_numbers<[1], [0], [0], [1], [0, 0, 1, 1], [], []>} : vector<8x64xf32>, vector<64x128xf32>, vector<8x128xf32> -> vector<8x128xf32>
    %121 = arith.addf %120, %8 : vector<8x128xf32>
    %122 = math.tanh %121 : vector<8x128xf32>
    %c0_47 = arith.constant 0 : index
    %c0_48 = arith.constant 0 : index
    %123 = vector.load %arg4[%c0_47, %c0_48] : memref<128x16xf32, #tpu.memory_space<vmem>>, vector<128x16xf32>
    %cst_49 = arith.constant dense<0.000000e+00> : vector<8x16xf32>
    %124 = tpu.matmul %122, %123, %cst_49 {dimension_numbers = #tpu.dot_dimension_numbers<[1], [0], [0], [1], [0, 0, 1, 1], [], []>} : vector<8x128xf32>, vector<128x16xf32>, vector<8x16xf32> -> vector<8x16xf32>
    %125 = vector.broadcast %0 : f32 to vector<8x16xf32>
    %126 = arith.addf %124, %125 : vector<8x16xf32>
    %cst_50 = arith.constant dense<0xFF800000> : vector<8xf32>
    %127 = vector.multi_reduction <maximumf>, %126, %cst_50 [1] : vector<8x16xf32> to vector<8xf32>
    %128 = vector.shape_cast %127 : vector<8xf32> to vector<8x1xf32>
    %129 = vector.broadcast %128 : vector<8x1xf32> to vector<8x16xf32>
    %130 = arith.subf %126, %129 : vector<8x16xf32>
    %131 = math.exp %130 : vector<8x16xf32>
    %cst_51 = arith.constant dense<0.000000e+00> : vector<8xf32>
    %132 = vector.multi_reduction <add>, %131, %cst_51 [1] : vector<8x16xf32> to vector<8xf32>
    %133 = vector.shape_cast %132 : vector<8xf32> to vector<8x1xf32>
    %134 = tpu.reciprocal %133 {approx = true} : vector<8x1xf32> -> vector<8x1xf32>
    %135 = vector.broadcast %134 : vector<8x1xf32> to vector<8x16xf32>
    %136 = arith.mulf %131, %135 : vector<8x16xf32>
    %137 = vector.extract_strided_slice %3 {offsets = [0, 32], sizes = [8, 16], strides = [1, 1]} : vector<8x128xf32> to vector<8x16xf32>
    %138 = arith.mulf %136, %137 : vector<8x16xf32>
    %139 = tpu.concatenate %138, %115 in 1 : vector<8x16xf32>, vector<8x32xf32> -> vector<8x48xf32>
    %c0_52 = arith.constant 0 : index
    %c0_53 = arith.constant 0 : index
    %140 = vector.load %arg5[%c0_52, %c0_53] : memref<48x128xf32, #tpu.memory_space<vmem>>, vector<48x128xf32>
    %cst_54 = arith.constant dense<0.000000e+00> : vector<8x128xf32>
    %141 = tpu.matmul %139, %140, %cst_54 {dimension_numbers = #tpu.dot_dimension_numbers<[1], [0], [0], [1], [0, 0, 1, 1], [], []>} : vector<8x48xf32>, vector<48x128xf32>, vector<8x128xf32> -> vector<8x128xf32>
    %142 = arith.addf %141, %11 : vector<8x128xf32>
    %143 = vector.extract_strided_slice %142 {offsets = [0, 0], sizes = [8, 32], strides = [1, 1]} : vector<8x128xf32> to vector<8x32xf32>
    %144 = arith.negf %143 : vector<8x32xf32>
    %145 = math.exp %144 : vector<8x32xf32>
    %cst_55 = arith.constant 1.000000e+00 : f32
    %146 = vector.broadcast %cst_55 : f32 to vector<8x32xf32>
    %147 = arith.addf %146, %145 : vector<8x32xf32>
    %148 = arith.divf %146, %147 : vector<8x32xf32>
    %149 = vector.extract_strided_slice %142 {offsets = [0, 32], sizes = [8, 32], strides = [1, 1]} : vector<8x128xf32> to vector<8x32xf32>
    %150 = arith.negf %149 : vector<8x32xf32>
    %151 = math.exp %150 : vector<8x32xf32>
    %cst_56 = arith.constant 1.000000e+00 : f32
    %152 = vector.broadcast %cst_56 : f32 to vector<8x32xf32>
    %153 = arith.addf %152, %151 : vector<8x32xf32>
    %154 = arith.divf %152, %153 : vector<8x32xf32>
    %155 = vector.extract_strided_slice %142 {offsets = [0, 64], sizes = [8, 32], strides = [1, 1]} : vector<8x128xf32> to vector<8x32xf32>
    %156 = math.tanh %155 : vector<8x32xf32>
    %157 = vector.extract_strided_slice %142 {offsets = [0, 96], sizes = [8, 32], strides = [1, 1]} : vector<8x128xf32> to vector<8x32xf32>
    %158 = arith.negf %157 : vector<8x32xf32>
    %159 = math.exp %158 : vector<8x32xf32>
    %cst_57 = arith.constant 1.000000e+00 : f32
    %160 = vector.broadcast %cst_57 : f32 to vector<8x32xf32>
    %161 = arith.addf %160, %159 : vector<8x32xf32>
    %162 = arith.divf %160, %161 : vector<8x32xf32>
    %163 = arith.mulf %154, %113 : vector<8x32xf32>
    %164 = arith.mulf %148, %156 : vector<8x32xf32>
    %165 = arith.addf %163, %164 : vector<8x32xf32>
    %166 = math.tanh %165 : vector<8x32xf32>
    %167 = arith.mulf %162, %166 : vector<8x32xf32>
    %c0_58 = arith.constant 0 : index
    %c0_59 = arith.constant 0 : index
    %168 = vector.load %arg6[%c0_58, %c0_59] : memref<32x32xf32, #tpu.memory_space<vmem>>, vector<32x32xf32>
    %cst_60 = arith.constant dense<0.000000e+00> : vector<8x32xf32>
    %169 = tpu.matmul %167, %168, %cst_60 {dimension_numbers = #tpu.dot_dimension_numbers<[1], [0], [0], [1], [0, 0, 1, 1], [], []>} : vector<8x32xf32>, vector<32x32xf32>, vector<8x32xf32> -> vector<8x32xf32>
    %170 = tpu.concatenate %167, %165 in 1 : vector<8x32xf32>, vector<8x32xf32> -> vector<8x64xf32>
    %c0_61 = arith.constant 0 : index
    %c0_62 = arith.constant 0 : index
    %171 = vector.load %arg3[%c0_61, %c0_62] : memref<64x128xf32, #tpu.memory_space<vmem>>, vector<64x128xf32>
    %cst_63 = arith.constant dense<0.000000e+00> : vector<8x128xf32>
    %172 = tpu.matmul %170, %171, %cst_63 {dimension_numbers = #tpu.dot_dimension_numbers<[1], [0], [0], [1], [0, 0, 1, 1], [], []>} : vector<8x64xf32>, vector<64x128xf32>, vector<8x128xf32> -> vector<8x128xf32>
    %173 = arith.addf %172, %8 : vector<8x128xf32>
    %174 = math.tanh %173 : vector<8x128xf32>
    %c0_64 = arith.constant 0 : index
    %c0_65 = arith.constant 0 : index
    %175 = vector.load %arg4[%c0_64, %c0_65] : memref<128x16xf32, #tpu.memory_space<vmem>>, vector<128x16xf32>
    %cst_66 = arith.constant dense<0.000000e+00> : vector<8x16xf32>
    %176 = tpu.matmul %174, %175, %cst_66 {dimension_numbers = #tpu.dot_dimension_numbers<[1], [0], [0], [1], [0, 0, 1, 1], [], []>} : vector<8x128xf32>, vector<128x16xf32>, vector<8x16xf32> -> vector<8x16xf32>
    %177 = vector.broadcast %0 : f32 to vector<8x16xf32>
    %178 = arith.addf %176, %177 : vector<8x16xf32>
    %cst_67 = arith.constant dense<0xFF800000> : vector<8xf32>
    %179 = vector.multi_reduction <maximumf>, %178, %cst_67 [1] : vector<8x16xf32> to vector<8xf32>
    %180 = vector.shape_cast %179 : vector<8xf32> to vector<8x1xf32>
    %181 = vector.broadcast %180 : vector<8x1xf32> to vector<8x16xf32>
    %182 = arith.subf %178, %181 : vector<8x16xf32>
    %183 = math.exp %182 : vector<8x16xf32>
    %cst_68 = arith.constant dense<0.000000e+00> : vector<8xf32>
    %184 = vector.multi_reduction <add>, %183, %cst_68 [1] : vector<8x16xf32> to vector<8xf32>
    %185 = vector.shape_cast %184 : vector<8xf32> to vector<8x1xf32>
    %186 = tpu.reciprocal %185 {approx = true} : vector<8x1xf32> -> vector<8x1xf32>
    %187 = vector.broadcast %186 : vector<8x1xf32> to vector<8x16xf32>
    %188 = arith.mulf %183, %187 : vector<8x16xf32>
    %189 = vector.extract_strided_slice %3 {offsets = [0, 48], sizes = [8, 16], strides = [1, 1]} : vector<8x128xf32> to vector<8x16xf32>
    %190 = arith.mulf %188, %189 : vector<8x16xf32>
    %191 = tpu.concatenate %190, %167 in 1 : vector<8x16xf32>, vector<8x32xf32> -> vector<8x48xf32>
    %c0_69 = arith.constant 0 : index
    %c0_70 = arith.constant 0 : index
    %192 = vector.load %arg5[%c0_69, %c0_70] : memref<48x128xf32, #tpu.memory_space<vmem>>, vector<48x128xf32>
    %cst_71 = arith.constant dense<0.000000e+00> : vector<8x128xf32>
    %193 = tpu.matmul %191, %192, %cst_71 {dimension_numbers = #tpu.dot_dimension_numbers<[1], [0], [0], [1], [0, 0, 1, 1], [], []>} : vector<8x48xf32>, vector<48x128xf32>, vector<8x128xf32> -> vector<8x128xf32>
    %194 = arith.addf %193, %11 : vector<8x128xf32>
    %195 = vector.extract_strided_slice %194 {offsets = [0, 0], sizes = [8, 32], strides = [1, 1]} : vector<8x128xf32> to vector<8x32xf32>
    %196 = arith.negf %195 : vector<8x32xf32>
    %197 = math.exp %196 : vector<8x32xf32>
    %cst_72 = arith.constant 1.000000e+00 : f32
    %198 = vector.broadcast %cst_72 : f32 to vector<8x32xf32>
    %199 = arith.addf %198, %197 : vector<8x32xf32>
    %200 = arith.divf %198, %199 : vector<8x32xf32>
    %201 = vector.extract_strided_slice %194 {offsets = [0, 32], sizes = [8, 32], strides = [1, 1]} : vector<8x128xf32> to vector<8x32xf32>
    %202 = arith.negf %201 : vector<8x32xf32>
    %203 = math.exp %202 : vector<8x32xf32>
    %cst_73 = arith.constant 1.000000e+00 : f32
    %204 = vector.broadcast %cst_73 : f32 to vector<8x32xf32>
    %205 = arith.addf %204, %203 : vector<8x32xf32>
    %206 = arith.divf %204, %205 : vector<8x32xf32>
    %207 = vector.extract_strided_slice %194 {offsets = [0, 64], sizes = [8, 32], strides = [1, 1]} : vector<8x128xf32> to vector<8x32xf32>
    %208 = math.tanh %207 : vector<8x32xf32>
    %209 = vector.extract_strided_slice %194 {offsets = [0, 96], sizes = [8, 32], strides = [1, 1]} : vector<8x128xf32> to vector<8x32xf32>
    %210 = arith.negf %209 : vector<8x32xf32>
    %211 = math.exp %210 : vector<8x32xf32>
    %cst_74 = arith.constant 1.000000e+00 : f32
    %212 = vector.broadcast %cst_74 : f32 to vector<8x32xf32>
    %213 = arith.addf %212, %211 : vector<8x32xf32>
    %214 = arith.divf %212, %213 : vector<8x32xf32>
    %215 = arith.mulf %206, %165 : vector<8x32xf32>
    %216 = arith.mulf %200, %208 : vector<8x32xf32>
    %217 = arith.addf %215, %216 : vector<8x32xf32>
    %218 = math.tanh %217 : vector<8x32xf32>
    %219 = arith.mulf %214, %218 : vector<8x32xf32>
    %c0_75 = arith.constant 0 : index
    %c0_76 = arith.constant 0 : index
    %220 = vector.load %arg6[%c0_75, %c0_76] : memref<32x32xf32, #tpu.memory_space<vmem>>, vector<32x32xf32>
    %cst_77 = arith.constant dense<0.000000e+00> : vector<8x32xf32>
    %221 = tpu.matmul %219, %220, %cst_77 {dimension_numbers = #tpu.dot_dimension_numbers<[1], [0], [0], [1], [0, 0, 1, 1], [], []>} : vector<8x32xf32>, vector<32x32xf32>, vector<8x32xf32> -> vector<8x32xf32>
    %222 = tpu.concatenate %219, %217 in 1 : vector<8x32xf32>, vector<8x32xf32> -> vector<8x64xf32>
    %c0_78 = arith.constant 0 : index
    %c0_79 = arith.constant 0 : index
    %223 = vector.load %arg3[%c0_78, %c0_79] : memref<64x128xf32, #tpu.memory_space<vmem>>, vector<64x128xf32>
    %cst_80 = arith.constant dense<0.000000e+00> : vector<8x128xf32>
    %224 = tpu.matmul %222, %223, %cst_80 {dimension_numbers = #tpu.dot_dimension_numbers<[1], [0], [0], [1], [0, 0, 1, 1], [], []>} : vector<8x64xf32>, vector<64x128xf32>, vector<8x128xf32> -> vector<8x128xf32>
    %225 = arith.addf %224, %8 : vector<8x128xf32>
    %226 = math.tanh %225 : vector<8x128xf32>
    %c0_81 = arith.constant 0 : index
    %c0_82 = arith.constant 0 : index
    %227 = vector.load %arg4[%c0_81, %c0_82] : memref<128x16xf32, #tpu.memory_space<vmem>>, vector<128x16xf32>
    %cst_83 = arith.constant dense<0.000000e+00> : vector<8x16xf32>
    %228 = tpu.matmul %226, %227, %cst_83 {dimension_numbers = #tpu.dot_dimension_numbers<[1], [0], [0], [1], [0, 0, 1, 1], [], []>} : vector<8x128xf32>, vector<128x16xf32>, vector<8x16xf32> -> vector<8x16xf32>
    %229 = vector.broadcast %0 : f32 to vector<8x16xf32>
    %230 = arith.addf %228, %229 : vector<8x16xf32>
    %cst_84 = arith.constant dense<0xFF800000> : vector<8xf32>
    %231 = vector.multi_reduction <maximumf>, %230, %cst_84 [1] : vector<8x16xf32> to vector<8xf32>
    %232 = vector.shape_cast %231 : vector<8xf32> to vector<8x1xf32>
    %233 = vector.broadcast %232 : vector<8x1xf32> to vector<8x16xf32>
    %234 = arith.subf %230, %233 : vector<8x16xf32>
    %235 = math.exp %234 : vector<8x16xf32>
    %cst_85 = arith.constant dense<0.000000e+00> : vector<8xf32>
    %236 = vector.multi_reduction <add>, %235, %cst_85 [1] : vector<8x16xf32> to vector<8xf32>
    %237 = vector.shape_cast %236 : vector<8xf32> to vector<8x1xf32>
    %238 = tpu.reciprocal %237 {approx = true} : vector<8x1xf32> -> vector<8x1xf32>
    %239 = vector.broadcast %238 : vector<8x1xf32> to vector<8x16xf32>
    %240 = arith.mulf %235, %239 : vector<8x16xf32>
    %241 = vector.extract_strided_slice %3 {offsets = [0, 64], sizes = [8, 16], strides = [1, 1]} : vector<8x128xf32> to vector<8x16xf32>
    %242 = arith.mulf %240, %241 : vector<8x16xf32>
    %243 = tpu.concatenate %242, %219 in 1 : vector<8x16xf32>, vector<8x32xf32> -> vector<8x48xf32>
    %c0_86 = arith.constant 0 : index
    %c0_87 = arith.constant 0 : index
    %244 = vector.load %arg5[%c0_86, %c0_87] : memref<48x128xf32, #tpu.memory_space<vmem>>, vector<48x128xf32>
    %cst_88 = arith.constant dense<0.000000e+00> : vector<8x128xf32>
    %245 = tpu.matmul %243, %244, %cst_88 {dimension_numbers = #tpu.dot_dimension_numbers<[1], [0], [0], [1], [0, 0, 1, 1], [], []>} : vector<8x48xf32>, vector<48x128xf32>, vector<8x128xf32> -> vector<8x128xf32>
    %246 = arith.addf %245, %11 : vector<8x128xf32>
    %247 = vector.extract_strided_slice %246 {offsets = [0, 0], sizes = [8, 32], strides = [1, 1]} : vector<8x128xf32> to vector<8x32xf32>
    %248 = arith.negf %247 : vector<8x32xf32>
    %249 = math.exp %248 : vector<8x32xf32>
    %cst_89 = arith.constant 1.000000e+00 : f32
    %250 = vector.broadcast %cst_89 : f32 to vector<8x32xf32>
    %251 = arith.addf %250, %249 : vector<8x32xf32>
    %252 = arith.divf %250, %251 : vector<8x32xf32>
    %253 = vector.extract_strided_slice %246 {offsets = [0, 32], sizes = [8, 32], strides = [1, 1]} : vector<8x128xf32> to vector<8x32xf32>
    %254 = arith.negf %253 : vector<8x32xf32>
    %255 = math.exp %254 : vector<8x32xf32>
    %cst_90 = arith.constant 1.000000e+00 : f32
    %256 = vector.broadcast %cst_90 : f32 to vector<8x32xf32>
    %257 = arith.addf %256, %255 : vector<8x32xf32>
    %258 = arith.divf %256, %257 : vector<8x32xf32>
    %259 = vector.extract_strided_slice %246 {offsets = [0, 64], sizes = [8, 32], strides = [1, 1]} : vector<8x128xf32> to vector<8x32xf32>
    %260 = math.tanh %259 : vector<8x32xf32>
    %261 = vector.extract_strided_slice %246 {offsets = [0, 96], sizes = [8, 32], strides = [1, 1]} : vector<8x128xf32> to vector<8x32xf32>
    %262 = arith.negf %261 : vector<8x32xf32>
    %263 = math.exp %262 : vector<8x32xf32>
    %cst_91 = arith.constant 1.000000e+00 : f32
    %264 = vector.broadcast %cst_91 : f32 to vector<8x32xf32>
    %265 = arith.addf %264, %263 : vector<8x32xf32>
    %266 = arith.divf %264, %265 : vector<8x32xf32>
    %267 = arith.mulf %258, %217 : vector<8x32xf32>
    %268 = arith.mulf %252, %260 : vector<8x32xf32>
    %269 = arith.addf %267, %268 : vector<8x32xf32>
    %270 = math.tanh %269 : vector<8x32xf32>
    %271 = arith.mulf %266, %270 : vector<8x32xf32>
    %c0_92 = arith.constant 0 : index
    %c0_93 = arith.constant 0 : index
    %272 = vector.load %arg6[%c0_92, %c0_93] : memref<32x32xf32, #tpu.memory_space<vmem>>, vector<32x32xf32>
    %cst_94 = arith.constant dense<0.000000e+00> : vector<8x32xf32>
    %273 = tpu.matmul %271, %272, %cst_94 {dimension_numbers = #tpu.dot_dimension_numbers<[1], [0], [0], [1], [0, 0, 1, 1], [], []>} : vector<8x32xf32>, vector<32x32xf32>, vector<8x32xf32> -> vector<8x32xf32>
    %274 = tpu.concatenate %271, %269 in 1 : vector<8x32xf32>, vector<8x32xf32> -> vector<8x64xf32>
    %c0_95 = arith.constant 0 : index
    %c0_96 = arith.constant 0 : index
    %275 = vector.load %arg3[%c0_95, %c0_96] : memref<64x128xf32, #tpu.memory_space<vmem>>, vector<64x128xf32>
    %cst_97 = arith.constant dense<0.000000e+00> : vector<8x128xf32>
    %276 = tpu.matmul %274, %275, %cst_97 {dimension_numbers = #tpu.dot_dimension_numbers<[1], [0], [0], [1], [0, 0, 1, 1], [], []>} : vector<8x64xf32>, vector<64x128xf32>, vector<8x128xf32> -> vector<8x128xf32>
    %277 = arith.addf %276, %8 : vector<8x128xf32>
    %278 = math.tanh %277 : vector<8x128xf32>
    %c0_98 = arith.constant 0 : index
    %c0_99 = arith.constant 0 : index
    %279 = vector.load %arg4[%c0_98, %c0_99] : memref<128x16xf32, #tpu.memory_space<vmem>>, vector<128x16xf32>
    %cst_100 = arith.constant dense<0.000000e+00> : vector<8x16xf32>
    %280 = tpu.matmul %278, %279, %cst_100 {dimension_numbers = #tpu.dot_dimension_numbers<[1], [0], [0], [1], [0, 0, 1, 1], [], []>} : vector<8x128xf32>, vector<128x16xf32>, vector<8x16xf32> -> vector<8x16xf32>
    %281 = vector.broadcast %0 : f32 to vector<8x16xf32>
    %282 = arith.addf %280, %281 : vector<8x16xf32>
    %cst_101 = arith.constant dense<0xFF800000> : vector<8xf32>
    %283 = vector.multi_reduction <maximumf>, %282, %cst_101 [1] : vector<8x16xf32> to vector<8xf32>
    %284 = vector.shape_cast %283 : vector<8xf32> to vector<8x1xf32>
    %285 = vector.broadcast %284 : vector<8x1xf32> to vector<8x16xf32>
    %286 = arith.subf %282, %285 : vector<8x16xf32>
    %287 = math.exp %286 : vector<8x16xf32>
    %cst_102 = arith.constant dense<0.000000e+00> : vector<8xf32>
    %288 = vector.multi_reduction <add>, %287, %cst_102 [1] : vector<8x16xf32> to vector<8xf32>
    %289 = vector.shape_cast %288 : vector<8xf32> to vector<8x1xf32>
    %290 = tpu.reciprocal %289 {approx = true} : vector<8x1xf32> -> vector<8x1xf32>
    %291 = vector.broadcast %290 : vector<8x1xf32> to vector<8x16xf32>
    %292 = arith.mulf %287, %291 : vector<8x16xf32>
    %293 = vector.extract_strided_slice %3 {offsets = [0, 80], sizes = [8, 16], strides = [1, 1]} : vector<8x128xf32> to vector<8x16xf32>
    %294 = arith.mulf %292, %293 : vector<8x16xf32>
    %295 = tpu.concatenate %294, %271 in 1 : vector<8x16xf32>, vector<8x32xf32> -> vector<8x48xf32>
    %c0_103 = arith.constant 0 : index
    %c0_104 = arith.constant 0 : index
    %296 = vector.load %arg5[%c0_103, %c0_104] : memref<48x128xf32, #tpu.memory_space<vmem>>, vector<48x128xf32>
    %cst_105 = arith.constant dense<0.000000e+00> : vector<8x128xf32>
    %297 = tpu.matmul %295, %296, %cst_105 {dimension_numbers = #tpu.dot_dimension_numbers<[1], [0], [0], [1], [0, 0, 1, 1], [], []>} : vector<8x48xf32>, vector<48x128xf32>, vector<8x128xf32> -> vector<8x128xf32>
    %298 = arith.addf %297, %11 : vector<8x128xf32>
    %299 = vector.extract_strided_slice %298 {offsets = [0, 0], sizes = [8, 32], strides = [1, 1]} : vector<8x128xf32> to vector<8x32xf32>
    %300 = arith.negf %299 : vector<8x32xf32>
    %301 = math.exp %300 : vector<8x32xf32>
    %cst_106 = arith.constant 1.000000e+00 : f32
    %302 = vector.broadcast %cst_106 : f32 to vector<8x32xf32>
    %303 = arith.addf %302, %301 : vector<8x32xf32>
    %304 = arith.divf %302, %303 : vector<8x32xf32>
    %305 = vector.extract_strided_slice %298 {offsets = [0, 32], sizes = [8, 32], strides = [1, 1]} : vector<8x128xf32> to vector<8x32xf32>
    %306 = arith.negf %305 : vector<8x32xf32>
    %307 = math.exp %306 : vector<8x32xf32>
    %cst_107 = arith.constant 1.000000e+00 : f32
    %308 = vector.broadcast %cst_107 : f32 to vector<8x32xf32>
    %309 = arith.addf %308, %307 : vector<8x32xf32>
    %310 = arith.divf %308, %309 : vector<8x32xf32>
    %311 = vector.extract_strided_slice %298 {offsets = [0, 64], sizes = [8, 32], strides = [1, 1]} : vector<8x128xf32> to vector<8x32xf32>
    %312 = math.tanh %311 : vector<8x32xf32>
    %313 = vector.extract_strided_slice %298 {offsets = [0, 96], sizes = [8, 32], strides = [1, 1]} : vector<8x128xf32> to vector<8x32xf32>
    %314 = arith.negf %313 : vector<8x32xf32>
    %315 = math.exp %314 : vector<8x32xf32>
    %cst_108 = arith.constant 1.000000e+00 : f32
    %316 = vector.broadcast %cst_108 : f32 to vector<8x32xf32>
    %317 = arith.addf %316, %315 : vector<8x32xf32>
    %318 = arith.divf %316, %317 : vector<8x32xf32>
    %319 = arith.mulf %310, %269 : vector<8x32xf32>
    %320 = arith.mulf %304, %312 : vector<8x32xf32>
    %321 = arith.addf %319, %320 : vector<8x32xf32>
    %322 = math.tanh %321 : vector<8x32xf32>
    %323 = arith.mulf %318, %322 : vector<8x32xf32>
    %c0_109 = arith.constant 0 : index
    %c0_110 = arith.constant 0 : index
    %324 = vector.load %arg6[%c0_109, %c0_110] : memref<32x32xf32, #tpu.memory_space<vmem>>, vector<32x32xf32>
    %cst_111 = arith.constant dense<0.000000e+00> : vector<8x32xf32>
    %325 = tpu.matmul %323, %324, %cst_111 {dimension_numbers = #tpu.dot_dimension_numbers<[1], [0], [0], [1], [0, 0, 1, 1], [], []>} : vector<8x32xf32>, vector<32x32xf32>, vector<8x32xf32> -> vector<8x32xf32>
    %326 = tpu.concatenate %323, %321 in 1 : vector<8x32xf32>, vector<8x32xf32> -> vector<8x64xf32>
    %c0_112 = arith.constant 0 : index
    %c0_113 = arith.constant 0 : index
    %327 = vector.load %arg3[%c0_112, %c0_113] : memref<64x128xf32, #tpu.memory_space<vmem>>, vector<64x128xf32>
    %cst_114 = arith.constant dense<0.000000e+00> : vector<8x128xf32>
    %328 = tpu.matmul %326, %327, %cst_114 {dimension_numbers = #tpu.dot_dimension_numbers<[1], [0], [0], [1], [0, 0, 1, 1], [], []>} : vector<8x64xf32>, vector<64x128xf32>, vector<8x128xf32> -> vector<8x128xf32>
    %329 = arith.addf %328, %8 : vector<8x128xf32>
    %330 = math.tanh %329 : vector<8x128xf32>
    %c0_115 = arith.constant 0 : index
    %c0_116 = arith.constant 0 : index
    %331 = vector.load %arg4[%c0_115, %c0_116] : memref<128x16xf32, #tpu.memory_space<vmem>>, vector<128x16xf32>
    %cst_117 = arith.constant dense<0.000000e+00> : vector<8x16xf32>
    %332 = tpu.matmul %330, %331, %cst_117 {dimension_numbers = #tpu.dot_dimension_numbers<[1], [0], [0], [1], [0, 0, 1, 1], [], []>} : vector<8x128xf32>, vector<128x16xf32>, vector<8x16xf32> -> vector<8x16xf32>
    %333 = vector.broadcast %0 : f32 to vector<8x16xf32>
    %334 = arith.addf %332, %333 : vector<8x16xf32>
    %cst_118 = arith.constant dense<0xFF800000> : vector<8xf32>
    %335 = vector.multi_reduction <maximumf>, %334, %cst_118 [1] : vector<8x16xf32> to vector<8xf32>
    %336 = vector.shape_cast %335 : vector<8xf32> to vector<8x1xf32>
    %337 = vector.broadcast %336 : vector<8x1xf32> to vector<8x16xf32>
    %338 = arith.subf %334, %337 : vector<8x16xf32>
    %339 = math.exp %338 : vector<8x16xf32>
    %cst_119 = arith.constant dense<0.000000e+00> : vector<8xf32>
    %340 = vector.multi_reduction <add>, %339, %cst_119 [1] : vector<8x16xf32> to vector<8xf32>
    %341 = vector.shape_cast %340 : vector<8xf32> to vector<8x1xf32>
    %342 = tpu.reciprocal %341 {approx = true} : vector<8x1xf32> -> vector<8x1xf32>
    %343 = vector.broadcast %342 : vector<8x1xf32> to vector<8x16xf32>
    %344 = arith.mulf %339, %343 : vector<8x16xf32>
    %345 = vector.extract_strided_slice %3 {offsets = [0, 96], sizes = [8, 16], strides = [1, 1]} : vector<8x128xf32> to vector<8x16xf32>
    %346 = arith.mulf %344, %345 : vector<8x16xf32>
    %347 = tpu.concatenate %346, %323 in 1 : vector<8x16xf32>, vector<8x32xf32> -> vector<8x48xf32>
    %c0_120 = arith.constant 0 : index
    %c0_121 = arith.constant 0 : index
    %348 = vector.load %arg5[%c0_120, %c0_121] : memref<48x128xf32, #tpu.memory_space<vmem>>, vector<48x128xf32>
    %cst_122 = arith.constant dense<0.000000e+00> : vector<8x128xf32>
    %349 = tpu.matmul %347, %348, %cst_122 {dimension_numbers = #tpu.dot_dimension_numbers<[1], [0], [0], [1], [0, 0, 1, 1], [], []>} : vector<8x48xf32>, vector<48x128xf32>, vector<8x128xf32> -> vector<8x128xf32>
    %350 = arith.addf %349, %11 : vector<8x128xf32>
    %351 = vector.extract_strided_slice %350 {offsets = [0, 0], sizes = [8, 32], strides = [1, 1]} : vector<8x128xf32> to vector<8x32xf32>
    %352 = arith.negf %351 : vector<8x32xf32>
    %353 = math.exp %352 : vector<8x32xf32>
    %cst_123 = arith.constant 1.000000e+00 : f32
    %354 = vector.broadcast %cst_123 : f32 to vector<8x32xf32>
    %355 = arith.addf %354, %353 : vector<8x32xf32>
    %356 = arith.divf %354, %355 : vector<8x32xf32>
    %357 = vector.extract_strided_slice %350 {offsets = [0, 32], sizes = [8, 32], strides = [1, 1]} : vector<8x128xf32> to vector<8x32xf32>
    %358 = arith.negf %357 : vector<8x32xf32>
    %359 = math.exp %358 : vector<8x32xf32>
    %cst_124 = arith.constant 1.000000e+00 : f32
    %360 = vector.broadcast %cst_124 : f32 to vector<8x32xf32>
    %361 = arith.addf %360, %359 : vector<8x32xf32>
    %362 = arith.divf %360, %361 : vector<8x32xf32>
    %363 = vector.extract_strided_slice %350 {offsets = [0, 64], sizes = [8, 32], strides = [1, 1]} : vector<8x128xf32> to vector<8x32xf32>
    %364 = math.tanh %363 : vector<8x32xf32>
    %365 = vector.extract_strided_slice %350 {offsets = [0, 96], sizes = [8, 32], strides = [1, 1]} : vector<8x128xf32> to vector<8x32xf32>
    %366 = arith.negf %365 : vector<8x32xf32>
    %367 = math.exp %366 : vector<8x32xf32>
    %cst_125 = arith.constant 1.000000e+00 : f32
    %368 = vector.broadcast %cst_125 : f32 to vector<8x32xf32>
    %369 = arith.addf %368, %367 : vector<8x32xf32>
    %370 = arith.divf %368, %369 : vector<8x32xf32>
    %371 = arith.mulf %362, %321 : vector<8x32xf32>
    %372 = arith.mulf %356, %364 : vector<8x32xf32>
    %373 = arith.addf %371, %372 : vector<8x32xf32>
    %374 = math.tanh %373 : vector<8x32xf32>
    %375 = arith.mulf %370, %374 : vector<8x32xf32>
    %c0_126 = arith.constant 0 : index
    %c0_127 = arith.constant 0 : index
    %376 = vector.load %arg6[%c0_126, %c0_127] : memref<32x32xf32, #tpu.memory_space<vmem>>, vector<32x32xf32>
    %cst_128 = arith.constant dense<0.000000e+00> : vector<8x32xf32>
    %377 = tpu.matmul %375, %376, %cst_128 {dimension_numbers = #tpu.dot_dimension_numbers<[1], [0], [0], [1], [0, 0, 1, 1], [], []>} : vector<8x32xf32>, vector<32x32xf32>, vector<8x32xf32> -> vector<8x32xf32>
    %378 = tpu.concatenate %375, %373 in 1 : vector<8x32xf32>, vector<8x32xf32> -> vector<8x64xf32>
    %c0_129 = arith.constant 0 : index
    %c0_130 = arith.constant 0 : index
    %379 = vector.load %arg3[%c0_129, %c0_130] : memref<64x128xf32, #tpu.memory_space<vmem>>, vector<64x128xf32>
    %cst_131 = arith.constant dense<0.000000e+00> : vector<8x128xf32>
    %380 = tpu.matmul %378, %379, %cst_131 {dimension_numbers = #tpu.dot_dimension_numbers<[1], [0], [0], [1], [0, 0, 1, 1], [], []>} : vector<8x64xf32>, vector<64x128xf32>, vector<8x128xf32> -> vector<8x128xf32>
    %381 = arith.addf %380, %8 : vector<8x128xf32>
    %382 = math.tanh %381 : vector<8x128xf32>
    %c0_132 = arith.constant 0 : index
    %c0_133 = arith.constant 0 : index
    %383 = vector.load %arg4[%c0_132, %c0_133] : memref<128x16xf32, #tpu.memory_space<vmem>>, vector<128x16xf32>
    %cst_134 = arith.constant dense<0.000000e+00> : vector<8x16xf32>
    %384 = tpu.matmul %382, %383, %cst_134 {dimension_numbers = #tpu.dot_dimension_numbers<[1], [0], [0], [1], [0, 0, 1, 1], [], []>} : vector<8x128xf32>, vector<128x16xf32>, vector<8x16xf32> -> vector<8x16xf32>
    %385 = vector.broadcast %0 : f32 to vector<8x16xf32>
    %386 = arith.addf %384, %385 : vector<8x16xf32>
    %cst_135 = arith.constant dense<0xFF800000> : vector<8xf32>
    %387 = vector.multi_reduction <maximumf>, %386, %cst_135 [1] : vector<8x16xf32> to vector<8xf32>
    %388 = vector.shape_cast %387 : vector<8xf32> to vector<8x1xf32>
    %389 = vector.broadcast %388 : vector<8x1xf32> to vector<8x16xf32>
    %390 = arith.subf %386, %389 : vector<8x16xf32>
    %391 = math.exp %390 : vector<8x16xf32>
    %cst_136 = arith.constant dense<0.000000e+00> : vector<8xf32>
    %392 = vector.multi_reduction <add>, %391, %cst_136 [1] : vector<8x16xf32> to vector<8xf32>
    %393 = vector.shape_cast %392 : vector<8xf32> to vector<8x1xf32>
    %394 = tpu.reciprocal %393 {approx = true} : vector<8x1xf32> -> vector<8x1xf32>
    %395 = vector.broadcast %394 : vector<8x1xf32> to vector<8x16xf32>
    %396 = arith.mulf %391, %395 : vector<8x16xf32>
    %397 = vector.extract_strided_slice %3 {offsets = [0, 112], sizes = [8, 16], strides = [1, 1]} : vector<8x128xf32> to vector<8x16xf32>
    %398 = arith.mulf %396, %397 : vector<8x16xf32>
    %399 = tpu.concatenate %398, %375 in 1 : vector<8x16xf32>, vector<8x32xf32> -> vector<8x48xf32>
    %c0_137 = arith.constant 0 : index
    %c0_138 = arith.constant 0 : index
    %400 = vector.load %arg5[%c0_137, %c0_138] : memref<48x128xf32, #tpu.memory_space<vmem>>, vector<48x128xf32>
    %cst_139 = arith.constant dense<0.000000e+00> : vector<8x128xf32>
    %401 = tpu.matmul %399, %400, %cst_139 {dimension_numbers = #tpu.dot_dimension_numbers<[1], [0], [0], [1], [0, 0, 1, 1], [], []>} : vector<8x48xf32>, vector<48x128xf32>, vector<8x128xf32> -> vector<8x128xf32>
    %402 = arith.addf %401, %11 : vector<8x128xf32>
    %403 = vector.extract_strided_slice %402 {offsets = [0, 0], sizes = [8, 32], strides = [1, 1]} : vector<8x128xf32> to vector<8x32xf32>
    %404 = arith.negf %403 : vector<8x32xf32>
    %405 = math.exp %404 : vector<8x32xf32>
    %cst_140 = arith.constant 1.000000e+00 : f32
    %406 = vector.broadcast %cst_140 : f32 to vector<8x32xf32>
    %407 = arith.addf %406, %405 : vector<8x32xf32>
    %408 = arith.divf %406, %407 : vector<8x32xf32>
    %409 = vector.extract_strided_slice %402 {offsets = [0, 32], sizes = [8, 32], strides = [1, 1]} : vector<8x128xf32> to vector<8x32xf32>
    %410 = arith.negf %409 : vector<8x32xf32>
    %411 = math.exp %410 : vector<8x32xf32>
    %cst_141 = arith.constant 1.000000e+00 : f32
    %412 = vector.broadcast %cst_141 : f32 to vector<8x32xf32>
    %413 = arith.addf %412, %411 : vector<8x32xf32>
    %414 = arith.divf %412, %413 : vector<8x32xf32>
    %415 = vector.extract_strided_slice %402 {offsets = [0, 64], sizes = [8, 32], strides = [1, 1]} : vector<8x128xf32> to vector<8x32xf32>
    %416 = math.tanh %415 : vector<8x32xf32>
    %417 = vector.extract_strided_slice %402 {offsets = [0, 96], sizes = [8, 32], strides = [1, 1]} : vector<8x128xf32> to vector<8x32xf32>
    %418 = arith.negf %417 : vector<8x32xf32>
    %419 = math.exp %418 : vector<8x32xf32>
    %cst_142 = arith.constant 1.000000e+00 : f32
    %420 = vector.broadcast %cst_142 : f32 to vector<8x32xf32>
    %421 = arith.addf %420, %419 : vector<8x32xf32>
    %422 = arith.divf %420, %421 : vector<8x32xf32>
    %423 = arith.mulf %414, %373 : vector<8x32xf32>
    %424 = arith.mulf %408, %416 : vector<8x32xf32>
    %425 = arith.addf %423, %424 : vector<8x32xf32>
    %426 = math.tanh %425 : vector<8x32xf32>
    %427 = arith.mulf %422, %426 : vector<8x32xf32>
    %c0_143 = arith.constant 0 : index
    %c0_144 = arith.constant 0 : index
    %428 = vector.load %arg6[%c0_143, %c0_144] : memref<32x32xf32, #tpu.memory_space<vmem>>, vector<32x32xf32>
    %cst_145 = arith.constant dense<0.000000e+00> : vector<8x32xf32>
    %429 = tpu.matmul %427, %428, %cst_145 {dimension_numbers = #tpu.dot_dimension_numbers<[1], [0], [0], [1], [0, 0, 1, 1], [], []>} : vector<8x32xf32>, vector<32x32xf32>, vector<8x32xf32> -> vector<8x32xf32>
    %430 = tpu.concatenate %63, %115, %167, %219, %271, %323, %375, %427 in 1 : vector<8x32xf32>, vector<8x32xf32>, vector<8x32xf32>, vector<8x32xf32>, vector<8x32xf32>, vector<8x32xf32>, vector<8x32xf32>, vector<8x32xf32> -> vector<8x256xf32>
    %431 = tpu.concatenate %65, %117, %169, %221, %273, %325, %377, %429 in 1 : vector<8x32xf32>, vector<8x32xf32>, vector<8x32xf32>, vector<8x32xf32>, vector<8x32xf32>, vector<8x32xf32>, vector<8x32xf32>, vector<8x32xf32> -> vector<8x256xf32>
    %c2_146 = arith.constant 2 : index
    %c0_147 = arith.constant 0 : index
    %432 = vector.load %arg12[%c2_146, %c0_147] : memref<8x256xf32, #tpu.memory_space<vmem>>, vector<1x256xf32>
    %433 = vector.broadcast %432 : vector<1x256xf32> to vector<8x256xf32>
    %434 = arith.addf %431, %433 : vector<8x256xf32>
    %c0_148 = arith.constant 0 : index
    %c0_149 = arith.constant 0 : index
    %435 = vector.load %arg1[%c0_148, %c0_149] : memref<8x7xf32, #tpu.memory_space<vmem>>, vector<8x7xf32>
    %c3 = arith.constant 3 : index
    %c0_150 = arith.constant 0 : index
    %436 = vector.load %arg12[%c3, %c0_150] : memref<8x256xf32, #tpu.memory_space<vmem>>, vector<1x128xf32>
    %437 = vector.shape_cast %436 : vector<1x128xf32> to vector<1x128xf32>
    %438 = vector.broadcast %437 : vector<1x128xf32> to vector<8x128xf32>
    %cst_151 = arith.constant 0.000000e+00 : f32
    %439 = vector.broadcast %cst_151 : f32 to vector<8x32xf32>
    %cst_152 = arith.constant 0.000000e+00 : f32
    %440 = vector.broadcast %cst_152 : f32 to vector<8x32xf32>
    %441 = tpu.concatenate %439, %440 in 1 : vector<8x32xf32>, vector<8x32xf32> -> vector<8x64xf32>
    %c0_153 = arith.constant 0 : index
    %c0_154 = arith.constant 0 : index
    %442 = vector.load %arg7[%c0_153, %c0_154] : memref<64x256xf32, #tpu.memory_space<vmem>>, vector<64x256xf32>
    %cst_155 = arith.constant dense<0.000000e+00> : vector<8x256xf32>
    %443 = tpu.matmul %441, %442, %cst_155 {dimension_numbers = #tpu.dot_dimension_numbers<[1], [0], [0], [1], [0, 0, 1, 1], [], []>} : vector<8x64xf32>, vector<64x256xf32>, vector<8x256xf32> -> vector<8x256xf32>
    %444 = arith.addf %434, %443 : vector<8x256xf32>
    %445 = math.tanh %444 : vector<8x256xf32>
    %c0_156 = arith.constant 0 : index
    %c0_157 = arith.constant 0 : index
    %446 = vector.load %arg8[%c0_156, %c0_157] : memref<256x8xf32, #tpu.memory_space<vmem>>, vector<256x8xf32>
    %cst_158 = arith.constant dense<0.000000e+00> : vector<8x8xf32>
    %447 = tpu.matmul %445, %446, %cst_158 {dimension_numbers = #tpu.dot_dimension_numbers<[1], [0], [0], [1], [0, 0, 1, 1], [], []>} : vector<8x256xf32>, vector<256x8xf32>, vector<8x8xf32> -> vector<8x8xf32>
    %448 = vector.broadcast %1 : f32 to vector<8x8xf32>
    %449 = arith.addf %447, %448 : vector<8x8xf32>
    %cst_159 = arith.constant dense<0xFF800000> : vector<8xf32>
    %450 = vector.multi_reduction <maximumf>, %449, %cst_159 [1] : vector<8x8xf32> to vector<8xf32>
    %451 = vector.shape_cast %450 : vector<8xf32> to vector<8x1xf32>
    %452 = vector.broadcast %451 : vector<8x1xf32> to vector<8x8xf32>
    %453 = arith.subf %449, %452 : vector<8x8xf32>
    %454 = math.exp %453 : vector<8x8xf32>
    %cst_160 = arith.constant dense<0.000000e+00> : vector<8xf32>
    %455 = vector.multi_reduction <add>, %454, %cst_160 [1] : vector<8x8xf32> to vector<8xf32>
    %456 = vector.shape_cast %455 : vector<8xf32> to vector<8x1xf32>
    %457 = tpu.reciprocal %456 {approx = true} : vector<8x1xf32> -> vector<8x1xf32>
    %458 = vector.broadcast %457 : vector<8x1xf32> to vector<8x8xf32>
    %459 = arith.mulf %454, %458 : vector<8x8xf32>
    %c0_161 = arith.constant 0 : index
    %c0_162 = arith.constant 0 : index
    %460 = vector.load %arg9[%c0_161, %c0_162] : memref<8x256xf32, #tpu.memory_space<vmem>>, vector<8x256xf32>
    %cst_163 = arith.constant dense<0.000000e+00> : vector<8x256xf32>
    %461 = tpu.matmul %459, %460, %cst_163 {dimension_numbers = #tpu.dot_dimension_numbers<[1], [0], [0], [1], [0, 0, 1, 1], [], []>} : vector<8x8xf32>, vector<8x256xf32>, vector<8x256xf32> -> vector<8x256xf32>
    %462 = arith.mulf %461, %430 : vector<8x256xf32>
    %c0_164 = arith.constant 0 : index
    %c0_165 = arith.constant 0 : index
    %463 = vector.load %arg10[%c0_164, %c0_165] : memref<256x32xf32, #tpu.memory_space<vmem>>, vector<256x32xf32>
    %cst_166 = arith.constant dense<0.000000e+00> : vector<8x32xf32>
    %464 = tpu.matmul %462, %463, %cst_166 {dimension_numbers = #tpu.dot_dimension_numbers<[1], [0], [0], [1], [0, 0, 1, 1], [], []>} : vector<8x256xf32>, vector<256x32xf32>, vector<8x32xf32> -> vector<8x32xf32>
    %465 = tpu.concatenate %464, %439 in 1 : vector<8x32xf32>, vector<8x32xf32> -> vector<8x64xf32>
    %c0_167 = arith.constant 0 : index
    %c0_168 = arith.constant 0 : index
    %466 = vector.load %arg11[%c0_167, %c0_168] : memref<64x128xf32, #tpu.memory_space<vmem>>, vector<64x128xf32>
    %cst_169 = arith.constant dense<0.000000e+00> : vector<8x128xf32>
    %467 = tpu.matmul %465, %466, %cst_169 {dimension_numbers = #tpu.dot_dimension_numbers<[1], [0], [0], [1], [0, 0, 1, 1], [], []>} : vector<8x64xf32>, vector<64x128xf32>, vector<8x128xf32> -> vector<8x128xf32>
    %468 = vector.extract_strided_slice %435 {offsets = [0, 0], sizes = [8, 1], strides = [1, 1]} : vector<8x7xf32> to vector<8x1xf32>
    %c4 = arith.constant 4 : index
    %c0_170 = arith.constant 0 : index
    %469 = vector.load %arg12[%c4, %c0_170] : memref<8x256xf32, #tpu.memory_space<vmem>>, vector<1x128xf32>
    %470 = vector.broadcast %468 : vector<8x1xf32> to vector<8x128xf32>
    %471 = vector.broadcast %469 : vector<1x128xf32> to vector<8x128xf32>
    %472 = arith.mulf %470, %471 : vector<8x128xf32>
    %473 = arith.addf %467, %472 : vector<8x128xf32>
    %474 = arith.addf %473, %438 : vector<8x128xf32>
    %475 = vector.extract_strided_slice %474 {offsets = [0, 0], sizes = [8, 32], strides = [1, 1]} : vector<8x128xf32> to vector<8x32xf32>
    %476 = arith.negf %475 : vector<8x32xf32>
    %477 = math.exp %476 : vector<8x32xf32>
    %cst_171 = arith.constant 1.000000e+00 : f32
    %478 = vector.broadcast %cst_171 : f32 to vector<8x32xf32>
    %479 = arith.addf %478, %477 : vector<8x32xf32>
    %480 = arith.divf %478, %479 : vector<8x32xf32>
    %481 = vector.extract_strided_slice %474 {offsets = [0, 32], sizes = [8, 32], strides = [1, 1]} : vector<8x128xf32> to vector<8x32xf32>
    %482 = arith.negf %481 : vector<8x32xf32>
    %483 = math.exp %482 : vector<8x32xf32>
    %cst_172 = arith.constant 1.000000e+00 : f32
    %484 = vector.broadcast %cst_172 : f32 to vector<8x32xf32>
    %485 = arith.addf %484, %483 : vector<8x32xf32>
    %486 = arith.divf %484, %485 : vector<8x32xf32>
    %487 = vector.extract_strided_slice %474 {offsets = [0, 64], sizes = [8, 32], strides = [1, 1]} : vector<8x128xf32> to vector<8x32xf32>
    %488 = math.tanh %487 : vector<8x32xf32>
    %489 = vector.extract_strided_slice %474 {offsets = [0, 96], sizes = [8, 32], strides = [1, 1]} : vector<8x128xf32> to vector<8x32xf32>
    %490 = arith.negf %489 : vector<8x32xf32>
    %491 = math.exp %490 : vector<8x32xf32>
    %cst_173 = arith.constant 1.000000e+00 : f32
    %492 = vector.broadcast %cst_173 : f32 to vector<8x32xf32>
    %493 = arith.addf %492, %491 : vector<8x32xf32>
    %494 = arith.divf %492, %493 : vector<8x32xf32>
    %495 = arith.mulf %486, %440 : vector<8x32xf32>
    %496 = arith.mulf %480, %488 : vector<8x32xf32>
    %497 = arith.addf %495, %496 : vector<8x32xf32>
    %498 = math.tanh %497 : vector<8x32xf32>
    %499 = arith.mulf %494, %498 : vector<8x32xf32>
    %500 = tpu.concatenate %499, %497 in 1 : vector<8x32xf32>, vector<8x32xf32> -> vector<8x64xf32>
    %c0_174 = arith.constant 0 : index
    %c0_175 = arith.constant 0 : index
    %501 = vector.load %arg7[%c0_174, %c0_175] : memref<64x256xf32, #tpu.memory_space<vmem>>, vector<64x256xf32>
    %cst_176 = arith.constant dense<0.000000e+00> : vector<8x256xf32>
    %502 = tpu.matmul %500, %501, %cst_176 {dimension_numbers = #tpu.dot_dimension_numbers<[1], [0], [0], [1], [0, 0, 1, 1], [], []>} : vector<8x64xf32>, vector<64x256xf32>, vector<8x256xf32> -> vector<8x256xf32>
    %503 = arith.addf %434, %502 : vector<8x256xf32>
    %504 = math.tanh %503 : vector<8x256xf32>
    %c0_177 = arith.constant 0 : index
    %c0_178 = arith.constant 0 : index
    %505 = vector.load %arg8[%c0_177, %c0_178] : memref<256x8xf32, #tpu.memory_space<vmem>>, vector<256x8xf32>
    %cst_179 = arith.constant dense<0.000000e+00> : vector<8x8xf32>
    %506 = tpu.matmul %504, %505, %cst_179 {dimension_numbers = #tpu.dot_dimension_numbers<[1], [0], [0], [1], [0, 0, 1, 1], [], []>} : vector<8x256xf32>, vector<256x8xf32>, vector<8x8xf32> -> vector<8x8xf32>
    %507 = vector.broadcast %1 : f32 to vector<8x8xf32>
    %508 = arith.addf %506, %507 : vector<8x8xf32>
    %cst_180 = arith.constant dense<0xFF800000> : vector<8xf32>
    %509 = vector.multi_reduction <maximumf>, %508, %cst_180 [1] : vector<8x8xf32> to vector<8xf32>
    %510 = vector.shape_cast %509 : vector<8xf32> to vector<8x1xf32>
    %511 = vector.broadcast %510 : vector<8x1xf32> to vector<8x8xf32>
    %512 = arith.subf %508, %511 : vector<8x8xf32>
    %513 = math.exp %512 : vector<8x8xf32>
    %cst_181 = arith.constant dense<0.000000e+00> : vector<8xf32>
    %514 = vector.multi_reduction <add>, %513, %cst_181 [1] : vector<8x8xf32> to vector<8xf32>
    %515 = vector.shape_cast %514 : vector<8xf32> to vector<8x1xf32>
    %516 = tpu.reciprocal %515 {approx = true} : vector<8x1xf32> -> vector<8x1xf32>
    %517 = vector.broadcast %516 : vector<8x1xf32> to vector<8x8xf32>
    %518 = arith.mulf %513, %517 : vector<8x8xf32>
    %c0_182 = arith.constant 0 : index
    %c0_183 = arith.constant 0 : index
    %519 = vector.load %arg9[%c0_182, %c0_183] : memref<8x256xf32, #tpu.memory_space<vmem>>, vector<8x256xf32>
    %cst_184 = arith.constant dense<0.000000e+00> : vector<8x256xf32>
    %520 = tpu.matmul %518, %519, %cst_184 {dimension_numbers = #tpu.dot_dimension_numbers<[1], [0], [0], [1], [0, 0, 1, 1], [], []>} : vector<8x8xf32>, vector<8x256xf32>, vector<8x256xf32> -> vector<8x256xf32>
    %521 = arith.mulf %520, %430 : vector<8x256xf32>
    %c0_185 = arith.constant 0 : index
    %c0_186 = arith.constant 0 : index
    %522 = vector.load %arg10[%c0_185, %c0_186] : memref<256x32xf32, #tpu.memory_space<vmem>>, vector<256x32xf32>
    %cst_187 = arith.constant dense<0.000000e+00> : vector<8x32xf32>
    %523 = tpu.matmul %521, %522, %cst_187 {dimension_numbers = #tpu.dot_dimension_numbers<[1], [0], [0], [1], [0, 0, 1, 1], [], []>} : vector<8x256xf32>, vector<256x32xf32>, vector<8x32xf32> -> vector<8x32xf32>
    %524 = tpu.concatenate %523, %499 in 1 : vector<8x32xf32>, vector<8x32xf32> -> vector<8x64xf32>
    %c0_188 = arith.constant 0 : index
    %c0_189 = arith.constant 0 : index
    %525 = vector.load %arg11[%c0_188, %c0_189] : memref<64x128xf32, #tpu.memory_space<vmem>>, vector<64x128xf32>
    %cst_190 = arith.constant dense<0.000000e+00> : vector<8x128xf32>
    %526 = tpu.matmul %524, %525, %cst_190 {dimension_numbers = #tpu.dot_dimension_numbers<[1], [0], [0], [1], [0, 0, 1, 1], [], []>} : vector<8x64xf32>, vector<64x128xf32>, vector<8x128xf32> -> vector<8x128xf32>
    %527 = vector.extract_strided_slice %435 {offsets = [0, 1], sizes = [8, 1], strides = [1, 1]} : vector<8x7xf32> to vector<8x1xf32>
    %c4_191 = arith.constant 4 : index
    %c0_192 = arith.constant 0 : index
    %528 = vector.load %arg12[%c4_191, %c0_192] : memref<8x256xf32, #tpu.memory_space<vmem>>, vector<1x128xf32>
    %529 = vector.broadcast %527 : vector<8x1xf32> to vector<8x128xf32>
    %530 = vector.broadcast %528 : vector<1x128xf32> to vector<8x128xf32>
    %531 = arith.mulf %529, %530 : vector<8x128xf32>
    %532 = arith.addf %526, %531 : vector<8x128xf32>
    %533 = arith.addf %532, %438 : vector<8x128xf32>
    %534 = vector.extract_strided_slice %533 {offsets = [0, 0], sizes = [8, 32], strides = [1, 1]} : vector<8x128xf32> to vector<8x32xf32>
    %535 = arith.negf %534 : vector<8x32xf32>
    %536 = math.exp %535 : vector<8x32xf32>
    %cst_193 = arith.constant 1.000000e+00 : f32
    %537 = vector.broadcast %cst_193 : f32 to vector<8x32xf32>
    %538 = arith.addf %537, %536 : vector<8x32xf32>
    %539 = arith.divf %537, %538 : vector<8x32xf32>
    %540 = vector.extract_strided_slice %533 {offsets = [0, 32], sizes = [8, 32], strides = [1, 1]} : vector<8x128xf32> to vector<8x32xf32>
    %541 = arith.negf %540 : vector<8x32xf32>
    %542 = math.exp %541 : vector<8x32xf32>
    %cst_194 = arith.constant 1.000000e+00 : f32
    %543 = vector.broadcast %cst_194 : f32 to vector<8x32xf32>
    %544 = arith.addf %543, %542 : vector<8x32xf32>
    %545 = arith.divf %543, %544 : vector<8x32xf32>
    %546 = vector.extract_strided_slice %533 {offsets = [0, 64], sizes = [8, 32], strides = [1, 1]} : vector<8x128xf32> to vector<8x32xf32>
    %547 = math.tanh %546 : vector<8x32xf32>
    %548 = vector.extract_strided_slice %533 {offsets = [0, 96], sizes = [8, 32], strides = [1, 1]} : vector<8x128xf32> to vector<8x32xf32>
    %549 = arith.negf %548 : vector<8x32xf32>
    %550 = math.exp %549 : vector<8x32xf32>
    %cst_195 = arith.constant 1.000000e+00 : f32
    %551 = vector.broadcast %cst_195 : f32 to vector<8x32xf32>
    %552 = arith.addf %551, %550 : vector<8x32xf32>
    %553 = arith.divf %551, %552 : vector<8x32xf32>
    %554 = arith.mulf %545, %497 : vector<8x32xf32>
    %555 = arith.mulf %539, %547 : vector<8x32xf32>
    %556 = arith.addf %554, %555 : vector<8x32xf32>
    %557 = math.tanh %556 : vector<8x32xf32>
    %558 = arith.mulf %553, %557 : vector<8x32xf32>
    %559 = tpu.concatenate %558, %556 in 1 : vector<8x32xf32>, vector<8x32xf32> -> vector<8x64xf32>
    %c0_196 = arith.constant 0 : index
    %c0_197 = arith.constant 0 : index
    %560 = vector.load %arg7[%c0_196, %c0_197] : memref<64x256xf32, #tpu.memory_space<vmem>>, vector<64x256xf32>
    %cst_198 = arith.constant dense<0.000000e+00> : vector<8x256xf32>
    %561 = tpu.matmul %559, %560, %cst_198 {dimension_numbers = #tpu.dot_dimension_numbers<[1], [0], [0], [1], [0, 0, 1, 1], [], []>} : vector<8x64xf32>, vector<64x256xf32>, vector<8x256xf32> -> vector<8x256xf32>
    %562 = arith.addf %434, %561 : vector<8x256xf32>
    %563 = math.tanh %562 : vector<8x256xf32>
    %c0_199 = arith.constant 0 : index
    %c0_200 = arith.constant 0 : index
    %564 = vector.load %arg8[%c0_199, %c0_200] : memref<256x8xf32, #tpu.memory_space<vmem>>, vector<256x8xf32>
    %cst_201 = arith.constant dense<0.000000e+00> : vector<8x8xf32>
    %565 = tpu.matmul %563, %564, %cst_201 {dimension_numbers = #tpu.dot_dimension_numbers<[1], [0], [0], [1], [0, 0, 1, 1], [], []>} : vector<8x256xf32>, vector<256x8xf32>, vector<8x8xf32> -> vector<8x8xf32>
    %566 = vector.broadcast %1 : f32 to vector<8x8xf32>
    %567 = arith.addf %565, %566 : vector<8x8xf32>
    %cst_202 = arith.constant dense<0xFF800000> : vector<8xf32>
    %568 = vector.multi_reduction <maximumf>, %567, %cst_202 [1] : vector<8x8xf32> to vector<8xf32>
    %569 = vector.shape_cast %568 : vector<8xf32> to vector<8x1xf32>
    %570 = vector.broadcast %569 : vector<8x1xf32> to vector<8x8xf32>
    %571 = arith.subf %567, %570 : vector<8x8xf32>
    %572 = math.exp %571 : vector<8x8xf32>
    %cst_203 = arith.constant dense<0.000000e+00> : vector<8xf32>
    %573 = vector.multi_reduction <add>, %572, %cst_203 [1] : vector<8x8xf32> to vector<8xf32>
    %574 = vector.shape_cast %573 : vector<8xf32> to vector<8x1xf32>
    %575 = tpu.reciprocal %574 {approx = true} : vector<8x1xf32> -> vector<8x1xf32>
    %576 = vector.broadcast %575 : vector<8x1xf32> to vector<8x8xf32>
    %577 = arith.mulf %572, %576 : vector<8x8xf32>
    %c0_204 = arith.constant 0 : index
    %c0_205 = arith.constant 0 : index
    %578 = vector.load %arg9[%c0_204, %c0_205] : memref<8x256xf32, #tpu.memory_space<vmem>>, vector<8x256xf32>
    %cst_206 = arith.constant dense<0.000000e+00> : vector<8x256xf32>
    %579 = tpu.matmul %577, %578, %cst_206 {dimension_numbers = #tpu.dot_dimension_numbers<[1], [0], [0], [1], [0, 0, 1, 1], [], []>} : vector<8x8xf32>, vector<8x256xf32>, vector<8x256xf32> -> vector<8x256xf32>
    %580 = arith.mulf %579, %430 : vector<8x256xf32>
    %c0_207 = arith.constant 0 : index
    %c0_208 = arith.constant 0 : index
    %581 = vector.load %arg10[%c0_207, %c0_208] : memref<256x32xf32, #tpu.memory_space<vmem>>, vector<256x32xf32>
    %cst_209 = arith.constant dense<0.000000e+00> : vector<8x32xf32>
    %582 = tpu.matmul %580, %581, %cst_209 {dimension_numbers = #tpu.dot_dimension_numbers<[1], [0], [0], [1], [0, 0, 1, 1], [], []>} : vector<8x256xf32>, vector<256x32xf32>, vector<8x32xf32> -> vector<8x32xf32>
    %583 = tpu.concatenate %582, %558 in 1 : vector<8x32xf32>, vector<8x32xf32> -> vector<8x64xf32>
    %c0_210 = arith.constant 0 : index
    %c0_211 = arith.constant 0 : index
    %584 = vector.load %arg11[%c0_210, %c0_211] : memref<64x128xf32, #tpu.memory_space<vmem>>, vector<64x128xf32>
    %cst_212 = arith.constant dense<0.000000e+00> : vector<8x128xf32>
    %585 = tpu.matmul %583, %584, %cst_212 {dimension_numbers = #tpu.dot_dimension_numbers<[1], [0], [0], [1], [0, 0, 1, 1], [], []>} : vector<8x64xf32>, vector<64x128xf32>, vector<8x128xf32> -> vector<8x128xf32>
    %586 = vector.extract_strided_slice %435 {offsets = [0, 2], sizes = [8, 1], strides = [1, 1]} : vector<8x7xf32> to vector<8x1xf32>
    %c4_213 = arith.constant 4 : index
    %c0_214 = arith.constant 0 : index
    %587 = vector.load %arg12[%c4_213, %c0_214] : memref<8x256xf32, #tpu.memory_space<vmem>>, vector<1x128xf32>
    %588 = vector.broadcast %586 : vector<8x1xf32> to vector<8x128xf32>
    %589 = vector.broadcast %587 : vector<1x128xf32> to vector<8x128xf32>
    %590 = arith.mulf %588, %589 : vector<8x128xf32>
    %591 = arith.addf %585, %590 : vector<8x128xf32>
    %592 = arith.addf %591, %438 : vector<8x128xf32>
    %593 = vector.extract_strided_slice %592 {offsets = [0, 0], sizes = [8, 32], strides = [1, 1]} : vector<8x128xf32> to vector<8x32xf32>
    %594 = arith.negf %593 : vector<8x32xf32>
    %595 = math.exp %594 : vector<8x32xf32>
    %cst_215 = arith.constant 1.000000e+00 : f32
    %596 = vector.broadcast %cst_215 : f32 to vector<8x32xf32>
    %597 = arith.addf %596, %595 : vector<8x32xf32>
    %598 = arith.divf %596, %597 : vector<8x32xf32>
    %599 = vector.extract_strided_slice %592 {offsets = [0, 32], sizes = [8, 32], strides = [1, 1]} : vector<8x128xf32> to vector<8x32xf32>
    %600 = arith.negf %599 : vector<8x32xf32>
    %601 = math.exp %600 : vector<8x32xf32>
    %cst_216 = arith.constant 1.000000e+00 : f32
    %602 = vector.broadcast %cst_216 : f32 to vector<8x32xf32>
    %603 = arith.addf %602, %601 : vector<8x32xf32>
    %604 = arith.divf %602, %603 : vector<8x32xf32>
    %605 = vector.extract_strided_slice %592 {offsets = [0, 64], sizes = [8, 32], strides = [1, 1]} : vector<8x128xf32> to vector<8x32xf32>
    %606 = math.tanh %605 : vector<8x32xf32>
    %607 = vector.extract_strided_slice %592 {offsets = [0, 96], sizes = [8, 32], strides = [1, 1]} : vector<8x128xf32> to vector<8x32xf32>
    %608 = arith.negf %607 : vector<8x32xf32>
    %609 = math.exp %608 : vector<8x32xf32>
    %cst_217 = arith.constant 1.000000e+00 : f32
    %610 = vector.broadcast %cst_217 : f32 to vector<8x32xf32>
    %611 = arith.addf %610, %609 : vector<8x32xf32>
    %612 = arith.divf %610, %611 : vector<8x32xf32>
    %613 = arith.mulf %604, %556 : vector<8x32xf32>
    %614 = arith.mulf %598, %606 : vector<8x32xf32>
    %615 = arith.addf %613, %614 : vector<8x32xf32>
    %616 = math.tanh %615 : vector<8x32xf32>
    %617 = arith.mulf %612, %616 : vector<8x32xf32>
    %618 = tpu.concatenate %617, %615 in 1 : vector<8x32xf32>, vector<8x32xf32> -> vector<8x64xf32>
    %c0_218 = arith.constant 0 : index
    %c0_219 = arith.constant 0 : index
    %619 = vector.load %arg7[%c0_218, %c0_219] : memref<64x256xf32, #tpu.memory_space<vmem>>, vector<64x256xf32>
    %cst_220 = arith.constant dense<0.000000e+00> : vector<8x256xf32>
    %620 = tpu.matmul %618, %619, %cst_220 {dimension_numbers = #tpu.dot_dimension_numbers<[1], [0], [0], [1], [0, 0, 1, 1], [], []>} : vector<8x64xf32>, vector<64x256xf32>, vector<8x256xf32> -> vector<8x256xf32>
    %621 = arith.addf %434, %620 : vector<8x256xf32>
    %622 = math.tanh %621 : vector<8x256xf32>
    %c0_221 = arith.constant 0 : index
    %c0_222 = arith.constant 0 : index
    %623 = vector.load %arg8[%c0_221, %c0_222] : memref<256x8xf32, #tpu.memory_space<vmem>>, vector<256x8xf32>
    %cst_223 = arith.constant dense<0.000000e+00> : vector<8x8xf32>
    %624 = tpu.matmul %622, %623, %cst_223 {dimension_numbers = #tpu.dot_dimension_numbers<[1], [0], [0], [1], [0, 0, 1, 1], [], []>} : vector<8x256xf32>, vector<256x8xf32>, vector<8x8xf32> -> vector<8x8xf32>
    %625 = vector.broadcast %1 : f32 to vector<8x8xf32>
    %626 = arith.addf %624, %625 : vector<8x8xf32>
    %cst_224 = arith.constant dense<0xFF800000> : vector<8xf32>
    %627 = vector.multi_reduction <maximumf>, %626, %cst_224 [1] : vector<8x8xf32> to vector<8xf32>
    %628 = vector.shape_cast %627 : vector<8xf32> to vector<8x1xf32>
    %629 = vector.broadcast %628 : vector<8x1xf32> to vector<8x8xf32>
    %630 = arith.subf %626, %629 : vector<8x8xf32>
    %631 = math.exp %630 : vector<8x8xf32>
    %cst_225 = arith.constant dense<0.000000e+00> : vector<8xf32>
    %632 = vector.multi_reduction <add>, %631, %cst_225 [1] : vector<8x8xf32> to vector<8xf32>
    %633 = vector.shape_cast %632 : vector<8xf32> to vector<8x1xf32>
    %634 = tpu.reciprocal %633 {approx = true} : vector<8x1xf32> -> vector<8x1xf32>
    %635 = vector.broadcast %634 : vector<8x1xf32> to vector<8x8xf32>
    %636 = arith.mulf %631, %635 : vector<8x8xf32>
    %c0_226 = arith.constant 0 : index
    %c0_227 = arith.constant 0 : index
    %637 = vector.load %arg9[%c0_226, %c0_227] : memref<8x256xf32, #tpu.memory_space<vmem>>, vector<8x256xf32>
    %cst_228 = arith.constant dense<0.000000e+00> : vector<8x256xf32>
    %638 = tpu.matmul %636, %637, %cst_228 {dimension_numbers = #tpu.dot_dimension_numbers<[1], [0], [0], [1], [0, 0, 1, 1], [], []>} : vector<8x8xf32>, vector<8x256xf32>, vector<8x256xf32> -> vector<8x256xf32>
    %639 = arith.mulf %638, %430 : vector<8x256xf32>
    %c0_229 = arith.constant 0 : index
    %c0_230 = arith.constant 0 : index
    %640 = vector.load %arg10[%c0_229, %c0_230] : memref<256x32xf32, #tpu.memory_space<vmem>>, vector<256x32xf32>
    %cst_231 = arith.constant dense<0.000000e+00> : vector<8x32xf32>
    %641 = tpu.matmul %639, %640, %cst_231 {dimension_numbers = #tpu.dot_dimension_numbers<[1], [0], [0], [1], [0, 0, 1, 1], [], []>} : vector<8x256xf32>, vector<256x32xf32>, vector<8x32xf32> -> vector<8x32xf32>
    %642 = tpu.concatenate %641, %617 in 1 : vector<8x32xf32>, vector<8x32xf32> -> vector<8x64xf32>
    %c0_232 = arith.constant 0 : index
    %c0_233 = arith.constant 0 : index
    %643 = vector.load %arg11[%c0_232, %c0_233] : memref<64x128xf32, #tpu.memory_space<vmem>>, vector<64x128xf32>
    %cst_234 = arith.constant dense<0.000000e+00> : vector<8x128xf32>
    %644 = tpu.matmul %642, %643, %cst_234 {dimension_numbers = #tpu.dot_dimension_numbers<[1], [0], [0], [1], [0, 0, 1, 1], [], []>} : vector<8x64xf32>, vector<64x128xf32>, vector<8x128xf32> -> vector<8x128xf32>
    %645 = vector.extract_strided_slice %435 {offsets = [0, 3], sizes = [8, 1], strides = [1, 1]} : vector<8x7xf32> to vector<8x1xf32>
    %c4_235 = arith.constant 4 : index
    %c0_236 = arith.constant 0 : index
    %646 = vector.load %arg12[%c4_235, %c0_236] : memref<8x256xf32, #tpu.memory_space<vmem>>, vector<1x128xf32>
    %647 = vector.broadcast %645 : vector<8x1xf32> to vector<8x128xf32>
    %648 = vector.broadcast %646 : vector<1x128xf32> to vector<8x128xf32>
    %649 = arith.mulf %647, %648 : vector<8x128xf32>
    %650 = arith.addf %644, %649 : vector<8x128xf32>
    %651 = arith.addf %650, %438 : vector<8x128xf32>
    %652 = vector.extract_strided_slice %651 {offsets = [0, 0], sizes = [8, 32], strides = [1, 1]} : vector<8x128xf32> to vector<8x32xf32>
    %653 = arith.negf %652 : vector<8x32xf32>
    %654 = math.exp %653 : vector<8x32xf32>
    %cst_237 = arith.constant 1.000000e+00 : f32
    %655 = vector.broadcast %cst_237 : f32 to vector<8x32xf32>
    %656 = arith.addf %655, %654 : vector<8x32xf32>
    %657 = arith.divf %655, %656 : vector<8x32xf32>
    %658 = vector.extract_strided_slice %651 {offsets = [0, 32], sizes = [8, 32], strides = [1, 1]} : vector<8x128xf32> to vector<8x32xf32>
    %659 = arith.negf %658 : vector<8x32xf32>
    %660 = math.exp %659 : vector<8x32xf32>
    %cst_238 = arith.constant 1.000000e+00 : f32
    %661 = vector.broadcast %cst_238 : f32 to vector<8x32xf32>
    %662 = arith.addf %661, %660 : vector<8x32xf32>
    %663 = arith.divf %661, %662 : vector<8x32xf32>
    %664 = vector.extract_strided_slice %651 {offsets = [0, 64], sizes = [8, 32], strides = [1, 1]} : vector<8x128xf32> to vector<8x32xf32>
    %665 = math.tanh %664 : vector<8x32xf32>
    %666 = vector.extract_strided_slice %651 {offsets = [0, 96], sizes = [8, 32], strides = [1, 1]} : vector<8x128xf32> to vector<8x32xf32>
    %667 = arith.negf %666 : vector<8x32xf32>
    %668 = math.exp %667 : vector<8x32xf32>
    %cst_239 = arith.constant 1.000000e+00 : f32
    %669 = vector.broadcast %cst_239 : f32 to vector<8x32xf32>
    %670 = arith.addf %669, %668 : vector<8x32xf32>
    %671 = arith.divf %669, %670 : vector<8x32xf32>
    %672 = arith.mulf %663, %615 : vector<8x32xf32>
    %673 = arith.mulf %657, %665 : vector<8x32xf32>
    %674 = arith.addf %672, %673 : vector<8x32xf32>
    %675 = math.tanh %674 : vector<8x32xf32>
    %676 = arith.mulf %671, %675 : vector<8x32xf32>
    %677 = tpu.concatenate %676, %674 in 1 : vector<8x32xf32>, vector<8x32xf32> -> vector<8x64xf32>
    %c0_240 = arith.constant 0 : index
    %c0_241 = arith.constant 0 : index
    %678 = vector.load %arg7[%c0_240, %c0_241] : memref<64x256xf32, #tpu.memory_space<vmem>>, vector<64x256xf32>
    %cst_242 = arith.constant dense<0.000000e+00> : vector<8x256xf32>
    %679 = tpu.matmul %677, %678, %cst_242 {dimension_numbers = #tpu.dot_dimension_numbers<[1], [0], [0], [1], [0, 0, 1, 1], [], []>} : vector<8x64xf32>, vector<64x256xf32>, vector<8x256xf32> -> vector<8x256xf32>
    %680 = arith.addf %434, %679 : vector<8x256xf32>
    %681 = math.tanh %680 : vector<8x256xf32>
    %c0_243 = arith.constant 0 : index
    %c0_244 = arith.constant 0 : index
    %682 = vector.load %arg8[%c0_243, %c0_244] : memref<256x8xf32, #tpu.memory_space<vmem>>, vector<256x8xf32>
    %cst_245 = arith.constant dense<0.000000e+00> : vector<8x8xf32>
    %683 = tpu.matmul %681, %682, %cst_245 {dimension_numbers = #tpu.dot_dimension_numbers<[1], [0], [0], [1], [0, 0, 1, 1], [], []>} : vector<8x256xf32>, vector<256x8xf32>, vector<8x8xf32> -> vector<8x8xf32>
    %684 = vector.broadcast %1 : f32 to vector<8x8xf32>
    %685 = arith.addf %683, %684 : vector<8x8xf32>
    %cst_246 = arith.constant dense<0xFF800000> : vector<8xf32>
    %686 = vector.multi_reduction <maximumf>, %685, %cst_246 [1] : vector<8x8xf32> to vector<8xf32>
    %687 = vector.shape_cast %686 : vector<8xf32> to vector<8x1xf32>
    %688 = vector.broadcast %687 : vector<8x1xf32> to vector<8x8xf32>
    %689 = arith.subf %685, %688 : vector<8x8xf32>
    %690 = math.exp %689 : vector<8x8xf32>
    %cst_247 = arith.constant dense<0.000000e+00> : vector<8xf32>
    %691 = vector.multi_reduction <add>, %690, %cst_247 [1] : vector<8x8xf32> to vector<8xf32>
    %692 = vector.shape_cast %691 : vector<8xf32> to vector<8x1xf32>
    %693 = tpu.reciprocal %692 {approx = true} : vector<8x1xf32> -> vector<8x1xf32>
    %694 = vector.broadcast %693 : vector<8x1xf32> to vector<8x8xf32>
    %695 = arith.mulf %690, %694 : vector<8x8xf32>
    %c0_248 = arith.constant 0 : index
    %c0_249 = arith.constant 0 : index
    %696 = vector.load %arg9[%c0_248, %c0_249] : memref<8x256xf32, #tpu.memory_space<vmem>>, vector<8x256xf32>
    %cst_250 = arith.constant dense<0.000000e+00> : vector<8x256xf32>
    %697 = tpu.matmul %695, %696, %cst_250 {dimension_numbers = #tpu.dot_dimension_numbers<[1], [0], [0], [1], [0, 0, 1, 1], [], []>} : vector<8x8xf32>, vector<8x256xf32>, vector<8x256xf32> -> vector<8x256xf32>
    %698 = arith.mulf %697, %430 : vector<8x256xf32>
    %c0_251 = arith.constant 0 : index
    %c0_252 = arith.constant 0 : index
    %699 = vector.load %arg10[%c0_251, %c0_252] : memref<256x32xf32, #tpu.memory_space<vmem>>, vector<256x32xf32>
    %cst_253 = arith.constant dense<0.000000e+00> : vector<8x32xf32>
    %700 = tpu.matmul %698, %699, %cst_253 {dimension_numbers = #tpu.dot_dimension_numbers<[1], [0], [0], [1], [0, 0, 1, 1], [], []>} : vector<8x256xf32>, vector<256x32xf32>, vector<8x32xf32> -> vector<8x32xf32>
    %701 = tpu.concatenate %700, %676 in 1 : vector<8x32xf32>, vector<8x32xf32> -> vector<8x64xf32>
    %c0_254 = arith.constant 0 : index
    %c0_255 = arith.constant 0 : index
    %702 = vector.load %arg11[%c0_254, %c0_255] : memref<64x128xf32, #tpu.memory_space<vmem>>, vector<64x128xf32>
    %cst_256 = arith.constant dense<0.000000e+00> : vector<8x128xf32>
    %703 = tpu.matmul %701, %702, %cst_256 {dimension_numbers = #tpu.dot_dimension_numbers<[1], [0], [0], [1], [0, 0, 1, 1], [], []>} : vector<8x64xf32>, vector<64x128xf32>, vector<8x128xf32> -> vector<8x128xf32>
    %704 = vector.extract_strided_slice %435 {offsets = [0, 4], sizes = [8, 1], strides = [1, 1]} : vector<8x7xf32> to vector<8x1xf32>
    %c4_257 = arith.constant 4 : index
    %c0_258 = arith.constant 0 : index
    %705 = vector.load %arg12[%c4_257, %c0_258] : memref<8x256xf32, #tpu.memory_space<vmem>>, vector<1x128xf32>
    %706 = vector.broadcast %704 : vector<8x1xf32> to vector<8x128xf32>
    %707 = vector.broadcast %705 : vector<1x128xf32> to vector<8x128xf32>
    %708 = arith.mulf %706, %707 : vector<8x128xf32>
    %709 = arith.addf %703, %708 : vector<8x128xf32>
    %710 = arith.addf %709, %438 : vector<8x128xf32>
    %711 = vector.extract_strided_slice %710 {offsets = [0, 0], sizes = [8, 32], strides = [1, 1]} : vector<8x128xf32> to vector<8x32xf32>
    %712 = arith.negf %711 : vector<8x32xf32>
    %713 = math.exp %712 : vector<8x32xf32>
    %cst_259 = arith.constant 1.000000e+00 : f32
    %714 = vector.broadcast %cst_259 : f32 to vector<8x32xf32>
    %715 = arith.addf %714, %713 : vector<8x32xf32>
    %716 = arith.divf %714, %715 : vector<8x32xf32>
    %717 = vector.extract_strided_slice %710 {offsets = [0, 32], sizes = [8, 32], strides = [1, 1]} : vector<8x128xf32> to vector<8x32xf32>
    %718 = arith.negf %717 : vector<8x32xf32>
    %719 = math.exp %718 : vector<8x32xf32>
    %cst_260 = arith.constant 1.000000e+00 : f32
    %720 = vector.broadcast %cst_260 : f32 to vector<8x32xf32>
    %721 = arith.addf %720, %719 : vector<8x32xf32>
    %722 = arith.divf %720, %721 : vector<8x32xf32>
    %723 = vector.extract_strided_slice %710 {offsets = [0, 64], sizes = [8, 32], strides = [1, 1]} : vector<8x128xf32> to vector<8x32xf32>
    %724 = math.tanh %723 : vector<8x32xf32>
    %725 = vector.extract_strided_slice %710 {offsets = [0, 96], sizes = [8, 32], strides = [1, 1]} : vector<8x128xf32> to vector<8x32xf32>
    %726 = arith.negf %725 : vector<8x32xf32>
    %727 = math.exp %726 : vector<8x32xf32>
    %cst_261 = arith.constant 1.000000e+00 : f32
    %728 = vector.broadcast %cst_261 : f32 to vector<8x32xf32>
    %729 = arith.addf %728, %727 : vector<8x32xf32>
    %730 = arith.divf %728, %729 : vector<8x32xf32>
    %731 = arith.mulf %722, %674 : vector<8x32xf32>
    %732 = arith.mulf %716, %724 : vector<8x32xf32>
    %733 = arith.addf %731, %732 : vector<8x32xf32>
    %734 = math.tanh %733 : vector<8x32xf32>
    %735 = arith.mulf %730, %734 : vector<8x32xf32>
    %736 = tpu.concatenate %735, %733 in 1 : vector<8x32xf32>, vector<8x32xf32> -> vector<8x64xf32>
    %c0_262 = arith.constant 0 : index
    %c0_263 = arith.constant 0 : index
    %737 = vector.load %arg7[%c0_262, %c0_263] : memref<64x256xf32, #tpu.memory_space<vmem>>, vector<64x256xf32>
    %cst_264 = arith.constant dense<0.000000e+00> : vector<8x256xf32>
    %738 = tpu.matmul %736, %737, %cst_264 {dimension_numbers = #tpu.dot_dimension_numbers<[1], [0], [0], [1], [0, 0, 1, 1], [], []>} : vector<8x64xf32>, vector<64x256xf32>, vector<8x256xf32> -> vector<8x256xf32>
    %739 = arith.addf %434, %738 : vector<8x256xf32>
    %740 = math.tanh %739 : vector<8x256xf32>
    %c0_265 = arith.constant 0 : index
    %c0_266 = arith.constant 0 : index
    %741 = vector.load %arg8[%c0_265, %c0_266] : memref<256x8xf32, #tpu.memory_space<vmem>>, vector<256x8xf32>
    %cst_267 = arith.constant dense<0.000000e+00> : vector<8x8xf32>
    %742 = tpu.matmul %740, %741, %cst_267 {dimension_numbers = #tpu.dot_dimension_numbers<[1], [0], [0], [1], [0, 0, 1, 1], [], []>} : vector<8x256xf32>, vector<256x8xf32>, vector<8x8xf32> -> vector<8x8xf32>
    %743 = vector.broadcast %1 : f32 to vector<8x8xf32>
    %744 = arith.addf %742, %743 : vector<8x8xf32>
    %cst_268 = arith.constant dense<0xFF800000> : vector<8xf32>
    %745 = vector.multi_reduction <maximumf>, %744, %cst_268 [1] : vector<8x8xf32> to vector<8xf32>
    %746 = vector.shape_cast %745 : vector<8xf32> to vector<8x1xf32>
    %747 = vector.broadcast %746 : vector<8x1xf32> to vector<8x8xf32>
    %748 = arith.subf %744, %747 : vector<8x8xf32>
    %749 = math.exp %748 : vector<8x8xf32>
    %cst_269 = arith.constant dense<0.000000e+00> : vector<8xf32>
    %750 = vector.multi_reduction <add>, %749, %cst_269 [1] : vector<8x8xf32> to vector<8xf32>
    %751 = vector.shape_cast %750 : vector<8xf32> to vector<8x1xf32>
    %752 = tpu.reciprocal %751 {approx = true} : vector<8x1xf32> -> vector<8x1xf32>
    %753 = vector.broadcast %752 : vector<8x1xf32> to vector<8x8xf32>
    %754 = arith.mulf %749, %753 : vector<8x8xf32>
    %c0_270 = arith.constant 0 : index
    %c0_271 = arith.constant 0 : index
    %755 = vector.load %arg9[%c0_270, %c0_271] : memref<8x256xf32, #tpu.memory_space<vmem>>, vector<8x256xf32>
    %cst_272 = arith.constant dense<0.000000e+00> : vector<8x256xf32>
    %756 = tpu.matmul %754, %755, %cst_272 {dimension_numbers = #tpu.dot_dimension_numbers<[1], [0], [0], [1], [0, 0, 1, 1], [], []>} : vector<8x8xf32>, vector<8x256xf32>, vector<8x256xf32> -> vector<8x256xf32>
    %757 = arith.mulf %756, %430 : vector<8x256xf32>
    %c0_273 = arith.constant 0 : index
    %c0_274 = arith.constant 0 : index
    %758 = vector.load %arg10[%c0_273, %c0_274] : memref<256x32xf32, #tpu.memory_space<vmem>>, vector<256x32xf32>
    %cst_275 = arith.constant dense<0.000000e+00> : vector<8x32xf32>
    %759 = tpu.matmul %757, %758, %cst_275 {dimension_numbers = #tpu.dot_dimension_numbers<[1], [0], [0], [1], [0, 0, 1, 1], [], []>} : vector<8x256xf32>, vector<256x32xf32>, vector<8x32xf32> -> vector<8x32xf32>
    %760 = tpu.concatenate %759, %735 in 1 : vector<8x32xf32>, vector<8x32xf32> -> vector<8x64xf32>
    %c0_276 = arith.constant 0 : index
    %c0_277 = arith.constant 0 : index
    %761 = vector.load %arg11[%c0_276, %c0_277] : memref<64x128xf32, #tpu.memory_space<vmem>>, vector<64x128xf32>
    %cst_278 = arith.constant dense<0.000000e+00> : vector<8x128xf32>
    %762 = tpu.matmul %760, %761, %cst_278 {dimension_numbers = #tpu.dot_dimension_numbers<[1], [0], [0], [1], [0, 0, 1, 1], [], []>} : vector<8x64xf32>, vector<64x128xf32>, vector<8x128xf32> -> vector<8x128xf32>
    %763 = vector.extract_strided_slice %435 {offsets = [0, 5], sizes = [8, 1], strides = [1, 1]} : vector<8x7xf32> to vector<8x1xf32>
    %c4_279 = arith.constant 4 : index
    %c0_280 = arith.constant 0 : index
    %764 = vector.load %arg12[%c4_279, %c0_280] : memref<8x256xf32, #tpu.memory_space<vmem>>, vector<1x128xf32>
    %765 = vector.broadcast %763 : vector<8x1xf32> to vector<8x128xf32>
    %766 = vector.broadcast %764 : vector<1x128xf32> to vector<8x128xf32>
    %767 = arith.mulf %765, %766 : vector<8x128xf32>
    %768 = arith.addf %762, %767 : vector<8x128xf32>
    %769 = arith.addf %768, %438 : vector<8x128xf32>
    %770 = vector.extract_strided_slice %769 {offsets = [0, 0], sizes = [8, 32], strides = [1, 1]} : vector<8x128xf32> to vector<8x32xf32>
    %771 = arith.negf %770 : vector<8x32xf32>
    %772 = math.exp %771 : vector<8x32xf32>
    %cst_281 = arith.constant 1.000000e+00 : f32
    %773 = vector.broadcast %cst_281 : f32 to vector<8x32xf32>
    %774 = arith.addf %773, %772 : vector<8x32xf32>
    %775 = arith.divf %773, %774 : vector<8x32xf32>
    %776 = vector.extract_strided_slice %769 {offsets = [0, 32], sizes = [8, 32], strides = [1, 1]} : vector<8x128xf32> to vector<8x32xf32>
    %777 = arith.negf %776 : vector<8x32xf32>
    %778 = math.exp %777 : vector<8x32xf32>
    %cst_282 = arith.constant 1.000000e+00 : f32
    %779 = vector.broadcast %cst_282 : f32 to vector<8x32xf32>
    %780 = arith.addf %779, %778 : vector<8x32xf32>
    %781 = arith.divf %779, %780 : vector<8x32xf32>
    %782 = vector.extract_strided_slice %769 {offsets = [0, 64], sizes = [8, 32], strides = [1, 1]} : vector<8x128xf32> to vector<8x32xf32>
    %783 = math.tanh %782 : vector<8x32xf32>
    %784 = vector.extract_strided_slice %769 {offsets = [0, 96], sizes = [8, 32], strides = [1, 1]} : vector<8x128xf32> to vector<8x32xf32>
    %785 = arith.negf %784 : vector<8x32xf32>
    %786 = math.exp %785 : vector<8x32xf32>
    %cst_283 = arith.constant 1.000000e+00 : f32
    %787 = vector.broadcast %cst_283 : f32 to vector<8x32xf32>
    %788 = arith.addf %787, %786 : vector<8x32xf32>
    %789 = arith.divf %787, %788 : vector<8x32xf32>
    %790 = arith.mulf %781, %733 : vector<8x32xf32>
    %791 = arith.mulf %775, %783 : vector<8x32xf32>
    %792 = arith.addf %790, %791 : vector<8x32xf32>
    %793 = math.tanh %792 : vector<8x32xf32>
    %794 = arith.mulf %789, %793 : vector<8x32xf32>
    %795 = tpu.concatenate %794, %792 in 1 : vector<8x32xf32>, vector<8x32xf32> -> vector<8x64xf32>
    %c0_284 = arith.constant 0 : index
    %c0_285 = arith.constant 0 : index
    %796 = vector.load %arg7[%c0_284, %c0_285] : memref<64x256xf32, #tpu.memory_space<vmem>>, vector<64x256xf32>
    %cst_286 = arith.constant dense<0.000000e+00> : vector<8x256xf32>
    %797 = tpu.matmul %795, %796, %cst_286 {dimension_numbers = #tpu.dot_dimension_numbers<[1], [0], [0], [1], [0, 0, 1, 1], [], []>} : vector<8x64xf32>, vector<64x256xf32>, vector<8x256xf32> -> vector<8x256xf32>
    %798 = arith.addf %434, %797 : vector<8x256xf32>
    %799 = math.tanh %798 : vector<8x256xf32>
    %c0_287 = arith.constant 0 : index
    %c0_288 = arith.constant 0 : index
    %800 = vector.load %arg8[%c0_287, %c0_288] : memref<256x8xf32, #tpu.memory_space<vmem>>, vector<256x8xf32>
    %cst_289 = arith.constant dense<0.000000e+00> : vector<8x8xf32>
    %801 = tpu.matmul %799, %800, %cst_289 {dimension_numbers = #tpu.dot_dimension_numbers<[1], [0], [0], [1], [0, 0, 1, 1], [], []>} : vector<8x256xf32>, vector<256x8xf32>, vector<8x8xf32> -> vector<8x8xf32>
    %802 = vector.broadcast %1 : f32 to vector<8x8xf32>
    %803 = arith.addf %801, %802 : vector<8x8xf32>
    %cst_290 = arith.constant dense<0xFF800000> : vector<8xf32>
    %804 = vector.multi_reduction <maximumf>, %803, %cst_290 [1] : vector<8x8xf32> to vector<8xf32>
    %805 = vector.shape_cast %804 : vector<8xf32> to vector<8x1xf32>
    %806 = vector.broadcast %805 : vector<8x1xf32> to vector<8x8xf32>
    %807 = arith.subf %803, %806 : vector<8x8xf32>
    %808 = math.exp %807 : vector<8x8xf32>
    %cst_291 = arith.constant dense<0.000000e+00> : vector<8xf32>
    %809 = vector.multi_reduction <add>, %808, %cst_291 [1] : vector<8x8xf32> to vector<8xf32>
    %810 = vector.shape_cast %809 : vector<8xf32> to vector<8x1xf32>
    %811 = tpu.reciprocal %810 {approx = true} : vector<8x1xf32> -> vector<8x1xf32>
    %812 = vector.broadcast %811 : vector<8x1xf32> to vector<8x8xf32>
    %813 = arith.mulf %808, %812 : vector<8x8xf32>
    %c0_292 = arith.constant 0 : index
    %c0_293 = arith.constant 0 : index
    %814 = vector.load %arg9[%c0_292, %c0_293] : memref<8x256xf32, #tpu.memory_space<vmem>>, vector<8x256xf32>
    %cst_294 = arith.constant dense<0.000000e+00> : vector<8x256xf32>
    %815 = tpu.matmul %813, %814, %cst_294 {dimension_numbers = #tpu.dot_dimension_numbers<[1], [0], [0], [1], [0, 0, 1, 1], [], []>} : vector<8x8xf32>, vector<8x256xf32>, vector<8x256xf32> -> vector<8x256xf32>
    %816 = arith.mulf %815, %430 : vector<8x256xf32>
    %c0_295 = arith.constant 0 : index
    %c0_296 = arith.constant 0 : index
    %817 = vector.load %arg10[%c0_295, %c0_296] : memref<256x32xf32, #tpu.memory_space<vmem>>, vector<256x32xf32>
    %cst_297 = arith.constant dense<0.000000e+00> : vector<8x32xf32>
    %818 = tpu.matmul %816, %817, %cst_297 {dimension_numbers = #tpu.dot_dimension_numbers<[1], [0], [0], [1], [0, 0, 1, 1], [], []>} : vector<8x256xf32>, vector<256x32xf32>, vector<8x32xf32> -> vector<8x32xf32>
    %819 = tpu.concatenate %818, %794 in 1 : vector<8x32xf32>, vector<8x32xf32> -> vector<8x64xf32>
    %c0_298 = arith.constant 0 : index
    %c0_299 = arith.constant 0 : index
    %820 = vector.load %arg11[%c0_298, %c0_299] : memref<64x128xf32, #tpu.memory_space<vmem>>, vector<64x128xf32>
    %cst_300 = arith.constant dense<0.000000e+00> : vector<8x128xf32>
    %821 = tpu.matmul %819, %820, %cst_300 {dimension_numbers = #tpu.dot_dimension_numbers<[1], [0], [0], [1], [0, 0, 1, 1], [], []>} : vector<8x64xf32>, vector<64x128xf32>, vector<8x128xf32> -> vector<8x128xf32>
    %822 = vector.extract_strided_slice %435 {offsets = [0, 6], sizes = [8, 1], strides = [1, 1]} : vector<8x7xf32> to vector<8x1xf32>
    %c4_301 = arith.constant 4 : index
    %c0_302 = arith.constant 0 : index
    %823 = vector.load %arg12[%c4_301, %c0_302] : memref<8x256xf32, #tpu.memory_space<vmem>>, vector<1x128xf32>
    %824 = vector.broadcast %822 : vector<8x1xf32> to vector<8x128xf32>
    %825 = vector.broadcast %823 : vector<1x128xf32> to vector<8x128xf32>
    %826 = arith.mulf %824, %825 : vector<8x128xf32>
    %827 = arith.addf %821, %826 : vector<8x128xf32>
    %828 = arith.addf %827, %438 : vector<8x128xf32>
    %829 = vector.extract_strided_slice %828 {offsets = [0, 0], sizes = [8, 32], strides = [1, 1]} : vector<8x128xf32> to vector<8x32xf32>
    %830 = arith.negf %829 : vector<8x32xf32>
    %831 = math.exp %830 : vector<8x32xf32>
    %cst_303 = arith.constant 1.000000e+00 : f32
    %832 = vector.broadcast %cst_303 : f32 to vector<8x32xf32>
    %833 = arith.addf %832, %831 : vector<8x32xf32>
    %834 = arith.divf %832, %833 : vector<8x32xf32>
    %835 = vector.extract_strided_slice %828 {offsets = [0, 32], sizes = [8, 32], strides = [1, 1]} : vector<8x128xf32> to vector<8x32xf32>
    %836 = arith.negf %835 : vector<8x32xf32>
    %837 = math.exp %836 : vector<8x32xf32>
    %cst_304 = arith.constant 1.000000e+00 : f32
    %838 = vector.broadcast %cst_304 : f32 to vector<8x32xf32>
    %839 = arith.addf %838, %837 : vector<8x32xf32>
    %840 = arith.divf %838, %839 : vector<8x32xf32>
    %841 = vector.extract_strided_slice %828 {offsets = [0, 64], sizes = [8, 32], strides = [1, 1]} : vector<8x128xf32> to vector<8x32xf32>
    %842 = math.tanh %841 : vector<8x32xf32>
    %843 = vector.extract_strided_slice %828 {offsets = [0, 96], sizes = [8, 32], strides = [1, 1]} : vector<8x128xf32> to vector<8x32xf32>
    %844 = arith.negf %843 : vector<8x32xf32>
    %845 = math.exp %844 : vector<8x32xf32>
    %cst_305 = arith.constant 1.000000e+00 : f32
    %846 = vector.broadcast %cst_305 : f32 to vector<8x32xf32>
    %847 = arith.addf %846, %845 : vector<8x32xf32>
    %848 = arith.divf %846, %847 : vector<8x32xf32>
    %849 = arith.mulf %840, %792 : vector<8x32xf32>
    %850 = arith.mulf %834, %842 : vector<8x32xf32>
    %851 = arith.addf %849, %850 : vector<8x32xf32>
    %852 = math.tanh %851 : vector<8x32xf32>
    %853 = arith.mulf %848, %852 : vector<8x32xf32>
    %854 = tpu.concatenate %853, %818 in 1 : vector<8x32xf32>, vector<8x32xf32> -> vector<8x64xf32>
    %c5 = arith.constant 5 : index
    %c0_306 = arith.constant 0 : index
    %855 = vector.load %arg12[%c5, %c0_306] : memref<8x256xf32, #tpu.memory_space<vmem>>, vector<1x64xf32>
    %856 = vector.broadcast %855 : vector<1x64xf32> to vector<8x64xf32>
    %857 = arith.mulf %854, %856 : vector<8x64xf32>
    %cst_307 = arith.constant dense<0.000000e+00> : vector<8xf32>
    %858 = vector.multi_reduction <add>, %857, %cst_307 [1] : vector<8x64xf32> to vector<8xf32>
    %859 = vector.shape_cast %858 : vector<8xf32> to vector<8x1xf32>
    %860 = vector.broadcast %2 : f32 to vector<8x1xf32>
    %861 = arith.addf %859, %860 : vector<8x1xf32>
    %c0_308 = arith.constant 0 : index
    %c0_309 = arith.constant 0 : index
    %862 = vector.load %arg14[%c0_308, %c0_309] : memref<8x1xf32, #tpu.memory_space<vmem>>, vector<8x1xf32>
    tpu.vector_store %arg14[%c0_308, %c0_309], %861 {strides = array<i32>} : memref<8x1xf32, #tpu.memory_space<vmem>>, vector<8x1xf32>,
    return
  }
}

</mosaic_0001>

<bundles_post_ra>
// kernel: mul.44
= control target key start
LH: loop header
LB: loop body
LE: loop exit
PB: predicated region body
PF: predicated region fallthrough
CT: control target
= control target key end

     0   :  { %s874_s0 = inlined_call_operand.vmem [shape: f32[8,16,16], index: 0, kind: input, shape index: {}]   ;;  %s875_s1 = inlined_call_operand.vmem [shape: f32[8,16,16,8], index: 1, kind: output, shape index: {}]  }
   0x1   :  { %v4_v0 = vld [vmem:[%s874_s0] sm:$0xff]  ;;  %v290_v1 = vld [vmem:[%s874_s0 + $0x8] sm:$0xff]  ;;  %v292_v2 = vld [vmem:[%s874_s0 + $0x10] sm:$0xff] }
   0x2   :  { %5 = vst [vmem:[%s875_s1] sm:$0xff] %v4_v0  ;;  %291 = vst [vmem:[%s875_s1 + $0x40] sm:$0xff] %v290_v1  ;;  %v294_v3 = vld [vmem:[%s874_s0 + $0x18] sm:$0xff]  ;;  %v296_v4 = vld [vmem:[%s874_s0 + $0x20] sm:$0xff] }
   0x3   :  { %293 = vst [vmem:[%s875_s1 + $0x80] sm:$0xff] %v292_v2  ;;  %v298_v5 = vld [vmem:[%s874_s0 + $0x28] sm:$0xff]  ;;  %320 = vst [vmem:[%s875_s1 + $0x8] sm:$0xff] %v4_v0  ;;  %v300_v6 = vld [vmem:[%s874_s0 + $0x30] sm:$0xff] }
   0x4   :  { %321 = vst [vmem:[%s875_s1 + $0x48] sm:$0xff] %v290_v1  ;;  %322 = vst [vmem:[%s875_s1 + $0x88] sm:$0xff] %v292_v2  ;;  %v302_v7 = vld [vmem:[%s874_s0 + $0x38] sm:$0xff]  ;;  %v304_v8 = vld [vmem:[%s874_s0 + $0x40] sm:$0xff] }
   0x5   :  { %336 = vst [vmem:[%s875_s1 + $0x10] sm:$0xff] %v4_v0  ;;  %337 = vst [vmem:[%s875_s1 + $0x50] sm:$0xff] %v290_v1  ;;  %v306_v9 = vld [vmem:[%s874_s0 + $0x48] sm:$0xff]  ;;  %v308_v10 = vld [vmem:[%s874_s0 + $0x50] sm:$0xff] }
   0x6   :  { %338 = vst [vmem:[%s875_s1 + $0x90] sm:$0xff] %v292_v2  ;;  %352 = vst [vmem:[%s875_s1 + $0x18] sm:$0xff] %v4_v0  ;;  %v310_v11 = vld [vmem:[%s874_s0 + $0x58] sm:$0xff]  ;;  %v312_v12 = vld [vmem:[%s874_s0 + $0x60] sm:$0xff] }
   0x7   :  { %353 = vst [vmem:[%s875_s1 + $0x58] sm:$0xff] %v290_v1  ;;  %354 = vst [vmem:[%s875_s1 + $0x98] sm:$0xff] %v292_v2  ;;  %v314_v13 = vld [vmem:[%s874_s0 + $0x68] sm:$0xff]  ;;  %v316_v14 = vld [vmem:[%s874_s0 + $0x70] sm:$0xff] }
   0x8   :  { %368 = vst [vmem:[%s875_s1 + $0x20] sm:$0xff] %v4_v0  ;;  %369 = vst [vmem:[%s875_s1 + $0x60] sm:$0xff] %v290_v1  ;;  %v318_v15 = vld [vmem:[%s874_s0 + $0x78] sm:$0xff] }
   0x9   :  { %370 = vst [vmem:[%s875_s1 + $0xa0] sm:$0xff] %v292_v2  ;;  %384 = vst [vmem:[%s875_s1 + $0x28] sm:$0xff] %v4_v0 }
   0xa   :  { %385 = vst [vmem:[%s875_s1 + $0x68] sm:$0xff] %v290_v1  ;;  %386 = vst [vmem:[%s875_s1 + $0xa8] sm:$0xff] %v292_v2 }
   0xb   :  { %400 = vst [vmem:[%s875_s1 + $0x30] sm:$0xff] %v4_v0  ;;  %401 = vst [vmem:[%s875_s1 + $0x70] sm:$0xff] %v290_v1 }
   0xc   :  { %402 = vst [vmem:[%s875_s1 + $0xb0] sm:$0xff] %v292_v2  ;;  %416 = vst [vmem:[%s875_s1 + $0x38] sm:$0xff] %v4_v0 }
   0xd   :  { %417 = vst [vmem:[%s875_s1 + $0x78] sm:$0xff] %v290_v1  ;;  %418 = vst [vmem:[%s875_s1 + $0xb8] sm:$0xff] %v292_v2 }
   0xe   :  { %295 = vst [vmem:[%s875_s1 + $0xc0] sm:$0xff] %v294_v3  ;;  %297 = vst [vmem:[%s875_s1 + $0x100] sm:$0xff] %v296_v4 }
   0xf   :  { %299 = vst [vmem:[%s875_s1 + $0x140] sm:$0xff] %v298_v5  ;;  %323 = vst [vmem:[%s875_s1 + $0xc8] sm:$0xff] %v294_v3 }
  0x10   :  { %324 = vst [vmem:[%s875_s1 + $0x108] sm:$0xff] %v296_v4  ;;  %325 = vst [vmem:[%s875_s1 + $0x148] sm:$0xff] %v298_v5 }
  0x11   :  { %339 = vst [vmem:[%s875_s1 + $0xd0] sm:$0xff] %v294_v3  ;;  %340 = vst [vmem:[%s875_s1 + $0x110] sm:$0xff] %v296_v4 }
  0x12   :  { %341 = vst [vmem:[%s875_s1 + $0x150] sm:$0xff] %v298_v5  ;;  %355 = vst [vmem:[%s875_s1 + $0xd8] sm:$0xff] %v294_v3 }
  0x13   :  { %356 = vst [vmem:[%s875_s1 + $0x118] sm:$0xff] %v296_v4  ;;  %357 = vst [vmem:[%s875_s1 + $0x158] sm:$0xff] %v298_v5 }
  0x14   :  { %371 = vst [vmem:[%s875_s1 + $0xe0] sm:$0xff] %v294_v3  ;;  %372 = vst [vmem:[%s875_s1 + $0x120] sm:$0xff] %v296_v4 }
  0x15   :  { %373 = vst [vmem:[%s875_s1 + $0x160] sm:$0xff] %v298_v5  ;;  %387 = vst [vmem:[%s875_s1 + $0xe8] sm:$0xff] %v294_v3 }
  0x16   :  { %388 = vst [vmem:[%s875_s1 + $0x128] sm:$0xff] %v296_v4  ;;  %389 = vst [vmem:[%s875_s1 + $0x168] sm:$0xff] %v298_v5 }
  0x17   :  { %403 = vst [vmem:[%s875_s1 + $0xf0] sm:$0xff] %v294_v3  ;;  %404 = vst [vmem:[%s875_s1 + $0x130] sm:$0xff] %v296_v4 }
  0x18   :  { %405 = vst [vmem:[%s875_s1 + $0x170] sm:$0xff] %v298_v5  ;;  %419 = vst [vmem:[%s875_s1 + $0xf8] sm:$0xff] %v294_v3 }
  0x19   :  { %420 = vst [vmem:[%s875_s1 + $0x138] sm:$0xff] %v296_v4  ;;  %421 = vst [vmem:[%s875_s1 + $0x178] sm:$0xff] %v298_v5 }
  0x1a   :  { %301 = vst [vmem:[%s875_s1 + $0x180] sm:$0xff] %v300_v6  ;;  %303 = vst [vmem:[%s875_s1 + $0x1c0] sm:$0xff] %v302_v7 }
  0x1b   :  { %305 = vst [vmem:[%s875_s1 + $0x200] sm:$0xff] %v304_v8  ;;  %326 = vst [vmem:[%s875_s1 + $0x188] sm:$0xff] %v300_v6 }
  0x1c   :  { %327 = vst [vmem:[%s875_s1 + $0x1c8] sm:$0xff] %v302_v7  ;;  %328 = vst [vmem:[%s875_s1 + $0x208] sm:$0xff] %v304_v8 }
  0x1d   :  { %342 = vst [vmem:[%s875_s1 + $0x190] sm:$0xff] %v300_v6  ;;  %343 = vst [vmem:[%s875_s1 + $0x1d0] sm:$0xff] %v302_v7 }
  0x1e   :  { %344 = vst [vmem:[%s875_s1 + $0x210] sm:$0xff] %v304_v8  ;;  %358 = vst [vmem:[%s875_s1 + $0x198] sm:$0xff] %v300_v6 }
  0x1f   :  { %359 = vst [vmem:[%s875_s1 + $0x1d8] sm:$0xff] %v302_v7  ;;  %360 = vst [vmem:[%s875_s1 + $0x218] sm:$0xff] %v304_v8 }
  0x20   :  { %374 = vst [vmem:[%s875_s1 + $0x1a0] sm:$0xff] %v300_v6  ;;  %375 = vst [vmem:[%s875_s1 + $0x1e0] sm:$0xff] %v302_v7 }
  0x21   :  { %376 = vst [vmem:[%s875_s1 + $0x220] sm:$0xff] %v304_v8  ;;  %390 = vst [vmem:[%s875_s1 + $0x1a8] sm:$0xff] %v300_v6 }
  0x22   :  { %391 = vst [vmem:[%s875_s1 + $0x1e8] sm:$0xff] %v302_v7  ;;  %392 = vst [vmem:[%s875_s1 + $0x228] sm:$0xff] %v304_v8 }
  0x23   :  { %406 = vst [vmem:[%s875_s1 + $0x1b0] sm:$0xff] %v300_v6  ;;  %407 = vst [vmem:[%s875_s1 + $0x1f0] sm:$0xff] %v302_v7 }
  0x24   :  { %408 = vst [vmem:[%s875_s1 + $0x230] sm:$0xff] %v304_v8  ;;  %422 = vst [vmem:[%s875_s1 + $0x1b8] sm:$0xff] %v300_v6 }
  0x25   :  { %423 = vst [vmem:[%s875_s1 + $0x1f8] sm:$0xff] %v302_v7  ;;  %424 = vst [vmem:[%s875_s1 + $0x238] sm:$0xff] %v304_v8 }
  0x26   :  { %307 = vst [vmem:[%s875_s1 + $0x240] sm:$0xff] %v306_v9  ;;  %309 = vst [vmem:[%s875_s1 + $0x280] sm:$0xff] %v308_v10 }
  0x27   :  { %311 = vst [vmem:[%s875_s1 + $0x2c0] sm:$0xff] %v310_v11  ;;  %329 = vst [vmem:[%s875_s1 + $0x248] sm:$0xff] %v306_v9 }
  0x28   :  { %330 = vst [vmem:[%s875_s1 + $0x288] sm:$0xff] %v308_v10  ;;  %331 = vst [vmem:[%s875_s1 + $0x2c8] sm:$0xff] %v310_v11 }
  0x29   :  { %345 = vst [vmem:[%s875_s1 + $0x250] sm:$0xff] %v306_v9  ;;  %346 = vst [vmem:[%s875_s1 + $0x290] sm:$0xff] %v308_v10 }
  0x2a   :  { %347 = vst [vmem:[%s875_s1 + $0x2d0] sm:$0xff] %v310_v11  ;;  %361 = vst [vmem:[%s875_s1 + $0x258] sm:$0xff] %v306_v9 }
  0x2b   :  { %362 = vst [vmem:[%s875_s1 + $0x298] sm:$0xff] %v308_v10  ;;  %363 = vst [vmem:[%s875_s1 + $0x2d8] sm:$0xff] %v310_v11 }
  0x2c   :  { %377 = vst [vmem:[%s875_s1 + $0x260] sm:$0xff] %v306_v9  ;;  %378 = vst [vmem:[%s875_s1 + $0x2a0] sm:$0xff] %v308_v10 }
  0x2d   :  { %379 = vst [vmem:[%s875_s1 + $0x2e0] sm:$0xff] %v310_v11  ;;  %393 = vst [vmem:[%s875_s1 + $0x268] sm:$0xff] %v306_v9 }
  0x2e   :  { %394 = vst [vmem:[%s875_s1 + $0x2a8] sm:$0xff] %v308_v10  ;;  %395 = vst [vmem:[%s875_s1 + $0x2e8] sm:$0xff] %v310_v11 }
  0x2f   :  { %409 = vst [vmem:[%s875_s1 + $0x270] sm:$0xff] %v306_v9  ;;  %410 = vst [vmem:[%s875_s1 + $0x2b0] sm:$0xff] %v308_v10 }
  0x30   :  { %411 = vst [vmem:[%s875_s1 + $0x2f0] sm:$0xff] %v310_v11  ;;  %425 = vst [vmem:[%s875_s1 + $0x278] sm:$0xff] %v306_v9 }
  0x31   :  { %426 = vst [vmem:[%s875_s1 + $0x2b8] sm:$0xff] %v308_v10  ;;  %427 = vst [vmem:[%s875_s1 + $0x2f8] sm:$0xff] %v310_v11 }
  0x32   :  { %313 = vst [vmem:[%s875_s1 + $0x300] sm:$0xff] %v312_v12  ;;  %315 = vst [vmem:[%s875_s1 + $0x340] sm:$0xff] %v314_v13 }
  0x33   :  { %317 = vst [vmem:[%s875_s1 + $0x380] sm:$0xff] %v316_v14  ;;  %332 = vst [vmem:[%s875_s1 + $0x308] sm:$0xff] %v312_v12 }
  0x34   :  { %333 = vst [vmem:[%s875_s1 + $0x348] sm:$0xff] %v314_v13  ;;  %334 = vst [vmem:[%s875_s1 + $0x388] sm:$0xff] %v316_v14 }
  0x35   :  { %348 = vst [vmem:[%s875_s1 + $0x310] sm:$0xff] %v312_v12  ;;  %349 = vst [vmem:[%s875_s1 + $0x350] sm:$0xff] %v314_v13 }
  0x36   :  { %350 = vst [vmem:[%s875_s1 + $0x390] sm:$0xff] %v316_v14  ;;  %364 = vst [vmem:[%s875_s1 + $0x318] sm:$0xff] %v312_v12 }
  0x37   :  { %365 = vst [vmem:[%s875_s1 + $0x358] sm:$0xff] %v314_v13  ;;  %366 = vst [vmem:[%s875_s1 + $0x398] sm:$0xff] %v316_v14 }
  0x38   :  { %380 = vst [vmem:[%s875_s1 + $0x320] sm:$0xff] %v312_v12  ;;  %381 = vst [vmem:[%s875_s1 + $0x360] sm:$0xff] %v314_v13 }
  0x39   :  { %382 = vst [vmem:[%s875_s1 + $0x3a0] sm:$0xff] %v316_v14  ;;  %396 = vst [vmem:[%s875_s1 + $0x328] sm:$0xff] %v312_v12 }
  0x3a   :  { %397 = vst [vmem:[%s875_s1 + $0x368] sm:$0xff] %v314_v13  ;;  %398 = vst [vmem:[%s875_s1 + $0x3a8] sm:$0xff] %v316_v14 }
  0x3b   :  { %412 = vst [vmem:[%s875_s1 + $0x330] sm:$0xff] %v312_v12  ;;  %413 = vst [vmem:[%s875_s1 + $0x370] sm:$0xff] %v314_v13 }
  0x3c   :  { %414 = vst [vmem:[%s875_s1 + $0x3b0] sm:$0xff] %v316_v14  ;;  %428 = vst [vmem:[%s875_s1 + $0x338] sm:$0xff] %v312_v12 }
  0x3d   :  { %429 = vst [vmem:[%s875_s1 + $0x378] sm:$0xff] %v314_v13  ;;  %430 = vst [vmem:[%s875_s1 + $0x3b8] sm:$0xff] %v316_v14 }
  0x3e   :  { %319 = vst [vmem:[%s875_s1 + $0x3c0] sm:$0xff] %v318_v15  ;;  %335 = vst [vmem:[%s875_s1 + $0x3c8] sm:$0xff] %v318_v15 }
  0x3f   :  { %351 = vst [vmem:[%s875_s1 + $0x3d0] sm:$0xff] %v318_v15  ;;  %367 = vst [vmem:[%s875_s1 + $0x3d8] sm:$0xff] %v318_v15 }
  0x40   :  { %383 = vst [vmem:[%s875_s1 + $0x3e0] sm:$0xff] %v318_v15  ;;  %399 = vst [vmem:[%s875_s1 + $0x3e8] sm:$0xff] %v318_v15 }
  0x41   :  { %415 = vst [vmem:[%s875_s1 + $0x3f0] sm:$0xff] %v318_v15  ;;  %431 = vst [vmem:[%s875_s1 + $0x3f8] sm:$0xff] %v318_v15 }

// kernel: model_forward.1
= control target key start
LH: loop header
LB: loop body
LE: loop exit
PB: predicated region body
PF: predicated region fallthrough
CT: control target
= control target key end

     0   :  { %19 = vsyncpa [#allocation3], 0  ;;  %s10939_s0 = inlined_call_operand.vmem [shape: f32[8,128], index: 0, kind: input, shape index: {}]   ;;  %s10940_s1 = inlined_call_operand.vmem [shape: f32[8,7], index: 1, kind: input, shape index: {}]   ;;  %s10941_s2 = inlined_call_operand.vmem [shape: f32[128,128], index: 2, kind: input, shape index: {}]   ;;  %s10942_s3 = inlined_call_operand.vmem [shape: f32[64,128], index: 3, kind: input, shape index: {}]   ;;  %s10943_s4 = inlined_call_operand.vmem [shape: f32[128,16], index: 4, kind: input, shape index: {}]   ;;  %s10944_s5 = inlined_call_operand.vmem [shape: f32[48,128], index: 5, kind: input, shape index: {}]   ;;  %s10945_s6 = inlined_call_operand.vmem [shape: f32[32,32], index: 6, kind: input, shape index: {}]   ;;  %s10946_s7 = inlined_call_operand.vmem [shape: f32[64,256], index: 7, kind: input, shape index: {}]   ;;  %s10947_s8 = inlined_call_operand.vmem [shape: f32[256,8], index: 8, kind: input, shape index: {}]   ;;  %s10948_s9 = inlined_call_operand.vmem [shape: f32[8,256], index: 9, kind: input, shape index: {}]   ;;  %s10949_s10 = inlined_call_operand.vmem [shape: f32[256,32], index: 10, kind: input, shape index: {}]   ;;  %s10950_s11 = inlined_call_operand.vmem [shape: f32[64,128], index: 11, kind: input, shape index: {}]   ;;  %s10951_s12 = inlined_call_operand.vmem [shape: f32[8,256], index: 12, kind: input, shape index: {}]   ;;  %s10952_s13 = inlined_call_operand.vmem [shape: f32[3], index: 13, kind: input, shape index: {}]   ;;  %s10953_s14 = inlined_call_operand.vmem [shape: f32[8,1], index: 14, kind: output, shape index: {}]  }
   0x1   :  { %s52_s15 = sshll.u32 %s10952_s13, 4  ;;  %s53_s15 = int_to_ptr.vmem [resolvable:$true] %s52_s15 }
   0x2   :  { %s9047_s16 = scalar_lea.vmem %s53_s15, 16  ;;  %p9052_p1 = scmp.lt.s32.totalorder %s53_s15, %s53_s15 }
   0x3   :  { %p9048_p0 = scmp.ne.s32.totalorder %s53_s15, %s9047_s16  ;;  %p9053_p2 = scmp.lt.s32.totalorder %s9047_s16, %s9047_s16 }
   0x5   :  { %p9054_p3 = por %p9053_p2, %p9052_p1 }
   0x7   :  { %p9055_p4 = pnand %p9054_p3, %p9048_p0 }
   0x9   :  { %9058 = shalt.err (!%p9055_p4)
}
   0xa   :  { %s9061_s17 = smov [#allocation2]  }
   0xb   :  { %55 = dma.vmem_to_smem %s53_s15, 16, %s9061_s17, [#allocation3]  }
   0xc   :  { %9059 = dma.done.wait [#allocation3], 16  }
   0xd   :  { %9060 = vsyncadd [#allocation3], 4294967280 }
   0xe   :  { %59 = sfence }
   0xf   :  { %v64_v0 = vld [vmem:[%s10941_s2] sm:$0xff]  ;;  %v65_v1 = vld [vmem:[%s10941_s2 + $0x8] sm:$0xff]  ;;  %v66_v2 = vld [vmem:[%s10941_s2 + $0x10] sm:$0xff]  ;;  %v10956_v3 = vmov 0.0|0.0   ;;  %vm9063_vm0 = vmmov 0   ;;  %v10954_v6 = vmov 0.0  }
  0x10   :  { %7714 = vmatprep.subr.bf16.mxu0 %v10956_v3  ;;  %v7715_v4 = vpack.c.bf16 %v65_v1, %v64_v0  ;;  %v67_v5 = vld [vmem:[%s10941_s2 + $0x18] sm:$0xff]  ;;  %7738 = vmatprep.subr.bf16.mxu1 %v10956_v3  ;;  %v152_v8 = vld [vmem:[%s10942_s3] sm:$0xff]  ;;  %v153_v9 = vld [vmem:[%s10942_s3 + $0x8] sm:$0xff]  ;;  %vm322_vm1 = vcmask 130048   ;;  %vm342_vm2 = vcmask 392192   ;;  %s9065_s23 = smov 64  }
  0x11   :  { %6938 = vmatprep.mubr.msk.f32.mxu0 %vm9063_vm0, %v10954_v6  ;;  %6957 = vmatprep.mubr.msk.f32.mxu1 %vm9063_vm0, %v10954_v6  ;;  %v7718_v7 = vpack.c.bf16 %v67_v5, %v66_v2  ;;  %v68_v10 = vld [vmem:[%s10941_s2 + $0x20] sm:$0xff]  ;;  %v69_v11 = vld [vmem:[%s10941_s2 + $0x28] sm:$0xff]  ;;  %v9188_v12 = vpack.c.bf16 %v153_v9, %v152_v8  ;;  %v154_v13 = vld [vmem:[%s10942_s3 + $0x10] sm:$0xff]  ;;  %s9066_s24 = smov 32   ;;  %vm447_vm3 = vcmask 261120   ;;  %vm160_vm4 = vcmask 523264  }
  0x12   :  { %7716 = vmatpush3.bf16.msra.mxu0 %v7715_v4  ;;  %v155_v14 = vld [vmem:[%s10942_s3 + $0x18] sm:$0xff]  ;;  %v7721_v16 = vpack.c.bf16 %v69_v11, %v68_v10  ;;  %v156_v17 = vld [vmem:[%s10942_s3 + $0x20] sm:$0xff]  ;;  %v157_v18 = vld [vmem:[%s10942_s3 + $0x28] sm:$0xff]  ;;  %s9068_s15 = smov 48   ;;  %s9069_s16 = smov 96   ;;  %vm2894_vm5 = vcmask 785408  }
  0x13   :  { %7717 = vmatprep.subr.bf16.mxu0 %v10956_v3  ;;  %7740 = vmatpush3.bf16.msra.mxu1 %v9188_v12  ;;  %v9197_v15 = vpack.c.bf16 %v155_v14, %v154_v13  ;;  %v70_v19 = vld [vmem:[%s10941_s2 + $0x30] sm:$0xff]  ;;  %v71_v20 = vld [vmem:[%s10941_s2 + $0x38] sm:$0xff]  ;;  %v9214_v21 = vpack.c.bf16 %v157_v18, %v156_v17  ;;  %v72_v25 = vld [vmem:[%s10941_s2 + $0x40] sm:$0xff]  ;;  %s9070_s17 = smov 80   ;;  %vm3140_vm6 = vcmask 64512   ;;  %vm5964_vm7 = vcmask 7168  }
  0x14   :  { %7741 = vmatprep.subr.bf16.mxu1 %v10956_v3  ;;  %v7724_v22 = vpack.c.bf16 %v71_v20, %v70_v19  ;;  %v158_v23 = vld [vmem:[%s10942_s3 + $0x30] sm:$0xff]  ;;  %v159_v24 = vld [vmem:[%s10942_s3 + $0x38] sm:$0xff]  ;;  %v73_v26 = vld [vmem:[%s10941_s2 + $0x48] sm:$0xff]  ;;  %s9071_s3 = smov 16  }
  0x15   :  { %v9231_v27 = vpack.c.bf16 %v159_v24, %v158_v23  ;;  %v7727_v28 = vpack.c.bf16 %v73_v26, %v72_v25  ;;  %v235_v29 = vld [vmem:[%s10943_s4] sm:$0xff]  ;;  %v236_v30 = vld [vmem:[%s10943_s4 + $0x8] sm:$0xff]  ;;  %v74_v31 = vld [vmem:[%s10941_s2 + $0x50] sm:$0xff] }
  0x16   :  { %7719 = vmatpush3.bf16.msra.mxu0 %v7718_v7  ;;  %v75_v32 = vld [vmem:[%s10941_s2 + $0x58] sm:$0xff]  ;;  %v9248_v33 = vpack.c.bf16 %v236_v30, %v235_v29  ;;  %v237_v35 = vld [vmem:[%s10943_s4 + $0x10] sm:$0xff]  ;;  %v76_v37 = vld [vmem:[%s10941_s2 + $0x60] sm:$0xff] }
  0x17   :  { %7720 = vmatprep.subr.bf16.mxu0 %v10956_v3  ;;  %7743 = vmatpush3.bf16.msra.mxu1 %v9197_v15  ;;  %v7730_v34 = vpack.c.bf16 %v75_v32, %v74_v31  ;;  %v238_v36 = vld [vmem:[%s10943_s4 + $0x18] sm:$0xff]  ;;  %v77_v38 = vld [vmem:[%s10941_s2 + $0x68] sm:$0xff]  ;;  %v239_v41 = vld [vmem:[%s10943_s4 + $0x20] sm:$0xff] }
  0x18   :  { %7744 = vmatprep.subr.bf16.mxu1 %v10956_v3  ;;  %v9266_v39 = vpack.c.bf16 %v238_v36, %v237_v35  ;;  %v7733_v40 = vpack.c.bf16 %v77_v38, %v76_v37  ;;  %v240_v42 = vld [vmem:[%s10943_s4 + $0x28] sm:$0xff]  ;;  %v78_v43 = vld [vmem:[%s10941_s2 + $0x70] sm:$0xff]  ;;  %v79_v44 = vld [vmem:[%s10941_s2 + $0x78] sm:$0xff] }
  0x19   :  { %v9285_v45 = vpack.c.bf16 %v240_v42, %v239_v41  ;;  %v7736_v46 = vpack.c.bf16 %v79_v44, %v78_v43  ;;  %v241_v47 = vld [vmem:[%s10943_s4 + $0x30] sm:$0xff]  ;;  %v242_v48 = vld [vmem:[%s10943_s4 + $0x38] sm:$0xff]  ;;  %v9301_v50 = vld [vmem:[%s10939_s0] sm:$0xff] }
  0x1a   :  { %7722 = vmatpush3.bf16.msra.mxu0 %v7721_v16  ;;  %v9296_v49 = vpack.c.bf16 %v242_v48, %v241_v47  ;;  %v243_v51 = vld [vmem:[%s10943_s4 + $0x40] sm:$0xff]  ;;  %v244_v52 = vld [vmem:[%s10943_s4 + $0x48] sm:$0xff]  ;;  %v245_v54 = vld [vmem:[%s10943_s4 + $0x50] sm:$0xff] }
  0x1b   :  { %7723 = vmatprep.subr.bf16.mxu0 %v10956_v3  ;;  %7746 = vmatpush3.bf16.msra.mxu1 %v9214_v21  ;;  %v9316_v53 = vpack.c.bf16 %v244_v52, %v243_v51  ;;  %v246_v55 = vld [vmem:[%s10943_s4 + $0x58] sm:$0xff]  ;;  %v247_v57 = vld [vmem:[%s10943_s4 + $0x60] sm:$0xff]  ;;  %v248_v58 = vld [vmem:[%s10943_s4 + $0x68] sm:$0xff] }
  0x1c   :  { %7747 = vmatprep.subr.bf16.mxu1 %v10956_v3  ;;  %v9326_v56 = vpack.c.bf16 %v246_v55, %v245_v54  ;;  %v9336_v59 = vpack.c.bf16 %v248_v58, %v247_v57  ;;  %v249_v60 = vld [vmem:[%s10943_s4 + $0x70] sm:$0xff]  ;;  %v250_v61 = vld [vmem:[%s10943_s4 + $0x78] sm:$0xff]  ;;  %v80_v1 = vld [vmem:[%s10951_s12] ss:$0 sm:$0xff]  ;;  %s60_s4 = sld [smem:[#allocation2]] }
  0x1d   :  { %v9345_v62 = vpack.c.bf16 %v250_v61, %v249_v60  ;;  %v337_v23 = vld [vmem:[%s10944_s5 + $0x8] sm:$0xff]  ;;  %v338_v24 = vld [vmem:[%s10944_s5 + $0x10] sm:$0xff]  ;;  %v339_v26 = vld [vmem:[%s10944_s5 + $0x18] sm:$0xff] }
  0x1e   :  { %7725 = vmatpush3.bf16.msra.mxu0 %v7724_v22  ;;  %v336_v22 = vld [vmem:[%s10944_s5] sm:$0xff]  ;;  %v341_v30 = vld [vmem:[%s10944_s5 + $0x28] sm:$0xff]  ;;  %v442_v61 = vld [vmem:[%s10945_s6 + $0x10] sm:$0xff] }
  0x1f   :  { %7726 = vmatprep.subr.bf16.mxu0 %v10956_v3  ;;  %7749 = vmatpush3.bf16.msra.mxu1 %v9231_v27  ;;  %v9380_v25 = vpack.c.bf16 %v337_v23, %v336_v22  ;;  %v340_v29 = vld [vmem:[%s10944_s5 + $0x20] sm:$0xff]  ;;  %v441_v60 = vld [vmem:[%s10945_s6 + $0x8] sm:$0xff] }
  0x20   :  { %7750 = vmatprep.subr.bf16.mxu1 %v10956_v3  ;;  %v9396_v31 = vpack.c.bf16 %v341_v30, %v340_v29  ;;  %v9409_v38 = vld [vmem:[%s10951_s12 + $0x1] ss:$0 sm:$0xff] }
  0x21   :  { %v440_v58 = vld [vmem:[%s10945_s6] sm:$0xff] }
  0x22   :  { %7728 = vmatpush3.bf16.msra.mxu0 %v7727_v28  ;;  %6958 = vmatmul.mubr.f32.vlgmr.msra.gmra.mrb[0].mxu1 %v10954_v6  ;;  %v9366_v9 = vstv %s60_s4  ;;  %v9386_v28 = vpack.c.bf16 %v339_v26, %v338_v24 }
  0x23   :  { %7729 = vmatprep.subr.bf16.mxu0 %v10956_v3  ;;  %7752 = vmatpush3.bf16.msra.mxu1 %v9248_v33 }
  0x24   :  { %6992 = vmatprep.mubr.msk.f32.mxu1 %vm9063_vm0, %v10954_v6  ;;  %7753 = vmatprep.subr.bf16.mxu1 %v10956_v3 }
  0x26   :  { %7731 = vmatpush3.bf16.msra.mxu0 %v7730_v34 }
  0x27   :  { %7732 = vmatprep.subr.bf16.mxu0 %v10956_v3  ;;  %7755 = vmatpush3.bf16.msra.mxu1 %v9266_v39 }
  0x28   :  { %7756 = vmatprep.subr.bf16.mxu1 %v10956_v3 }
  0x2a   :  { %7734 = vmatpush3.bf16.msra.mxu0 %v7733_v40 }
  0x2b   :  { %7735 = vmatprep.subr.bf16.mxu0 %v10956_v3  ;;  %7758 = vmatpush3.bf16.msra.mxu1 %v9285_v45 }
  0x2c   :  { %7759 = vmatprep.subr.bf16.mxu1 %v10956_v3 }
  0x2e   :  { %7737 = vmatpush3.bf16.msra.mxu0 %v7736_v46 }
  0x2f   :  { %7774 = vmatprep.subr.bf16.mxu0 %v10956_v3  ;;  %7761 = vmatpush3.bf16.msra.mxu1 %v9296_v49 }
  0x30   :  { %7762 = vmatprep.subr.bf16.mxu1 %v10956_v3 }
  0x31   :  { %6939 = vmatmul.mubr.f32.vlgmr.msra.gmra.mrb[0].mxu0 %v9301_v50 }
  0x32   :  { %7007 = vmatprep.mubr.msk.f32.mxu0 %vm9063_vm0, %v10954_v6  ;;  %7776 = vmatpush3.bf16.msra.mxu0 %v9380_v25 }
  0x33   :  { %7764 = vmatpush3.bf16.msra.mxu1 %v9316_v53  ;;  %7777 = vmatprep.subr.bf16.mxu0 %v10956_v3 }
  0x34   :  { %7765 = vmatprep.subr.bf16.mxu1 %v10956_v3 }
  0x36   :  { %7779 = vmatpush3.bf16.msra.mxu0 %v9386_v28 }
  0x37   :  { %7767 = vmatpush3.bf16.msra.mxu1 %v9326_v56  ;;  %7780 = vmatprep.subr.bf16.mxu0 %v10956_v3 }
  0x38   :  { %7768 = vmatprep.subr.bf16.mxu1 %v10956_v3 }
  0x3a   :  { %7782 = vmatpush3.bf16.msra.mxu0 %v9396_v31 }
  0x3b   :  { %7770 = vmatpush3.bf16.msra.mxu1 %v9336_v59  ;;  %7783 = vmatprep.subr.bf16.mxu0 %v10956_v3 }
  0x3c   :  { %7771 = vmatprep.subr.bf16.mxu1 %v10956_v3 }
  0x3f   :  { %7773 = vmatpush3.bf16.msra.mxu1 %v9345_v62 }
  0x40   :  { %7789 = vmatprep.subr.bf16.mxu1 %v10956_v3 }
  0xf5   :  { %v230_v63 = vpop.f32.mrb[0].mxu1 }
  0xf6   :  { %v6959_v0 = vpop.f32.mrb[1].mxu1 }
  0xf7   :  { %v443_v0 = vld [vmem:[%s10945_s6 + $0x18] sm:$0xff]  ;;  %s9067_s6 = smov 112  }
 0x104   :  { %v147_v2 = vpop.f32.mrb[0].mxu0 }
 0x105   :  { %v9353_v4 = vadd.f32 %v147_v2, %v80_v1  ;;  %v6940_v5 = vpop.f32.mrb[1].mxu0  ;;  %v9432_v1 = vpack.c.bf16 %v443_v0, %v442_v61 }
 0x107   :  { %v231_v7 = vadd.f32 %v230_v63, %v9353_v4  ;;  %v9426_v63 = vpack.c.bf16 %v441_v60, %v440_v58 }
 0x109   :  { %8816 = vtanh.f32 %v231_v7 }
 0x113   :  { %v8817_v8 = vpop.eup %8816 }
 0x114   :  { %6993 = vmatmul.mubr.f32.vlgmr.msra.gmra.mrb[2].mxu1 %v8817_v8 }
 0x115   :  { %7791 = vmatpush3.bf16.msra.mxu1 %v9188_v12  ;;  %7037 = vmatprep.mubr.msk.f32.mxu1 %vm9063_vm0, %v10954_v6 }
 0x116   :  { %7792 = vmatprep.subr.bf16.mxu1 %v10956_v3 }
 0x119   :  { %7794 = vmatpush3.bf16.msra.mxu1 %v9197_v15 }
 0x11a   :  { %7795 = vmatprep.subr.bf16.mxu1 %v10956_v3 }
 0x11d   :  { %7797 = vmatpush3.bf16.msra.mxu1 %v9214_v21 }
 0x11e   :  { %7798 = vmatprep.subr.bf16.mxu1 %v10956_v3 }
 0x121   :  { %7800 = vmatpush3.bf16.msra.mxu1 %v9231_v27 }
 0x122   :  { %7825 = vmatprep.subr.bf16.mxu1 %v10956_v3 }
 0x1e7   :  { %v318_v10 = vpop.f32.mrb[2].mxu1 }
 0x1e8   :  { %v319_v11 = vadd.f32 %v318_v10, %v9366_v9  ;;  %v6994_v13 = vpop.f32.mrb[3].mxu1 }
 0x1ea   :  { %v323_v14 = vsel %vm322_vm1, %v319_v11, -inf }
 0x1eb   :  { %324 = vmax.xlane.f32.xlu0 %v323_v14 }
 0x278   :  { %v325_v16 = vpop.xlane.xlu0 %324 }
 0x279   :  { %v326_v17 = vsub.f32 %v319_v11, %v325_v16 }
 0x27b   :  { %v327_v18 = vmul.f32 1.442695, %v326_v17 }
 0x27d   :  { %8818 = vpow2.f32 %v327_v18 }
 0x287   :  { %v8819_v19 = vpop.eup %8818 }
 0x288   :  { %v329_v20 = vsel %vm322_vm1, %v8819_v19, 0.0 }
 0x289   :  { %330 = vadd.xlane.f32.xlu0 %v329_v20 }
 0x316   :  { %v331_v32 = vpop.xlane.xlu0 %330 }
 0x317   :  { %8820 = vrcp.f32 %v331_v32 }
 0x321   :  { %v8821_v34 = vpop.eup %8820 }
 0x322   :  { %v333_v35 = vmul.f32 %v8821_v34, %v8819_v19 }
 0x324   :  { %v334_v36 = vmul.f32 %v333_v35, %v9301_v50 }
 0x326   :  { %v335_v37 = vsel %vm322_vm1, %v334_v36, 0.0 }
 0x327   :  { %7008 = vmatmul.mubr.msk.f32.vlgmr.msra.gmra.mrb[2].mxu0 %vm342_vm2, %v335_v37 }
 0x328   :  { %7018 = vmatprep.mubr.msk.f32.mxu0 %vm9063_vm0, %v10954_v6  ;;  %7785 = vmatpush3.bf16.msra.mxu0 %v9426_v63 }
 0x329   :  { %7786 = vmatprep.subr.bf16.mxu0 %v10956_v3 }
 0x32c   :  { %7788 = vmatpush3.bf16.msra.mxu0 %v9432_v1 }
 0x32d   :  { %7801 = vmatprep.subr.bf16.mxu0 %v10956_v3 }
 0x3fa   :  { %v412_v40 = vpop.f32.mrb[2].mxu0 }
 0x3fb   :  { %v413_v41 = vadd.f32 %v412_v40, %v9409_v38  ;;  %v7009_v42 = vpop.f32.mrb[3].mxu0 }
 0x3fd   :  { %8822 = vtanh.f32 %v413_v41  ;;  %v5974_v44 = vmul.f32 -1.442695, %v413_v41 }
 0x3ff   :  { %8824 = vpow2.f32 %v5974_v44 }
 0x407   :  { %v8823_v43 = vpop.eup %8822 }
 0x408   :  { %425 = vrot.lane.b32.xlu1 %v8823_v43, %s9065_s23 }
 0x409   :  { %v8825_v46 = vpop.eup %8824 }
 0x40a   :  { %v419_v47 = vadd.f32 1.0, %v8825_v46 }
 0x40c   :  { %8826 = vrcp.f32 %v419_v47 }
 0x416   :  { %v8827_v48 = vpop.eup %8826 }
 0x417   :  { %v423_v54 = vmul.f32 0.0, %v8827_v48 }
 0x47a   :  { %v426_v51 = vpop.permute.xlu1 %425 }
 0x47b   :  { %v428_v52 = vmul.f32 %v8827_v48, %v426_v51 }
 0x47d   :  { %430 = vrot.lane.b32.xlu1 %v428_v52, %s9066_s24 }
 0x4ef   :  { %v431_v55 = vpop.permute.xlu1 %430 }
 0x4f0   :  { %v9414_v57 = vadd.f32 %v431_v55, %v423_v54 }
 0x4f2   :  { %8828 = vtanh.f32 %v9414_v57 }
 0x4fc   :  { %v8829_v2 = vpop.eup %8828 }
 0x4fd   :  { %436 = vrot.lane.b32.xlu0 %v8829_v2, %s9065_s23 }
 0x56f   :  { %v437_v5 = vpop.permute.xlu0 %436 }
 0x570   :  { %v9438_v7 = vmul.f32 %v8827_v48, %v437_v5 }
 0x572   :  { %445 = vrot.lane.b32.xlu1 %v9438_v7, %s9066_s24 }
 0x5e4   :  { %v9442_v8 = vpop.permute.xlu1 %445 }
 0x5e5   :  { %7019 = vmatmul.mubr.msk.f32.vlgmr.msra.gmra.mrb[4].mxu0 %vm447_vm3, %v9442_v8  ;;  %v521_v10 = vsel %vm447_vm3, %v9442_v8, %v9414_v57 }
 0x5e6   :  { %7038 = vmatmul.mubr.msk.f32.vlgmr.msra.gmra.mrb[4].mxu1 %vm160_vm4, %v521_v10  ;;  %7803 = vmatpush3.bf16.msra.mxu0 %v9248_v33 }
 0x5e7   :  { %7804 = vmatprep.subr.bf16.mxu0 %v10956_v3  ;;  %7072 = vmatprep.mubr.msk.f32.mxu0 %vm9063_vm0, %v10954_v6 }
 0x5e8   :  { %7827 = vmatpush3.bf16.msra.mxu1 %v9380_v25  ;;  %7087 = vmatprep.mubr.msk.f32.mxu1 %vm9063_vm0, %v10954_v6 }
 0x5e9   :  { %7828 = vmatprep.subr.bf16.mxu1 %v10956_v3 }
 0x5ea   :  { %7806 = vmatpush3.bf16.msra.mxu0 %v9266_v39 }
 0x5eb   :  { %7807 = vmatprep.subr.bf16.mxu0 %v10956_v3 }
 0x5ec   :  { %7830 = vmatpush3.bf16.msra.mxu1 %v9386_v28 }
 0x5ed   :  { %7831 = vmatprep.subr.bf16.mxu1 %v10956_v3 }
 0x5ee   :  { %7809 = vmatpush3.bf16.msra.mxu0 %v9285_v45 }
 0x5ef   :  { %7810 = vmatprep.subr.bf16.mxu0 %v10956_v3 }
 0x5f0   :  { %7833 = vmatpush3.bf16.msra.mxu1 %v9396_v31 }
 0x5f1   :  { %7834 = vmatprep.subr.bf16.mxu1 %v10956_v3 }
 0x5f2   :  { %7812 = vmatpush3.bf16.msra.mxu0 %v9296_v49 }
 0x5f3   :  { %7813 = vmatprep.subr.bf16.mxu0 %v10956_v3 }
 0x5f6   :  { %7815 = vmatpush3.bf16.msra.mxu0 %v9316_v53 }
 0x5f7   :  { %7816 = vmatprep.subr.bf16.mxu0 %v10956_v3 }
 0x5fa   :  { %7818 = vmatpush3.bf16.msra.mxu0 %v9326_v56 }
 0x5fb   :  { %7819 = vmatprep.subr.bf16.mxu0 %v10956_v3 }
 0x5fe   :  { %7821 = vmatpush3.bf16.msra.mxu0 %v9336_v59 }
 0x5ff   :  { %7822 = vmatprep.subr.bf16.mxu0 %v10956_v3 }
 0x602   :  { %7824 = vmatpush3.bf16.msra.mxu0 %v9345_v62 }
 0x603   :  { %7840 = vmatprep.subr.bf16.mxu0 %v10956_v3 }
 0x6b8   :  { %v9476_v11 = vpop.f32.mrb[4].mxu0 }
 0x6b9   :  { %v7020_v13 = vpop.f32.mrb[5].mxu0  ;;  %v591_v14 = vpop.f32.mrb[4].mxu1 }
 0x6ba   :  { %v592_v16 = vadd.f32 %v591_v14, %v9353_v4  ;;  %v7039_v17 = vpop.f32.mrb[5].mxu1 }
 0x6bc   :  { %8830 = vtanh.f32 %v592_v16 }
 0x6c6   :  { %v8831_v18 = vpop.eup %8830 }
 0x6c7   :  { %7073 = vmatmul.mubr.f32.vlgmr.msra.gmra.mrb[6].mxu0 %v8831_v18 }
 0x6c8   :  { %7842 = vmatpush3.bf16.msra.mxu0 %v9188_v12  ;;  %7117 = vmatprep.mubr.msk.f32.mxu0 %vm9063_vm0, %v10954_v6 }
 0x6c9   :  { %7843 = vmatprep.subr.bf16.mxu0 %v10956_v3 }
 0x6cc   :  { %7845 = vmatpush3.bf16.msra.mxu0 %v9197_v15 }
 0x6cd   :  { %7846 = vmatprep.subr.bf16.mxu0 %v10956_v3 }
 0x6d0   :  { %7848 = vmatpush3.bf16.msra.mxu0 %v9214_v21 }
 0x6d1   :  { %7849 = vmatprep.subr.bf16.mxu0 %v10956_v3 }
 0x6d4   :  { %7851 = vmatpush3.bf16.msra.mxu0 %v9231_v27 }
 0x6d5   :  { %7876 = vmatprep.subr.bf16.mxu0 %v10956_v3 }
 0x79a   :  { %v662_v19 = vpop.f32.mrb[6].mxu0 }
 0x79b   :  { %v663_v20 = vadd.f32 %v662_v19, %v9366_v9  ;;  %v7074_v22 = vpop.f32.mrb[7].mxu0 }
 0x79d   :  { %v666_v23 = vsel %vm322_vm1, %v663_v20, -inf }
 0x79e   :  { %667 = vmax.xlane.f32.xlu1 %v666_v23 }
 0x7af   :  { %678 = vrot.lane.b32.xlu1 %v9301_v50, %s9067_s6 }
 0x82b   :  { %v668_v24 = vpop.xlane.xlu1 %667 }
 0x82c   :  { %v669_v26 = vsub.f32 %v663_v20, %v668_v24 }
 0x82e   :  { %v670_v29 = vmul.f32 1.442695, %v669_v26 }
 0x82f   :  { %v679_v36 = vpop.permute.xlu1 %678 }
 0x830   :  { %8832 = vpow2.f32 %v670_v29 }
 0x83a   :  { %v8833_v30 = vpop.eup %8832 }
 0x83b   :  { %v672_v32 = vsel %vm322_vm1, %v8833_v30, 0.0 }
 0x83c   :  { %673 = vadd.xlane.f32.xlu0 %v672_v32 }
 0x852   :  { %682 = vrot.lane.b32.xlu0 %v9438_v7, %s9068_s15 }
 0x8c9   :  { %v674_v34 = vpop.xlane.xlu0 %673 }
 0x8ca   :  { %8834 = vrcp.f32 %v674_v34 }
 0x8cd   :  { %v683_v41 = vpop.permute.xlu0 %682 }
 0x8d4   :  { %v8835_v35 = vpop.eup %8834 }
 0x8d5   :  { %v676_v37 = vmul.f32 %v8835_v35, %v8833_v30 }
 0x8d7   :  { %v681_v40 = vmul.f32 %v679_v36, %v676_v37 }
 0x8d9   :  { %v685_v42 = vsel %vm322_vm1, %v681_v40, %v683_v41 }
 0x8da   :  { %7088 = vmatmul.mubr.msk.f32.vlgmr.msra.gmra.mrb[6].mxu1 %vm342_vm2, %v685_v42 }
 0x8db   :  { %7836 = vmatpush3.bf16.msra.mxu1 %v9426_v63  ;;  %7098 = vmatprep.mubr.msk.f32.mxu1 %vm9063_vm0, %v10954_v6 }
 0x8dc   :  { %7837 = vmatprep.subr.bf16.mxu1 %v10956_v3 }
 0x8df   :  { %7839 = vmatpush3.bf16.msra.mxu1 %v9432_v1 }
 0x8e0   :  { %7852 = vmatprep.subr.bf16.mxu1 %v10956_v3 }
 0x9ad   :  { %v755_v43 = vpop.f32.mrb[6].mxu1 }
 0x9ae   :  { %v756_v44 = vadd.f32 %v755_v43, %v9409_v38  ;;  %v7089_v46 = vpop.f32.mrb[7].mxu1 }
 0x9b0   :  { %8836 = vtanh.f32 %v756_v44  ;;  %v5978_v48 = vmul.f32 -1.442695, %v756_v44 }
 0x9b2   :  { %8838 = vpow2.f32 %v5978_v48 }
 0x9ba   :  { %v8837_v47 = vpop.eup %8836 }
 0x9bb   :  { %768 = vrot.lane.b32.xlu1 %v8837_v47, %s9065_s23 }
 0x9bc   :  { %v8839_v51 = vpop.eup %8838 }
 0x9bd   :  { %v762_v52 = vadd.f32 1.0, %v8839_v51 }
 0x9bf   :  { %8840 = vrcp.f32 %v762_v52 }
 0x9c9   :  { %v8841_v54 = vpop.eup %8840 }
 0x9ca   :  { %v766_v60 = vmul.f32 %v8841_v54, %v9414_v57 }
 0xa2d   :  { %v769_v55 = vpop.permute.xlu1 %768 }
 0xa2e   :  { %v771_v58 = vmul.f32 %v8841_v54, %v769_v55 }
 0xa30   :  { %773 = vrot.lane.b32.xlu1 %v771_v58, %s9066_s24 }
 0xaa2   :  { %v774_v61 = vpop.permute.xlu1 %773 }
 0xaa3   :  { %v9507_v0 = vadd.f32 %v774_v61, %v766_v60 }
 0xaa5   :  { %8842 = vtanh.f32 %v9507_v0 }
 0xaaf   :  { %v8843_v2 = vpop.eup %8842 }
 0xab0   :  { %779 = vrot.lane.b32.xlu1 %v8843_v2, %s9065_s23 }
 0xb22   :  { %v780_v5 = vpop.permute.xlu1 %779 }
 0xb23   :  { %v9511_v7 = vmul.f32 %v8841_v54, %v780_v5 }
 0xb25   :  { %784 = vrot.lane.b32.xlu1 %v9511_v7, %s9066_s24 }
 0xb97   :  { %v785_v10 = vpop.permute.xlu1 %784 }
 0xb98   :  { %v859_v13 = vsel %vm447_vm3, %v785_v10, %v9507_v0  ;;  %7099 = vmatmul.mubr.msk.f32.vlgmr.msra.gmra.mrb[8].mxu1 %vm447_vm3, %v785_v10 }
 0xb99   :  { %7118 = vmatmul.mubr.msk.f32.vlgmr.msra.gmra.mrb[8].mxu0 %vm160_vm4, %v859_v13  ;;  %7854 = vmatpush3.bf16.msra.mxu1 %v9248_v33 }
 0xb9a   :  { %7855 = vmatprep.subr.bf16.mxu1 %v10956_v3  ;;  %7152 = vmatprep.mubr.msk.f32.mxu1 %vm9063_vm0, %v10954_v6 }
 0xb9b   :  { %7878 = vmatpush3.bf16.msra.mxu0 %v9380_v25  ;;  %7167 = vmatprep.mubr.msk.f32.mxu0 %vm9063_vm0, %v10954_v6 }
 0xb9c   :  { %7879 = vmatprep.subr.bf16.mxu0 %v10956_v3 }
 0xb9d   :  { %7857 = vmatpush3.bf16.msra.mxu1 %v9266_v39 }
 0xb9e   :  { %7858 = vmatprep.subr.bf16.mxu1 %v10956_v3 }
 0xb9f   :  { %7881 = vmatpush3.bf16.msra.mxu0 %v9386_v28 }
 0xba0   :  { %7882 = vmatprep.subr.bf16.mxu0 %v10956_v3 }
 0xba1   :  { %7860 = vmatpush3.bf16.msra.mxu1 %v9285_v45 }
 0xba2   :  { %7861 = vmatprep.subr.bf16.mxu1 %v10956_v3 }
 0xba3   :  { %7884 = vmatpush3.bf16.msra.mxu0 %v9396_v31 }
 0xba4   :  { %7885 = vmatprep.subr.bf16.mxu0 %v10956_v3 }
 0xba5   :  { %7863 = vmatpush3.bf16.msra.mxu1 %v9296_v49 }
 0xba6   :  { %7864 = vmatprep.subr.bf16.mxu1 %v10956_v3 }
 0xba9   :  { %7866 = vmatpush3.bf16.msra.mxu1 %v9316_v53 }
 0xbaa   :  { %7867 = vmatprep.subr.bf16.mxu1 %v10956_v3 }
 0xbad   :  { %7869 = vmatpush3.bf16.msra.mxu1 %v9326_v56 }
 0xbae   :  { %7870 = vmatprep.subr.bf16.mxu1 %v10956_v3 }
 0xbb1   :  { %7872 = vmatpush3.bf16.msra.mxu1 %v9336_v59 }
 0xbb2   :  { %7873 = vmatprep.subr.bf16.mxu1 %v10956_v3 }
 0xbb5   :  { %7875 = vmatpush3.bf16.msra.mxu1 %v9345_v62 }
 0xbb6   :  { %7891 = vmatprep.subr.bf16.mxu1 %v10956_v3 }
 0xc6b   :  { %v9545_v57 = vpop.f32.mrb[8].mxu1 }
 0xc6c   :  { %v7100_v14 = vpop.f32.mrb[9].mxu1  ;;  %v929_v16 = vpop.f32.mrb[8].mxu0 }
 0xc6d   :  { %v930_v17 = vadd.f32 %v929_v16, %v9353_v4  ;;  %v7119_v18 = vpop.f32.mrb[9].mxu0 }
 0xc6f   :  { %8844 = vtanh.f32 %v930_v17 }
 0xc79   :  { %v8845_v19 = vpop.eup %8844 }
 0xc7a   :  { %7153 = vmatmul.mubr.f32.vlgmr.msra.gmra.mrb[10].mxu1 %v8845_v19 }
 0xc7b   :  { %7893 = vmatpush3.bf16.msra.mxu1 %v9188_v12  ;;  %7197 = vmatprep.mubr.msk.f32.mxu1 %vm9063_vm0, %v10954_v6 }
 0xc7c   :  { %7894 = vmatprep.subr.bf16.mxu1 %v10956_v3 }
 0xc7f   :  { %7896 = vmatpush3.bf16.msra.mxu1 %v9197_v15 }
 0xc80   :  { %7897 = vmatprep.subr.bf16.mxu1 %v10956_v3 }
 0xc83   :  { %7899 = vmatpush3.bf16.msra.mxu1 %v9214_v21 }
 0xc84   :  { %7900 = vmatprep.subr.bf16.mxu1 %v10956_v3 }
 0xc87   :  { %7902 = vmatpush3.bf16.msra.mxu1 %v9231_v27 }
 0xc88   :  { %7927 = vmatprep.subr.bf16.mxu1 %v10956_v3 }
 0xd4d   :  { %v1000_v20 = vpop.f32.mrb[10].mxu1 }
 0xd4e   :  { %v1001_v22 = vadd.f32 %v1000_v20, %v9366_v9  ;;  %v7154_v23 = vpop.f32.mrb[11].mxu1 }
 0xd50   :  { %v1004_v24 = vsel %vm322_vm1, %v1001_v22, -inf }
 0xd51   :  { %1005 = vmax.xlane.f32.xlu1 %v1004_v24 }
 0xd62   :  { %1019 = vrot.lane.b32.xlu1 %v9511_v7, %s9068_s15 }
 0xdde   :  { %v1006_v26 = vpop.xlane.xlu1 %1005 }
 0xddf   :  { %v1007_v29 = vsub.f32 %v1001_v22, %v1006_v26 }
 0xde1   :  { %v1008_v30 = vmul.f32 1.442695, %v1007_v29 }
 0xde2   :  { %v1020_v42 = vpop.permute.xlu1 %1019 }
 0xde3   :  { %8846 = vpow2.f32 %v1008_v30 }
 0xded   :  { %v8847_v32 = vpop.eup %8846 }
 0xdee   :  { %v1010_v34 = vsel %vm322_vm1, %v8847_v32, 0.0 }
 0xdef   :  { %1011 = vadd.xlane.f32.xlu0 %v1010_v34 }
 0xe05   :  { %1015 = vrot.lane.b32.xlu0 %v9301_v50, %s9069_s16 }
 0xe7c   :  { %v1012_v35 = vpop.xlane.xlu0 %1011 }
 0xe7d   :  { %8848 = vrcp.f32 %v1012_v35 }
 0xe80   :  { %v1016_v37 = vpop.permute.xlu0 %1015 }
 0xe87   :  { %v8849_v36 = vpop.eup %8848 }
 0xe88   :  { %v1014_v40 = vmul.f32 %v8849_v36, %v8847_v32 }
 0xe8a   :  { %v1018_v41 = vmul.f32 %v1016_v37, %v1014_v40 }
 0xe8c   :  { %v1022_v43 = vsel %vm322_vm1, %v1018_v41, %v1020_v42 }
 0xe8d   :  { %7168 = vmatmul.mubr.msk.f32.vlgmr.msra.gmra.mrb[10].mxu0 %vm342_vm2, %v1022_v43 }
 0xe8e   :  { %7887 = vmatpush3.bf16.msra.mxu0 %v9426_v63  ;;  %7178 = vmatprep.mubr.msk.f32.mxu0 %vm9063_vm0, %v10954_v6 }
 0xe8f   :  { %7888 = vmatprep.subr.bf16.mxu0 %v10956_v3 }
 0xe92   :  { %7890 = vmatpush3.bf16.msra.mxu0 %v9432_v1 }
 0xe93   :  { %7903 = vmatprep.subr.bf16.mxu0 %v10956_v3 }
 0xf60   :  { %v1092_v44 = vpop.f32.mrb[10].mxu0 }
 0xf61   :  { %v1093_v46 = vadd.f32 %v1092_v44, %v9409_v38  ;;  %v7169_v47 = vpop.f32.mrb[11].mxu0 }
 0xf63   :  { %8850 = vtanh.f32 %v1093_v46  ;;  %v5982_v51 = vmul.f32 -1.442695, %v1093_v46 }
 0xf65   :  { %8852 = vpow2.f32 %v5982_v51 }
 0xf6d   :  { %v8851_v48 = vpop.eup %8850 }
 0xf6e   :  { %1105 = vrot.lane.b32.xlu1 %v8851_v48, %s9065_s23 }
 0xf6f   :  { %v8853_v52 = vpop.eup %8852 }
 0xf70   :  { %v1099_v54 = vadd.f32 1.0, %v8853_v52 }
 0xf72   :  { %8854 = vrcp.f32 %v1099_v54 }
 0xf7c   :  { %v8855_v55 = vpop.eup %8854 }
 0xf7d   :  { %v1103_v61 = vmul.f32 %v8855_v55, %v9507_v0 }
 0xfe0   :  { %v1106_v58 = vpop.permute.xlu1 %1105 }
 0xfe1   :  { %v1108_v60 = vmul.f32 %v8855_v55, %v1106_v58 }
 0xfe3   :  { %1110 = vrot.lane.b32.xlu0 %v1108_v60, %s9066_s24 }
0x1055   :  { %v1111_v2 = vpop.permute.xlu0 %1110 }
0x1056   :  { %v9577_v5 = vadd.f32 %v1111_v2, %v1103_v61 }
0x1058   :  { %8856 = vtanh.f32 %v9577_v5 }
0x1062   :  { %v8857_v10 = vpop.eup %8856 }
0x1063   :  { %1116 = vrot.lane.b32.xlu1 %v8857_v10, %s9065_s23 }
0x10d5   :  { %v1117_v13 = vpop.permute.xlu1 %1116 }
0x10d6   :  { %v9581_v14 = vmul.f32 %v8855_v55, %v1117_v13 }
0x10d8   :  { %1121 = vrot.lane.b32.xlu0 %v9581_v14, %s9066_s24 }
0x114a   :  { %v1122_v16 = vpop.permute.xlu0 %1121 }
0x114b   :  { %v1196_v17 = vsel %vm447_vm3, %v1122_v16, %v9577_v5  ;;  %7179 = vmatmul.mubr.msk.f32.vlgmr.msra.gmra.mrb[12].mxu0 %vm447_vm3, %v1122_v16 }
0x114c   :  { %7198 = vmatmul.mubr.msk.f32.vlgmr.msra.gmra.mrb[12].mxu1 %vm160_vm4, %v1196_v17  ;;  %7905 = vmatpush3.bf16.msra.mxu0 %v9248_v33 }
0x114d   :  { %7906 = vmatprep.subr.bf16.mxu0 %v10956_v3  ;;  %7232 = vmatprep.mubr.msk.f32.mxu0 %vm9063_vm0, %v10954_v6 }
0x114e   :  { %7929 = vmatpush3.bf16.msra.mxu1 %v9380_v25  ;;  %7247 = vmatprep.mubr.msk.f32.mxu1 %vm9063_vm0, %v10954_v6 }
0x114f   :  { %7930 = vmatprep.subr.bf16.mxu1 %v10956_v3 }
0x1150   :  { %7908 = vmatpush3.bf16.msra.mxu0 %v9266_v39 }
0x1151   :  { %7909 = vmatprep.subr.bf16.mxu0 %v10956_v3 }
0x1152   :  { %7932 = vmatpush3.bf16.msra.mxu1 %v9386_v28 }
0x1153   :  { %7933 = vmatprep.subr.bf16.mxu1 %v10956_v3 }
0x1154   :  { %7911 = vmatpush3.bf16.msra.mxu0 %v9285_v45 }
0x1155   :  { %7912 = vmatprep.subr.bf16.mxu0 %v10956_v3 }
0x1156   :  { %7935 = vmatpush3.bf16.msra.mxu1 %v9396_v31 }
0x1157   :  { %7936 = vmatprep.subr.bf16.mxu1 %v10956_v3 }
0x1158   :  { %7914 = vmatpush3.bf16.msra.mxu0 %v9296_v49 }
0x1159   :  { %7915 = vmatprep.subr.bf16.mxu0 %v10956_v3 }
0x115c   :  { %7917 = vmatpush3.bf16.msra.mxu0 %v9316_v53 }
0x115d   :  { %7918 = vmatprep.subr.bf16.mxu0 %v10956_v3 }
0x1160   :  { %7920 = vmatpush3.bf16.msra.mxu0 %v9326_v56 }
0x1161   :  { %7921 = vmatprep.subr.bf16.mxu0 %v10956_v3 }
0x1164   :  { %7923 = vmatpush3.bf16.msra.mxu0 %v9336_v59 }
0x1165   :  { %7924 = vmatprep.subr.bf16.mxu0 %v10956_v3 }
0x1168   :  { %7926 = vmatpush3.bf16.msra.mxu0 %v9345_v62 }
0x1169   :  { %7942 = vmatprep.subr.bf16.mxu0 %v10956_v3 }
0x121e   :  { %v9615_v0 = vpop.f32.mrb[12].mxu0 }
0x121f   :  { %v7180_v18 = vpop.f32.mrb[13].mxu0  ;;  %v1266_v19 = vpop.f32.mrb[12].mxu1 }
0x1220   :  { %v1267_v20 = vadd.f32 %v1266_v19, %v9353_v4  ;;  %v7199_v22 = vpop.f32.mrb[13].mxu1 }
0x1222   :  { %8858 = vtanh.f32 %v1267_v20 }
0x122c   :  { %v8859_v23 = vpop.eup %8858 }
0x122d   :  { %7233 = vmatmul.mubr.f32.vlgmr.msra.gmra.mrb[14].mxu0 %v8859_v23 }
0x122e   :  { %7944 = vmatpush3.bf16.msra.mxu0 %v9188_v12  ;;  %7277 = vmatprep.mubr.msk.f32.mxu0 %vm9063_vm0, %v10954_v6 }
0x122f   :  { %7945 = vmatprep.subr.bf16.mxu0 %v10956_v3 }
0x1232   :  { %7947 = vmatpush3.bf16.msra.mxu0 %v9197_v15 }
0x1233   :  { %7948 = vmatprep.subr.bf16.mxu0 %v10956_v3 }
0x1236   :  { %7950 = vmatpush3.bf16.msra.mxu0 %v9214_v21 }
0x1237   :  { %7951 = vmatprep.subr.bf16.mxu0 %v10956_v3 }
0x123a   :  { %7953 = vmatpush3.bf16.msra.mxu0 %v9231_v27 }
0x123b   :  { %7978 = vmatprep.subr.bf16.mxu0 %v10956_v3 }
0x1300   :  { %v1337_v24 = vpop.f32.mrb[14].mxu0 }
0x1301   :  { %v1338_v26 = vadd.f32 %v1337_v24, %v9366_v9  ;;  %v7234_v29 = vpop.f32.mrb[15].mxu0 }
0x1303   :  { %v1341_v30 = vsel %vm322_vm1, %v1338_v26, -inf }
0x1304   :  { %1342 = vmax.xlane.f32.xlu1 %v1341_v30 }
0x1315   :  { %1356 = vrot.lane.b32.xlu1 %v9581_v14, %s9068_s15 }
0x1391   :  { %v1343_v32 = vpop.xlane.xlu1 %1342 }
0x1392   :  { %v1344_v34 = vsub.f32 %v1338_v26, %v1343_v32 }
0x1394   :  { %v1345_v35 = vmul.f32 1.442695, %v1344_v34 }
0x1395   :  { %v1357_v46 = vpop.permute.xlu1 %1356 }
0x1396   :  { %8860 = vpow2.f32 %v1345_v35 }
0x13a0   :  { %v8861_v36 = vpop.eup %8860 }
0x13a1   :  { %v1347_v37 = vsel %vm322_vm1, %v8861_v36, 0.0 }
0x13a2   :  { %1348 = vadd.xlane.f32.xlu0 %v1347_v37 }
0x13b8   :  { %1352 = vrot.lane.b32.xlu0 %v9301_v50, %s9070_s17 }
0x142f   :  { %v1349_v40 = vpop.xlane.xlu0 %1348 }
0x1430   :  { %8862 = vrcp.f32 %v1349_v40 }
0x1433   :  { %v1353_v42 = vpop.permute.xlu0 %1352 }
0x143a   :  { %v8863_v41 = vpop.eup %8862 }
0x143b   :  { %v1351_v43 = vmul.f32 %v8863_v41, %v8861_v36 }
0x143d   :  { %v1355_v44 = vmul.f32 %v1353_v42, %v1351_v43 }
0x143f   :  { %v1359_v47 = vsel %vm322_vm1, %v1355_v44, %v1357_v46 }
0x1440   :  { %7248 = vmatmul.mubr.msk.f32.vlgmr.msra.gmra.mrb[14].mxu1 %vm342_vm2, %v1359_v47 }
0x1441   :  { %7938 = vmatpush3.bf16.msra.mxu1 %v9426_v63  ;;  %7258 = vmatprep.mubr.msk.f32.mxu1 %vm9063_vm0, %v10954_v6 }
0x1442   :  { %7939 = vmatprep.subr.bf16.mxu1 %v10956_v3 }
0x1445   :  { %7941 = vmatpush3.bf16.msra.mxu1 %v9432_v1 }
0x1446   :  { %7954 = vmatprep.subr.bf16.mxu1 %v10956_v3 }
0x1513   :  { %v1429_v48 = vpop.f32.mrb[14].mxu1 }
0x1514   :  { %v1430_v51 = vadd.f32 %v1429_v48, %v9409_v38  ;;  %v7249_v52 = vpop.f32.mrb[15].mxu1 }
0x1516   :  { %8864 = vtanh.f32 %v1430_v51  ;;  %v5986_v55 = vmul.f32 -1.442695, %v1430_v51 }
0x1518   :  { %8866 = vpow2.f32 %v5986_v55 }
0x1520   :  { %v8865_v54 = vpop.eup %8864 }
0x1521   :  { %1442 = vrot.lane.b32.xlu1 %v8865_v54, %s9065_s23 }
0x1522   :  { %v8867_v58 = vpop.eup %8866 }
0x1523   :  { %v1436_v60 = vadd.f32 1.0, %v8867_v58 }
0x1525   :  { %8868 = vrcp.f32 %v1436_v60 }
0x152f   :  { %v8869_v61 = vpop.eup %8868 }
0x1530   :  { %v1440_v13 = vmul.f32 %v8869_v61, %v9577_v5 }
0x1593   :  { %v1443_v2 = vpop.permute.xlu1 %1442 }
0x1594   :  { %v1445_v10 = vmul.f32 %v8869_v61, %v1443_v2 }
0x1596   :  { %1447 = vrot.lane.b32.xlu0 %v1445_v10, %s9066_s24 }
0x1608   :  { %v1448_v16 = vpop.permute.xlu0 %1447 }
0x1609   :  { %v9646_v17 = vadd.f32 %v1448_v16, %v1440_v13 }
0x160b   :  { %8870 = vtanh.f32 %v9646_v17 }
0x1615   :  { %v8871_v18 = vpop.eup %8870 }
0x1616   :  { %1453 = vrot.lane.b32.xlu1 %v8871_v18, %s9065_s23 }
0x1688   :  { %v1454_v19 = vpop.permute.xlu1 %1453 }
0x1689   :  { %v9650_v20 = vmul.f32 %v8869_v61, %v1454_v19 }
0x168b   :  { %1458 = vrot.lane.b32.xlu0 %v9650_v20, %s9066_s24 }
0x16fd   :  { %v1459_v22 = vpop.permute.xlu0 %1458 }
0x16fe   :  { %v1533_v23 = vsel %vm447_vm3, %v1459_v22, %v9646_v17  ;;  %7259 = vmatmul.mubr.msk.f32.vlgmr.msra.gmra.mrb[16].mxu1 %vm447_vm3, %v1459_v22 }
0x16ff   :  { %7278 = vmatmul.mubr.msk.f32.vlgmr.msra.gmra.mrb[16].mxu0 %vm160_vm4, %v1533_v23  ;;  %7956 = vmatpush3.bf16.msra.mxu1 %v9248_v33 }
0x1700   :  { %7957 = vmatprep.subr.bf16.mxu1 %v10956_v3  ;;  %7312 = vmatprep.mubr.msk.f32.mxu1 %vm9063_vm0, %v10954_v6 }
0x1701   :  { %7980 = vmatpush3.bf16.msra.mxu0 %v9380_v25  ;;  %7327 = vmatprep.mubr.msk.f32.mxu0 %vm9063_vm0, %v10954_v6 }
0x1702   :  { %7981 = vmatprep.subr.bf16.mxu0 %v10956_v3 }
0x1703   :  { %7959 = vmatpush3.bf16.msra.mxu1 %v9266_v39 }
0x1704   :  { %7960 = vmatprep.subr.bf16.mxu1 %v10956_v3 }
0x1705   :  { %7983 = vmatpush3.bf16.msra.mxu0 %v9386_v28 }
0x1706   :  { %7984 = vmatprep.subr.bf16.mxu0 %v10956_v3 }
0x1707   :  { %7962 = vmatpush3.bf16.msra.mxu1 %v9285_v45 }
0x1708   :  { %7963 = vmatprep.subr.bf16.mxu1 %v10956_v3 }
0x1709   :  { %7986 = vmatpush3.bf16.msra.mxu0 %v9396_v31 }
0x170a   :  { %7987 = vmatprep.subr.bf16.mxu0 %v10956_v3 }
0x170b   :  { %7965 = vmatpush3.bf16.msra.mxu1 %v9296_v49 }
0x170c   :  { %7966 = vmatprep.subr.bf16.mxu1 %v10956_v3 }
0x170f   :  { %7968 = vmatpush3.bf16.msra.mxu1 %v9316_v53 }
0x1710   :  { %7969 = vmatprep.subr.bf16.mxu1 %v10956_v3 }
0x1713   :  { %7971 = vmatpush3.bf16.msra.mxu1 %v9326_v56 }
0x1714   :  { %7972 = vmatprep.subr.bf16.mxu1 %v10956_v3 }
0x1717   :  { %7974 = vmatpush3.bf16.msra.mxu1 %v9336_v59 }
0x1718   :  { %7975 = vmatprep.subr.bf16.mxu1 %v10956_v3 }
0x171b   :  { %7977 = vmatpush3.bf16.msra.mxu1 %v9345_v62 }
0x171c   :  { %7993 = vmatprep.subr.bf16.mxu1 %v10956_v3 }
0x17d1   :  { %v9684_v5 = vpop.f32.mrb[16].mxu1 }
0x17d2   :  { %v7260_v24 = vpop.f32.mrb[17].mxu1  ;;  %v1603_v26 = vpop.f32.mrb[16].mxu0 }
0x17d3   :  { %v1604_v29 = vadd.f32 %v1603_v26, %v9353_v4  ;;  %v7279_v30 = vpop.f32.mrb[17].mxu0 }
0x17d5   :  { %8872 = vtanh.f32 %v1604_v29 }
0x17df   :  { %v8873_v32 = vpop.eup %8872 }
0x17e0   :  { %7313 = vmatmul.mubr.f32.vlgmr.msra.gmra.mrb[18].mxu1 %v8873_v32 }
0x17e1   :  { %7995 = vmatpush3.bf16.msra.mxu1 %v9188_v12  ;;  %7357 = vmatprep.mubr.msk.f32.mxu1 %vm9063_vm0, %v10954_v6 }
0x17e2   :  { %7996 = vmatprep.subr.bf16.mxu1 %v10956_v3 }
0x17e5   :  { %7998 = vmatpush3.bf16.msra.mxu1 %v9197_v15 }
0x17e6   :  { %7999 = vmatprep.subr.bf16.mxu1 %v10956_v3 }
0x17e9   :  { %8001 = vmatpush3.bf16.msra.mxu1 %v9214_v21 }
0x17ea   :  { %8002 = vmatprep.subr.bf16.mxu1 %v10956_v3 }
0x17ed   :  { %8004 = vmatpush3.bf16.msra.mxu1 %v9231_v27 }
0x17ee   :  { %8029 = vmatprep.subr.bf16.mxu1 %v10956_v3 }
0x18b3   :  { %v1674_v34 = vpop.f32.mrb[18].mxu1 }
0x18b4   :  { %v1675_v35 = vadd.f32 %v1674_v34, %v9366_v9  ;;  %v7314_v36 = vpop.f32.mrb[19].mxu1 }
0x18b6   :  { %v1678_v37 = vsel %vm322_vm1, %v1675_v35, -inf }
0x18b7   :  { %1679 = vmax.xlane.f32.xlu1 %v1678_v37 }
0x18c8   :  { %1693 = vrot.lane.b32.xlu1 %v9650_v20, %s9068_s15 }
0x1944   :  { %v1680_v40 = vpop.xlane.xlu1 %1679 }
0x1945   :  { %v1681_v41 = vsub.f32 %v1675_v35, %v1680_v40 }
0x1947   :  { %v1682_v42 = vmul.f32 1.442695, %v1681_v41 }
0x1948   :  { %v1694_v54 = vpop.permute.xlu1 %1693 }
0x1949   :  { %8874 = vpow2.f32 %v1682_v42 }
0x1953   :  { %v8875_v43 = vpop.eup %8874 }
0x1954   :  { %v1684_v44 = vsel %vm322_vm1, %v8875_v43, 0.0 }
0x1955   :  { %1685 = vadd.xlane.f32.xlu0 %v1684_v44 }
0x196b   :  { %1689 = vrot.lane.b32.xlu0 %v9301_v50, %s9065_s23 }
0x19e2   :  { %v1686_v46 = vpop.xlane.xlu0 %1685 }
0x19e3   :  { %8876 = vrcp.f32 %v1686_v46 }
0x19e6   :  { %v1690_v48 = vpop.permute.xlu0 %1689 }
0x19ed   :  { %v8877_v47 = vpop.eup %8876 }
0x19ee   :  { %v1688_v51 = vmul.f32 %v8877_v47, %v8875_v43 }
0x19f0   :  { %v1692_v52 = vmul.f32 %v1690_v48, %v1688_v51 }
0x19f2   :  { %v1696_v55 = vsel %vm322_vm1, %v1692_v52, %v1694_v54 }
0x19f3   :  { %7328 = vmatmul.mubr.msk.f32.vlgmr.msra.gmra.mrb[18].mxu0 %vm342_vm2, %v1696_v55  ;;  %v9775_v55 = vld [vmem:[%s10939_s0] sm:$0xff] }
0x19f4   :  { %7989 = vmatpush3.bf16.msra.mxu0 %v9426_v63  ;;  %7338 = vmatprep.mubr.msk.f32.mxu0 %vm9063_vm0, %v10954_v6 }
0x19f5   :  { %7990 = vmatprep.subr.bf16.mxu0 %v10956_v3 }
0x19f8   :  { %7992 = vmatpush3.bf16.msra.mxu0 %v9432_v1 }
0x19f9   :  { %8005 = vmatprep.subr.bf16.mxu0 %v10956_v3 }
0x1ac6   :  { %v1766_v50 = vpop.f32.mrb[18].mxu0 }
0x1ac7   :  { %v1767_v58 = vadd.f32 %v1766_v50, %v9409_v38  ;;  %v7329_v60 = vpop.f32.mrb[19].mxu0 }
0x1ac9   :  { %8878 = vtanh.f32 %v1767_v58  ;;  %v5990_v2 = vmul.f32 -1.442695, %v1767_v58 }
0x1acb   :  { %8880 = vpow2.f32 %v5990_v2 }
0x1ad3   :  { %v8879_v61 = vpop.eup %8878 }
0x1ad4   :  { %1779 = vrot.lane.b32.xlu1 %v8879_v61, %s9065_s23 }
0x1ad5   :  { %v8881_v10 = vpop.eup %8880 }
0x1ad6   :  { %v1773_v13 = vadd.f32 1.0, %v8881_v10 }
0x1ad8   :  { %8882 = vrcp.f32 %v1773_v13 }
0x1ae2   :  { %v8883_v16 = vpop.eup %8882 }
0x1ae3   :  { %v1777_v22 = vmul.f32 %v8883_v16, %v9646_v17 }
0x1b46   :  { %v1780_v18 = vpop.permute.xlu1 %1779 }
0x1b47   :  { %v1782_v19 = vmul.f32 %v8883_v16, %v1780_v18 }
0x1b49   :  { %1784 = vrot.lane.b32.xlu0 %v1782_v19, %s9066_s24 }
0x1bbb   :  { %v1785_v23 = vpop.permute.xlu0 %1784 }
0x1bbc   :  { %v9716_v24 = vadd.f32 %v1785_v23, %v1777_v22 }
0x1bbe   :  { %8884 = vtanh.f32 %v9716_v24 }
0x1bc8   :  { %v8885_v26 = vpop.eup %8884 }
0x1bc9   :  { %1790 = vrot.lane.b32.xlu1 %v8885_v26, %s9065_s23 }
0x1c3b   :  { %v1791_v29 = vpop.permute.xlu1 %1790 }
0x1c3c   :  { %v1793_v30 = vmul.f32 %v8883_v16, %v1791_v29 }
0x1c3e   :  { %1795 = vrot.lane.b32.xlu0 %v1793_v30, %s9066_s24 }
0x1cb0   :  { %v9721_v32 = vpop.permute.xlu0 %1795 }
0x1cb1   :  { %v1870_v34 = vsel %vm447_vm3, %v9721_v32, %v9716_v24  ;;  %7339 = vmatmul.mubr.msk.f32.vlgmr.msra.gmra.mrb[20].mxu0 %vm447_vm3, %v9721_v32 }
0x1cb2   :  { %7358 = vmatmul.mubr.msk.f32.vlgmr.msra.gmra.mrb[20].mxu1 %vm160_vm4, %v1870_v34  ;;  %8007 = vmatpush3.bf16.msra.mxu0 %v9248_v33 }
0x1cb3   :  { %8008 = vmatprep.subr.bf16.mxu0 %v10956_v3  ;;  %7392 = vmatprep.mubr.msk.f32.mxu0 %vm9063_vm0, %v10954_v6 }
0x1cb4   :  { %8031 = vmatpush3.bf16.msra.mxu1 %v9380_v25  ;;  %7407 = vmatprep.mubr.msk.f32.mxu1 %vm9063_vm0, %v10954_v6 }
0x1cb5   :  { %8032 = vmatprep.subr.bf16.mxu1 %v10956_v3 }
0x1cb6   :  { %8010 = vmatpush3.bf16.msra.mxu0 %v9266_v39 }
0x1cb7   :  { %8011 = vmatprep.subr.bf16.mxu0 %v10956_v3 }
0x1cb8   :  { %8034 = vmatpush3.bf16.msra.mxu1 %v9386_v28 }
0x1cb9   :  { %8035 = vmatprep.subr.bf16.mxu1 %v10956_v3 }
0x1cba   :  { %8013 = vmatpush3.bf16.msra.mxu0 %v9285_v45 }
0x1cbb   :  { %8014 = vmatprep.subr.bf16.mxu0 %v10956_v3 }
0x1cbc   :  { %8037 = vmatpush3.bf16.msra.mxu1 %v9396_v31 }
0x1cbd   :  { %8038 = vmatprep.subr.bf16.mxu1 %v10956_v3 }
0x1cbe   :  { %8016 = vmatpush3.bf16.msra.mxu0 %v9296_v49 }
0x1cbf   :  { %8017 = vmatprep.subr.bf16.mxu0 %v10956_v3 }
0x1cc2   :  { %8019 = vmatpush3.bf16.msra.mxu0 %v9316_v53 }
0x1cc3   :  { %8020 = vmatprep.subr.bf16.mxu0 %v10956_v3 }
0x1cc6   :  { %8022 = vmatpush3.bf16.msra.mxu0 %v9326_v56 }
0x1cc7   :  { %8023 = vmatprep.subr.bf16.mxu0 %v10956_v3 }
0x1cca   :  { %8025 = vmatpush3.bf16.msra.mxu0 %v9336_v59 }
0x1ccb   :  { %8026 = vmatprep.subr.bf16.mxu0 %v10956_v3 }
0x1cce   :  { %8028 = vmatpush3.bf16.msra.mxu0 %v9345_v62 }
0x1ccf   :  { %8044 = vmatprep.subr.bf16.mxu0 %v10956_v3 }
0x1d84   :  { %v9755_v17 = vpop.f32.mrb[20].mxu0 }
0x1d85   :  { %v7340_v35 = vpop.f32.mrb[21].mxu0  ;;  %v1940_v36 = vpop.f32.mrb[20].mxu1 }
0x1d86   :  { %v1941_v37 = vadd.f32 %v1940_v36, %v9353_v4  ;;  %v7359_v40 = vpop.f32.mrb[21].mxu1 }
0x1d88   :  { %8886 = vtanh.f32 %v1941_v37 }
0x1d92   :  { %v8887_v41 = vpop.eup %8886 }
0x1d93   :  { %7393 = vmatmul.mubr.f32.vlgmr.msra.gmra.mrb[22].mxu0 %v8887_v41 }
0x1d94   :  { %8046 = vmatpush3.bf16.msra.mxu0 %v9188_v12  ;;  %7437 = vmatprep.mubr.msk.f32.mxu0 %vm9063_vm0, %v10954_v6 }
0x1d95   :  { %8047 = vmatprep.subr.bf16.mxu0 %v10956_v3 }
0x1d98   :  { %8049 = vmatpush3.bf16.msra.mxu0 %v9197_v15 }
0x1d99   :  { %8050 = vmatprep.subr.bf16.mxu0 %v10956_v3 }
0x1d9c   :  { %8052 = vmatpush3.bf16.msra.mxu0 %v9214_v21 }
0x1d9d   :  { %8053 = vmatprep.subr.bf16.mxu0 %v10956_v3 }
0x1da0   :  { %8055 = vmatpush3.bf16.msra.mxu0 %v9231_v27 }
0x1da1   :  { %8080 = vmatprep.subr.bf16.mxu0 %v10956_v3 }
0x1e66   :  { %v2011_v42 = vpop.f32.mrb[22].mxu0 }
0x1e67   :  { %v2012_v43 = vadd.f32 %v2011_v42, %v9366_v9  ;;  %v7394_v44 = vpop.f32.mrb[23].mxu0 }
0x1e69   :  { %v2015_v46 = vsel %vm322_vm1, %v2012_v43, -inf }
0x1e6a   :  { %2016 = vmax.xlane.f32.xlu1 %v2015_v46 }
0x1e7b   :  { %2030 = vrot.lane.b32.xlu1 %v1793_v30, %s9068_s15 }
0x1ef7   :  { %v2017_v47 = vpop.xlane.xlu1 %2016 }
0x1ef8   :  { %v2018_v48 = vsub.f32 %v2012_v43, %v2017_v47 }
0x1efa   :  { %v2019_v51 = vmul.f32 1.442695, %v2018_v48 }
0x1efb   :  { %v2031_v10 = vpop.permute.xlu1 %2030 }
0x1efc   :  { %8888 = vpow2.f32 %v2019_v51 }
0x1f06   :  { %v8889_v52 = vpop.eup %8888 }
0x1f07   :  { %v2021_v54 = vsel %vm322_vm1, %v8889_v52, 0.0 }
0x1f08   :  { %2022 = vadd.xlane.f32.xlu0 %v2021_v54 }
0x1f1e   :  { %2026 = vrot.lane.b32.xlu0 %v9775_v55, %s9068_s15 }
0x1f95   :  { %v2023_v50 = vpop.xlane.xlu0 %2022 }
0x1f96   :  { %8890 = vrcp.f32 %v2023_v50 }
0x1f99   :  { %v2027_v60 = vpop.permute.xlu0 %2026 }
0x1fa0   :  { %v8891_v58 = vpop.eup %8890 }
0x1fa1   :  { %v2025_v61 = vmul.f32 %v8891_v58, %v8889_v52 }
0x1fa3   :  { %v2029_v2 = vmul.f32 %v2027_v60, %v2025_v61 }
0x1fa5   :  { %v2033_v13 = vsel %vm322_vm1, %v2029_v2, %v2031_v10 }
0x1fa6   :  { %7408 = vmatmul.mubr.msk.f32.vlgmr.msra.gmra.mrb[22].mxu1 %vm342_vm2, %v2033_v13 }
0x1fa7   :  { %8040 = vmatpush3.bf16.msra.mxu1 %v9426_v63  ;;  %7418 = vmatprep.mubr.msk.f32.mxu1 %vm9063_vm0, %v10954_v6 }
0x1fa8   :  { %8041 = vmatprep.subr.bf16.mxu1 %v10956_v3 }
0x1fab   :  { %8043 = vmatpush3.bf16.msra.mxu1 %v9432_v1 }
0x1fac   :  { %8056 = vmatprep.subr.bf16.mxu1 %v10956_v3 }
0x2079   :  { %v2103_v16 = vpop.f32.mrb[22].mxu1 }
0x207a   :  { %v2104_v18 = vadd.f32 %v2103_v16, %v9409_v38  ;;  %v7409_v19 = vpop.f32.mrb[23].mxu1 }
0x207c   :  { %8892 = vtanh.f32 %v2104_v18  ;;  %v5994_v23 = vmul.f32 -1.442695, %v2104_v18 }
0x207e   :  { %8894 = vpow2.f32 %v5994_v23 }
0x2086   :  { %v8893_v22 = vpop.eup %8892 }
0x2087   :  { %2116 = vrot.lane.b32.xlu1 %v8893_v22, %s9065_s23 }
0x2088   :  { %v8895_v26 = vpop.eup %8894 }
0x2089   :  { %v2110_v29 = vadd.f32 1.0, %v8895_v26  ;;  %v9860_v26 = vld [vmem:[%s10951_s12 + $0x1] ss:$0 sm:$0xff] }
0x208b   :  { %8896 = vrcp.f32 %v2110_v29 }
0x2095   :  { %v8897_v30 = vpop.eup %8896 }
0x2096   :  { %v2114_v36 = vmul.f32 %v8897_v30, %v9716_v24 }
0x20f9   :  { %v2117_v34 = vpop.permute.xlu1 %2116 }
0x20fa   :  { %v2119_v35 = vmul.f32 %v8897_v30, %v2117_v34 }
0x20fc   :  { %2121 = vrot.lane.b32.xlu0 %v2119_v35, %s9066_s24 }
0x216e   :  { %v2122_v37 = vpop.permute.xlu0 %2121 }
0x216f   :  { %v9791_v40 = vadd.f32 %v2122_v37, %v2114_v36 }
0x2171   :  { %8898 = vtanh.f32 %v9791_v40 }
0x217b   :  { %v8899_v38 = vpop.eup %8898 }
0x217c   :  { %2127 = vrot.lane.b32.xlu1 %v8899_v38, %s9065_s23 }
0x21ee   :  { %v2128_v41 = vpop.permute.xlu1 %2127 }
0x21ef   :  { %v9795_v42 = vmul.f32 %v8897_v30, %v2128_v41 }
0x21f1   :  { %2132 = vrot.lane.b32.xlu0 %v9795_v42, %s9066_s24 }
0x2263   :  { %v2133_v43 = vpop.permute.xlu0 %2132 }
0x2264   :  { %v2207_v44 = vsel %vm447_vm3, %v2133_v43, %v9791_v40  ;;  %7419 = vmatmul.mubr.msk.f32.vlgmr.msra.gmra.mrb[24].mxu1 %vm447_vm3, %v2133_v43 }
0x2265   :  { %7438 = vmatmul.mubr.msk.f32.vlgmr.msra.gmra.mrb[24].mxu0 %vm160_vm4, %v2207_v44  ;;  %8058 = vmatpush3.bf16.msra.mxu1 %v9248_v33 }
0x2266   :  { %8059 = vmatprep.subr.bf16.mxu1 %v10956_v3  ;;  %7472 = vmatprep.mubr.msk.f32.mxu1 %vm9063_vm0, %v10954_v6 }
0x2267   :  { %8082 = vmatpush3.bf16.msra.mxu0 %v9380_v25  ;;  %7487 = vmatprep.mubr.msk.f32.mxu0 %vm9063_vm0, %v10954_v6 }
0x2268   :  { %8083 = vmatprep.subr.bf16.mxu0 %v10956_v3 }
0x2269   :  { %8061 = vmatpush3.bf16.msra.mxu1 %v9266_v39 }
0x226a   :  { %8062 = vmatprep.subr.bf16.mxu1 %v10956_v3 }
0x226b   :  { %8085 = vmatpush3.bf16.msra.mxu0 %v9386_v28 }
0x226c   :  { %8086 = vmatprep.subr.bf16.mxu0 %v10956_v3 }
0x226d   :  { %8064 = vmatpush3.bf16.msra.mxu1 %v9285_v45 }
0x226e   :  { %8065 = vmatprep.subr.bf16.mxu1 %v10956_v3 }
0x226f   :  { %8088 = vmatpush3.bf16.msra.mxu0 %v9396_v31 }
0x2270   :  { %8089 = vmatprep.subr.bf16.mxu0 %v10956_v3 }
0x2271   :  { %8067 = vmatpush3.bf16.msra.mxu1 %v9296_v49 }
0x2272   :  { %8068 = vmatprep.subr.bf16.mxu1 %v10956_v3 }
0x2275   :  { %8070 = vmatpush3.bf16.msra.mxu1 %v9316_v53 }
0x2276   :  { %8071 = vmatprep.subr.bf16.mxu1 %v10956_v3 }
0x2279   :  { %8073 = vmatpush3.bf16.msra.mxu1 %v9326_v56 }
0x227a   :  { %8074 = vmatprep.subr.bf16.mxu1 %v10956_v3 }
0x227d   :  { %8076 = vmatpush3.bf16.msra.mxu1 %v9336_v59 }
0x227e   :  { %8077 = vmatprep.subr.bf16.mxu1 %v10956_v3 }
0x2281   :  { %8079 = vmatpush3.bf16.msra.mxu1 %v9345_v62 }
0x2282   :  { %8095 = vmatprep.subr.bf16.mxu1 %v10956_v3 }
0x2337   :  { %v9829_v24 = vpop.f32.mrb[24].mxu1 }
0x2338   :  { %v7420_v46 = vpop.f32.mrb[25].mxu1  ;;  %v2277_v47 = vpop.f32.mrb[24].mxu0 }
0x2339   :  { %v2278_v48 = vadd.f32 %v2277_v47, %v9353_v4  ;;  %v7439_v51 = vpop.f32.mrb[25].mxu0 }
0x233b   :  { %8900 = vtanh.f32 %v2278_v48 }
0x2345   :  { %v8901_v52 = vpop.eup %8900 }
0x2346   :  { %7473 = vmatmul.mubr.f32.vlgmr.msra.gmra.mrb[26].mxu1 %v8901_v52 }
0x2347   :  { %8097 = vmatpush3.bf16.msra.mxu1 %v9188_v12  ;;  %7517 = vmatprep.mubr.msk.f32.mxu1 %vm9063_vm0, %v10954_v6 }
0x2348   :  { %8098 = vmatprep.subr.bf16.mxu1 %v10956_v3 }
0x234b   :  { %8100 = vmatpush3.bf16.msra.mxu1 %v9197_v15 }
0x234c   :  { %8101 = vmatprep.subr.bf16.mxu1 %v10956_v3 }
0x234f   :  { %8103 = vmatpush3.bf16.msra.mxu1 %v9214_v21 }
0x2350   :  { %8104 = vmatprep.subr.bf16.mxu1 %v10956_v3 }
0x2353   :  { %8106 = vmatpush3.bf16.msra.mxu1 %v9231_v27 }
0x2354   :  { %8131 = vmatprep.subr.bf16.mxu1 %v10956_v3 }
0x2419   :  { %v2348_v54 = vpop.f32.mrb[26].mxu1 }
0x241a   :  { %v2349_v12 = vadd.f32 %v2348_v54, %v9366_v9  ;;  %v7474_v50 = vpop.f32.mrb[27].mxu1 }
0x241c   :  { %v2352_v58 = vsel %vm322_vm1, %v2349_v12, -inf }
0x241d   :  { %2353 = vmax.xlane.f32.xlu1 %v2352_v58 }
0x242e   :  { %2367 = vrot.lane.b32.xlu1 %v9795_v42, %s9068_s15 }
0x24aa   :  { %v2354_v15 = vpop.xlane.xlu1 %2353 }
0x24ab   :  { %v2355_v60 = vsub.f32 %v2349_v12, %v2354_v15 }
0x24ad   :  { %v2356_v61 = vmul.f32 1.442695, %v2355_v60 }
0x24ae   :  { %v2368_v19 = vpop.permute.xlu1 %2367 }
0x24af   :  { %8902 = vpow2.f32 %v2356_v61 }
0x24b9   :  { %v8903_v21 = vpop.eup %8902 }
0x24ba   :  { %v2358_v2 = vsel %vm322_vm1, %v8903_v21, 0.0 }
0x24bb   :  { %2359 = vadd.xlane.f32.xlu0 %v2358_v2 }
0x24d1   :  { %2363 = vrot.lane.b32.xlu0 %v9775_v55, %s9066_s24 }
0x2548   :  { %v2360_v27 = vpop.xlane.xlu0 %2359 }
0x2549   :  { %8904 = vrcp.f32 %v2360_v27 }
0x254c   :  { %v2364_v13 = vpop.permute.xlu0 %2363 }
0x2553   :  { %v8905_v10 = vpop.eup %8904 }
0x2554   :  { %v2362_v16 = vmul.f32 %v8905_v10, %v8903_v21 }
0x2556   :  { %v2366_v18 = vmul.f32 %v2364_v13, %v2362_v16 }
0x2558   :  { %v2370_v22 = vsel %vm322_vm1, %v2366_v18, %v2368_v19 }
0x2559   :  { %7488 = vmatmul.mubr.msk.f32.vlgmr.msra.gmra.mrb[26].mxu0 %vm342_vm2, %v2370_v22 }
0x255a   :  { %8091 = vmatpush3.bf16.msra.mxu0 %v9426_v63  ;;  %7498 = vmatprep.mubr.msk.f32.mxu0 %vm9063_vm0, %v10954_v6 }
0x255b   :  { %8092 = vmatprep.subr.bf16.mxu0 %v10956_v3 }
0x255e   :  { %8094 = vmatpush3.bf16.msra.mxu0 %v9432_v1 }
0x255f   :  { %8107 = vmatprep.subr.bf16.mxu0 %v10956_v3 }
0x262c   :  { %v2440_v23 = vpop.f32.mrb[26].mxu0 }
0x262d   :  { %v2441_v29 = vadd.f32 %v9860_v26, %v2440_v23  ;;  %v7489_v30 = vpop.f32.mrb[27].mxu0 }
0x262e   :  { %v2946_v30 = vld [vmem:[%s10946_s7] sm:$0xff] }
0x262f   :  { %8906 = vtanh.f32 %v2441_v29  ;;  %v5998_v35 = vmul.f32 -1.442695, %v2441_v29 }
0x2631   :  { %8908 = vpow2.f32 %v5998_v35  ;;  %v2948_v35 = vld [vmem:[%s10946_s7 + $0x10] sm:$0xff] }
0x2639   :  { %v8907_v34 = vpop.eup %8906 }
0x263a   :  { %2453 = vrot.lane.b32.xlu1 %v8907_v34, %s9065_s23 }
0x263b   :  { %v8909_v36 = vpop.eup %8908 }
0x263c   :  { %v2447_v37 = vadd.f32 1.0, %v8909_v36  ;;  %v2951_v36 = vld [vmem:[%s10946_s7 + $0x28] sm:$0xff] }
0x263e   :  { %8910 = vrcp.f32 %v2447_v37  ;;  %v2953_v37 = vld [vmem:[%s10946_s7 + $0x38] sm:$0xff] }
0x2648   :  { %v8911_v38 = vpop.eup %8910 }
0x2649   :  { %v2451_v44 = vmul.f32 %v8911_v38, %v9791_v40 }
0x26ac   :  { %v2454_v41 = vpop.permute.xlu1 %2453 }
0x26ad   :  { %v2456_v43 = vmul.f32 %v8911_v38, %v2454_v41  ;;  %v9945_v41 = vpack.c.bf16 %v2953_v37, %v2951_v36  ;;  %v3062_v36 = vld [vmem:[%s10947_s8 + $0xc8] sm:$0xff] }
0x26af   :  { %2458 = vrot.lane.b32.xlu0 %v2456_v43, %s9066_s24  ;;  %v2950_v43 = vld [vmem:[%s10946_s7 + $0x20] sm:$0xff] }
0x2721   :  { %v2459_v46 = vpop.permute.xlu0 %2458 }
0x2722   :  { %v9866_v47 = vadd.f32 %v2459_v46, %v2451_v44  ;;  %v2952_v44 = vld [vmem:[%s10946_s7 + $0x30] sm:$0xff]  ;;  %v2955_v46 = vld [vmem:[%s10946_s7 + $0x48] sm:$0xff] }
0x2724   :  { %8912 = vtanh.f32 %v9866_v47 }
0x272e   :  { %v8913_v48 = vpop.eup %8912 }
0x272f   :  { %2464 = vrot.lane.b32.xlu1 %v8913_v48, %s9065_s23  ;;  %v2957_v48 = vld [vmem:[%s10946_s7 + $0x58] sm:$0xff] }
0x27a1   :  { %v2465_v51 = vpop.permute.xlu1 %2464 }
0x27a2   :  { %v9870_v52 = vmul.f32 %v8911_v38, %v2465_v51  ;;  %v9943_v38 = vpack.c.bf16 %v2948_v35, %v2946_v30  ;;  %v9961_v51 = vpack.c.bf16 %v2952_v44, %v2950_v43  ;;  %v3061_v35 = vld [vmem:[%s10947_s8 + $0xc0] sm:$0xff]  ;;  %v3046_v44 = vld [vmem:[%s10947_s8 + $0x48] sm:$0xff] }
0x27a3   :  { %v10094_v37 = vpack.c.bf16 %v3062_v36, %v3061_v35  ;;  %v3045_v43 = vld [vmem:[%s10947_s8 + $0x40] sm:$0xff] }
0x27a4   :  { %2469 = vrot.lane.b32.xlu0 %v9870_v52, %s9066_s24 }
0x2816   :  { %v2470_v54 = vpop.permute.xlu0 %2469 }
0x2817   :  { %v2544_v12 = vsel %vm447_vm3, %v2470_v54, %v9866_v47  ;;  %7499 = vmatmul.mubr.msk.f32.vlgmr.msra.gmra.mrb[28].mxu0 %vm447_vm3, %v2470_v54  ;;  %v9964_v54 = vpack.c.bf16 %v2957_v48, %v2955_v46  ;;  %v10102_v46 = vpack.c.bf16 %v3046_v44, %v3045_v43 }
0x2818   :  { %7518 = vmatmul.mubr.msk.f32.vlgmr.msra.gmra.mrb[28].mxu1 %vm160_vm4, %v2544_v12  ;;  %8109 = vmatpush3.bf16.msra.mxu0 %v9248_v33  ;;  %v2954_v12 = vld [vmem:[%s10946_s7 + $0x40] sm:$0xff] }
0x2819   :  { %8110 = vmatprep.subr.bf16.mxu0 %v10956_v3  ;;  %7552 = vmatprep.mubr.msk.f32.mxu0 %vm9063_vm0, %v10954_v6  ;;  %10981 = vst [vmem:[#allocation6_spill] sm:$0xff] %v9964_v54 }
0x281a   :  { %8133 = vmatpush3.bf16.msra.mxu1 %v9380_v25  ;;  %7567 = vmatprep.mubr.msk.f32.mxu1 %vm9063_vm0, %v10954_v6 }
0x281b   :  { %8134 = vmatprep.subr.bf16.mxu1 %v10956_v3 }
0x281c   :  { %8112 = vmatpush3.bf16.msra.mxu0 %v9266_v39 }
0x281d   :  { %8113 = vmatprep.subr.bf16.mxu0 %v10956_v3 }
0x281e   :  { %8136 = vmatpush3.bf16.msra.mxu1 %v9386_v28 }
0x281f   :  { %8137 = vmatprep.subr.bf16.mxu1 %v10956_v3 }
0x2820   :  { %8115 = vmatpush3.bf16.msra.mxu0 %v9285_v45 }
0x2821   :  { %8116 = vmatprep.subr.bf16.mxu0 %v10956_v3 }
0x2822   :  { %8139 = vmatpush3.bf16.msra.mxu1 %v9396_v31 }
0x2823   :  { %8140 = vmatprep.subr.bf16.mxu1 %v10956_v3 }
0x2824   :  { %8118 = vmatpush3.bf16.msra.mxu0 %v9296_v49 }
0x2825   :  { %8119 = vmatprep.subr.bf16.mxu0 %v10956_v3 }
0x2828   :  { %8121 = vmatpush3.bf16.msra.mxu0 %v9316_v53 }
0x2829   :  { %8122 = vmatprep.subr.bf16.mxu0 %v10956_v3 }
0x282c   :  { %8124 = vmatpush3.bf16.msra.mxu0 %v9326_v56 }
0x282d   :  { %8125 = vmatprep.subr.bf16.mxu0 %v10956_v3 }
0x2830   :  { %8127 = vmatpush3.bf16.msra.mxu0 %v9336_v59 }
0x2831   :  { %8128 = vmatprep.subr.bf16.mxu0 %v10956_v3 }
0x2834   :  { %8130 = vmatpush3.bf16.msra.mxu0 %v9345_v62 }
0x28ea   :  { %v9903_v33 = vpop.f32.mrb[28].mxu0 }
0x28eb   :  { %v7500_v39 = vpop.f32.mrb[29].mxu0  ;;  %v2614_v45 = vpop.f32.mrb[28].mxu1 }
0x28ec   :  { %v2615_v49 = vadd.f32 %v2614_v45, %v9353_v4  ;;  %v7519_v25 = vpop.f32.mrb[29].mxu1  ;;  %v2956_v39 = vld [vmem:[%s10946_s7 + $0x50] sm:$0xff]  ;;  %v2959_v45 = vld [vmem:[%s10946_s7 + $0x68] sm:$0xff] }
0x28ed   :  { %v9979_v25 = vpack.c.bf16 %v2956_v39, %v2954_v12  ;;  %v3063_v12 = vld [vmem:[%s10947_s8 + $0xd0] sm:$0xff]  ;;  %v3064_v39 = vld [vmem:[%s10947_s8 + $0xd8] sm:$0xff] }
0x28ee   :  { %8914 = vtanh.f32 %v2615_v49  ;;  %v2961_v49 = vld [vmem:[%s10946_s7 + $0x78] sm:$0xff] }
0x28ef   :  { %10982 = vst [vmem:[#allocation7_spill] sm:$0xff] %v9979_v25 }
0x28f8   :  { %v8915_v53 = vpop.eup %8914 }
0x28f9   :  { %7553 = vmatmul.mubr.f32.vlgmr.msra.gmra.mrb[30].mxu0 %v8915_v53  ;;  %v9982_v53 = vpack.c.bf16 %v2961_v49, %v2959_v45  ;;  %v10112_v45 = vpack.c.bf16 %v3064_v39, %v3063_v12  ;;  %v3047_v49 = vld [vmem:[%s10947_s8 + $0x50] sm:$0xff] }
0x28fa   :  { %3026 = vmatprep.mubr.f32.mxu0 %v10954_v6 }
0x28fb   :  { %10983 = vst [vmem:[#allocation8_spill] sm:$0xff] %v9982_v53 }
0x29cc   :  { %v2685_v56 = vpop.f32.mrb[30].mxu0 }
0x29cd   :  { %v2686_v28 = vadd.f32 %v2685_v56, %v9366_v9  ;;  %v7554_v59 = vpop.f32.mrb[31].mxu0  ;;  %v2958_v56 = vld [vmem:[%s10946_s7 + $0x60] sm:$0xff] }
0x29cf   :  { %v2689_v31 = vsel %vm322_vm1, %v2686_v28, -inf }
0x29d0   :  { %2690 = vmax.xlane.f32.xlu1 %v2689_v31 }
0x29e1   :  { %2704 = vrot.lane.b32.xlu1 %v9870_v52, %s9068_s15  ;;  %s5971_s15 = sld [smem:[#allocation2 + $0x1]] }
0x2a5d   :  { %v2691_v62 = vpop.xlane.xlu1 %2690 }
0x2a5e   :  { %v2692_v40 = vsub.f32 %v2686_v28, %v2691_v62  ;;  %v2960_v28 = vld [vmem:[%s10946_s7 + $0x70] sm:$0xff] }
0x2a5f   :  { %v9991_v59 = vpack.c.bf16 %v2960_v28, %v2958_v56  ;;  %v3048_v56 = vld [vmem:[%s10947_s8 + $0x58] sm:$0xff] }
0x2a60   :  { %v2693_v50 = vmul.f32 1.442695, %v2692_v40  ;;  %v10120_v28 = vpack.c.bf16 %v3048_v56, %v3047_v49 }
0x2a61   :  { %v2705_v2 = vpop.permute.xlu1 %2704  ;;  %10984 = vst [vmem:[#allocation9_spill] sm:$0xff] %v9991_v59 }
0x2a62   :  { %8916 = vpow2.f32 %v2693_v50 }
0x2a6c   :  { %v8917_v4 = vpop.eup %8916 }
0x2a6d   :  { %v2695_v58 = vsel %vm322_vm1, %v8917_v4, 0.0 }
0x2a6e   :  { %2696 = vadd.xlane.f32.xlu0 %v2695_v58 }
0x2a84   :  { %2700 = vrot.lane.b32.xlu0 %v9775_v55, %s9071_s3  ;;  %s5972_s3 = sld [smem:[#allocation2 + $0x2]] }
0x2afb   :  { %v2697_v15 = vpop.xlane.xlu0 %2696 }
0x2afc   :  { %8918 = vrcp.f32 %v2697_v15 }
0x2aff   :  { %v2701_v60 = vpop.permute.xlu0 %2700 }
0x2b06   :  { %v8919_v9 = vpop.eup %8918 }
0x2b07   :  { %v2699_v61 = vmul.f32 %v8919_v9, %v8917_v4 }
0x2b09   :  { %v2703_v21 = vmul.f32 %v2701_v60, %v2699_v61  ;;  %v3056_v60 = vld [vmem:[%s10947_s8 + $0x98] sm:$0xff] }
0x2b0b   :  { %v2707_v27 = vsel %vm322_vm1, %v2703_v21, %v2705_v2  ;;  %v3039_v2 = vld [vmem:[%s10947_s8 + $0x10] sm:$0xff] }
0x2b0c   :  { %7568 = vmatmul.mubr.msk.f32.vlgmr.msra.gmra.mrb[30].mxu1 %vm342_vm2, %v2707_v27  ;;  %v3040_v27 = vld [vmem:[%s10947_s8 + $0x18] sm:$0xff] }
0x2b0d   :  { %8142 = vmatpush3.bf16.msra.mxu1 %v9426_v63  ;;  %7578 = vmatprep.mubr.msk.f32.mxu1 %vm9063_vm0, %v10954_v6 }
0x2b0e   :  { %8143 = vmatprep.subr.bf16.mxu1 %v10956_v3 }
0x2b11   :  { %8145 = vmatpush3.bf16.msra.mxu1 %v9432_v1  ;;  %v2947_v1 = vld [vmem:[%s10946_s7 + $0x8] sm:$0xff] }
0x2bdf   :  { %v2777_v55 = vpop.f32.mrb[30].mxu1 }
0x2be0   :  { %v2778_v10 = vadd.f32 %v9860_v26, %v2777_v55  ;;  %v7569_v13 = vpop.f32.mrb[31].mxu1  ;;  %v2949_v26 = vld [vmem:[%s10946_s7 + $0x18] sm:$0xff]  ;;  %v3057_v55 = vld [vmem:[%s10947_s8 + $0xa0] sm:$0xff] }
0x2be1   :  { %v9932_v34 = vpack.c.bf16 %v2949_v26, %v2947_v1  ;;  %v10054_v13 = vpack.c.bf16 %v3040_v27, %v3039_v2  ;;  %v3043_v1 = vld [vmem:[%s10947_s8 + $0x30] sm:$0xff]  ;;  %v3044_v26 = vld [vmem:[%s10947_s8 + $0x38] sm:$0xff] }
0x2be2   :  { %8920 = vtanh.f32 %v2778_v10  ;;  %v6002_v18 = vmul.f32 -1.442695, %v2778_v10  ;;  %v3058_v10 = vld [vmem:[%s10947_s8 + $0xa8] sm:$0xff]  ;;  %v10084_v30 = vpack.c.bf16 %v3044_v26, %v3043_v1 }
0x2be3   :  { %10980 = vst [vmem:[#allocation5_spill] sm:$0xff] %v9932_v34  ;;  %8147 = vmatprep.subr.bf16.mxu0 %v9932_v34  ;;  %v6004_v1 = vld [vmem:[%s10951_s12 + $0x2] ss:$8 sm:$0x3] }
0x2be4   :  { %8922 = vpow2.f32 %v6002_v18  ;;  %8149 = vmatpush1.bf16.msra.mxu0 %v9943_v38  ;;  %v3041_v18 = vld [vmem:[%s10947_s8 + $0x20] sm:$0xff] }
0x2be5   :  { %8151 = vmatprep.subr.bf16.mxu0 %v9945_v41 }
0x2be8   :  { %8153 = vmatpush1.bf16.msra.mxu0 %v9961_v51 }
0x2be9   :  { %8155 = vmatprep.subr.bf16.mxu0 %v9964_v54 }
0x2bec   :  { %v8921_v16 = vpop.eup %8920  ;;  %8157 = vmatpush1.bf16.msra.mxu0 %v9979_v25 }
0x2bed   :  { %2790 = vrot.lane.b32.xlu1 %v8921_v16, %s9065_s23  ;;  %8159 = vmatprep.subr.bf16.mxu0 %v9982_v53  ;;  %v10057_v16 = vpack.c.bf16 %v3058_v10, %v3057_v55  ;;  %v2932_v10 = vlaneseq }
0x2bee   :  { %v8923_v19 = vpop.eup %8922 }
0x2bef   :  { %v2784_v22 = vadd.f32 1.0, %v8923_v19  ;;  %v3042_v19 = vld [vmem:[%s10947_s8 + $0x28] sm:$0xff] }
0x2bf0   :  { %8161 = vmatpush1.bf16.msra.mxu0 %v9991_v59 }
0x2bf1   :  { %8924 = vrcp.f32 %v2784_v22  ;;  %v3059_v22 = vld [vmem:[%s10947_s8 + $0xb0] sm:$0xff] }
0x2bf3   :  { %3027 = vmatmul.mubr.f32.vlgmr.msra.gmra.mrb[32].mxu0 %v10954_v6 }
0x2bf4   :  { %3221 = vmatprep.mubr.f32.mxu0 %v10954_v6 }
0x2bfb   :  { %v8925_v63 = vpop.eup %8924 }
0x2bfc   :  { %v2788_v31 = vmul.f32 %v8925_v63, %v9866_v47  ;;  %v3053_v47 = vld [vmem:[%s10947_s8 + $0x80] sm:$0xff] }
0x2c5f   :  { %v2791_v23 = vpop.permute.xlu1 %2790 }
0x2c60   :  { %v2793_v29 = vmul.f32 %v8925_v63, %v2791_v23  ;;  %v10072_v23 = vpack.c.bf16 %v3042_v19, %v3041_v18  ;;  %v2933_v19 = vshrl.u32 %v2932_v10, 7 }
0x2c62   :  { %2795 = vrot.lane.b32.xlu0 %v2793_v29, %s9066_s24  ;;  %v2938_v36 = vsub.s32 1, %v2933_v19 }
0x2c64   :  { %v2939_v49 = vrot.slane %v6004_v1, %v2938_v36  ;;  %v3231_v36 = vld [vmem:[%s10949_s10 + $0x8] sm:$0xff] }
0x2cc6   :  { %v10007_v15 = vpop.f32.mrb[32].mxu0 }
0x2cc7   :  { %v3030_v48 = vpop.f32.mrb[33].mxu0 }
0x2cd4   :  { %v2796_v62 = vpop.permute.xlu0 %2795 }
0x2cd5   :  { %v2798_v40 = vadd.f32 %v2796_v62, %v2788_v31  ;;  %v3065_v31 = vld [vmem:[%s10947_s8 + $0xe0] sm:$0xff]  ;;  %v3066_v62 = vld [vmem:[%s10947_s8 + $0xe8] sm:$0xff] }
0x2cd7   :  { %8926 = vtanh.f32 %v2798_v40  ;;  %v3049_v40 = vld [vmem:[%s10947_s8 + $0x60] sm:$0xff] }
0x2ce1   :  { %v8927_v50 = vpop.eup %8926 }
0x2ce2   :  { %2801 = vrot.lane.b32.xlu1 %v8927_v50, %s9065_s23  ;;  %v10133_v50 = vpack.c.bf16 %v3066_v62, %v3065_v31 }
0x2ce6   :  { %2912 = vrot.lane.b32.xlu1 %v9829_v24, %s9066_s24 }
0x2cea   :  { %2916 = vrot.lane.b32.xlu1 %v9903_v33, %s9065_s23  ;;  %v3054_v33 = vld [vmem:[%s10947_s8 + $0x88] sm:$0xff] }
0x2ceb   :  { %v10025_v9 = vpack.c.bf16 %v3054_v33, %v3053_v47  ;;  %v3068_v47 = vld [vmem:[%s10947_s8 + $0xf8] sm:$0xff] }
0x2ced   :  { %8163 = vmatprep.subr.bf16.mxu1 %v10025_v9 }
0x2d54   :  { %v2802_v4 = vpop.permute.xlu1 %2801 }
0x2d55   :  { %v10003_v58 = vmul.f32 %v8925_v63, %v2802_v4  ;;  %v3060_v63 = vld [vmem:[%s10947_s8 + $0xb8] sm:$0xff]  ;;  %v3050_v4 = vld [vmem:[%s10947_s8 + $0x68] sm:$0xff] }
0x2d56   :  { %v10075_v29 = vpack.c.bf16 %v3060_v63, %v3059_v22  ;;  %v10144_v33 = vpack.c.bf16 %v3050_v4, %v3049_v40  ;;  %v2934_v63 = vsub.s32 0, %v2933_v19 }
0x2d57   :  { %2806 = vrot.lane.b32.xlu0 %v10003_v58, %s9066_s24 }
0x2d58   :  { %v2913_v22 = vpop.permute.xlu1 %2912  ;;  %v2935_v44 = vrot.slane %v6004_v1, %v2934_v63  ;;  %v10196_v1 = vld [vmem:[%s10948_s9 + $0x8] sm:$0xff] }
0x2d59   :  { %v2926_v56 = vsel %vm447_vm3, %v9755_v17, %v2913_v22  ;;  %10985 = vst [vmem:[#allocation10_spill] sm:$0xff] %v10196_v1  ;;  %3157 = vmatprep.subr.mxu0 %v10196_v1 }
0x2d5b   :  { %2900 = vrot.lane.b32.xlu0 %v9545_v57, %s9066_s24  ;;  %v3037_v57 = vld [vmem:[%s10947_s8] sm:$0xff] }
0x2d5c   :  { %v2917_v12 = vpop.permute.xlu1 %2916 }
0x2d5d   :  { %v2927_v62 = vsel %vm160_vm4, %v2926_v56, %v2917_v12 }
0x2d5f   :  { %2904 = vrot.lane.b32.xlu0 %v9615_v0, %s9065_s23  ;;  %v3038_v0 = vld [vmem:[%s10947_s8 + $0x8] sm:$0xff] }
0x2d60   :  { %v10036_v61 = vpack.c.bf16 %v3038_v0, %v3037_v57  ;;  %v3051_v0 = vld [vmem:[%s10947_s8 + $0x70] sm:$0xff] }
0x2d63   :  { %2908 = vrot.lane.b32.xlu0 %v9684_v5, %s9069_s16  ;;  %v3055_v5 = vld [vmem:[%s10947_s8 + $0x90] sm:$0xff] }
0x2d64   :  { %v10038_v21 = vpack.c.bf16 %v3056_v60, %v3055_v5  ;;  %v3052_v5 = vld [vmem:[%s10947_s8 + $0x78] sm:$0xff] }
0x2d65   :  { %v10156_v60 = vpack.c.bf16 %v3052_v5, %v3051_v0 }
0x2dc9   :  { %v2807_v24 = vpop.permute.xlu0 %2806 }
0x2dca   :  { %7579 = vmatmul.mubr.msk.f32.vlgmr.msra.gmra.mrb[32].mxu1 %vm447_vm3, %v2807_v24  ;;  %v3067_v24 = vld [vmem:[%s10947_s8 + $0xf0] sm:$0xff] }
0x2dcb   :  { %8165 = vmatpush3.bf16.msra.mxu1 %v10036_v61  ;;  %v10146_v57 = vpack.c.bf16 %v3068_v47, %v3067_v24 }
0x2dcc   :  { %8167 = vmatprep.subr.bf16.mxu1 %v10038_v21 }
0x2dcd   :  { %v2901_v55 = vpop.permute.xlu0 %2900 }
0x2dce   :  { %v2923_v35 = vsel %vm447_vm3, %v9476_v11, %v2901_v55 }
0x2dcf   :  { %8169 = vmatpush3.bf16.msra.mxu1 %v10054_v13 }
0x2dd0   :  { %8171 = vmatprep.subr.bf16.mxu1 %v10057_v16 }
0x2dd1   :  { %v2905_v18 = vpop.permute.xlu0 %2904 }
0x2dd2   :  { %v2924_v43 = vsel %vm160_vm4, %v2923_v35, %v2905_v18 }
0x2dd3   :  { %8173 = vmatpush3.bf16.msra.mxu1 %v10072_v23 }
0x2dd4   :  { %8175 = vmatprep.subr.bf16.mxu1 %v10075_v29 }
0x2dd5   :  { %v2909_v26 = vpop.permute.xlu0 %2908 }
0x2dd6   :  { %v2925_v39 = vsel %vm2894_vm5, %v2924_v43, %v2909_v26  ;;  %v3248_v43 = vld [vmem:[%s10949_s10 + $0x90] sm:$0xff] }
0x2dd7   :  { %8177 = vmatpush3.bf16.msra.mxu1 %v10084_v30  ;;  %v10171_v31 = vadd.f32 %v2935_v44, %v2925_v39  ;;  %v3249_v44 = vld [vmem:[%s10949_s10 + $0x98] sm:$0xff] }
0x2dd8   :  { %8179 = vmatprep.subr.bf16.mxu1 %v10094_v37  ;;  %v10230_v56 = vpack.c.bf16 %v3249_v44, %v3248_v43 }
0x2dd9   :  { %v3033_v11 = vadd.f32 %v10007_v15, %v10171_v31 }
0x2ddb   :  { %8181 = vmatpush3.bf16.msra.mxu1 %v10102_v46 }
0x2ddc   :  { %8183 = vmatprep.subr.bf16.mxu1 %v10112_v45 }
0x2ddf   :  { %8185 = vmatpush3.bf16.msra.mxu1 %v10120_v28 }
0x2de0   :  { %8187 = vmatprep.subr.bf16.mxu1 %v10133_v50 }
0x2de3   :  { %8189 = vmatpush3.bf16.msra.mxu1 %v10144_v33 }
0x2de4   :  { %8191 = vmatprep.subr.bf16.mxu1 %v10146_v57 }
0x2de7   :  { %8193 = vmatpush3.bf16.msra.mxu1 %v10156_v60 }
0x2de8   :  { %8226 = vmatprep.subr.bf16.mxu1 %v10956_v3 }
0x2e9d   :  { %v2876_v2 = vpop.f32.mrb[32].mxu1 }
0x2e9e   :  { %2920 = vrot.lane.b32.xlu1 %v2876_v2, %s9069_s16  ;;  %v7580_v27 = vpop.f32.mrb[33].mxu1 }
0x2e9f   :  { %v10182_v27 = vstv %s5971_s15 }
0x2f10   :  { %v2921_v40 = vpop.permute.xlu1 %2920 }
0x2f11   :  { %v2928_v4 = vsel %vm2894_vm5, %v2927_v62, %v2921_v40  ;;  %v3232_v62 = vld [vmem:[%s10949_s10 + $0x10] sm:$0xff]  ;;  %v3233_v40 = vld [vmem:[%s10949_s10 + $0x18] sm:$0xff] }
0x2f12   :  { %v10175_v24 = vadd.f32 %v2939_v49, %v2928_v4  ;;  %v3250_v4 = vld [vmem:[%s10949_s10 + $0xa0] sm:$0xff] }
0x2f14   :  { %v3034_v47 = vadd.f32 %v3030_v48, %v10175_v24 }
0x2f16   :  { %8928 = vtanh.f32 %v3034_v47  ;;  %v10246_v47 = vpack.c.bf16 %v3233_v40, %v3232_v62  ;;  %v3258_v62 = vld [vmem:[%s10949_s10 + $0xe0] sm:$0xff]  ;;  %v3259_v40 = vld [vmem:[%s10949_s10 + $0xe8] sm:$0xff] }
0x2f17   :  { %8930 = vtanh.f32 %v3033_v11  ;;  %v3251_v11 = vld [vmem:[%s10949_s10 + $0xa8] sm:$0xff] }
0x2f20   :  { %v8929_v0 = vpop.eup %8928 }
0x2f21   :  { %v8931_v5 = vpop.eup %8930  ;;  %3134 = vmatprep.mubr.f32.mxu1 %v8929_v0  ;;  %v10249_v0 = vpack.c.bf16 %v3251_v11, %v3250_v4  ;;  %v10321_v11 = vpack.c.bf16 %v3259_v40, %v3258_v62  ;;  %v3337_v40 = vld [vmem:[%s10950_s11 + $0x20] sm:$0xff] }
0x2f22   :  { %3135 = vmatmul.mubr.f32.vlgmr.msra.gmra.mrb[34].mxu1 %v8931_v5  ;;  %v3234_v5 = vld [vmem:[%s10949_s10 + $0x20] sm:$0xff] }
0x2f23   :  { %7597 = vmatprep.mubr.msk.f32.mxu1 %vm9063_vm0, %v10954_v6 }
0x2ff5   :  { %v6385_v17 = vpop.f32.mrb[34].mxu1 }
0x2ff6   :  { %v6386_v2 = vpop.f32.mrb[35].mxu1 }
0x2ff7   :  { %v6387_v55 = vadd.f32 %v6386_v2, %v6385_v17  ;;  %v3235_v17 = vld [vmem:[%s10949_s10 + $0x28] sm:$0xff]  ;;  %v3252_v2 = vld [vmem:[%s10949_s10 + $0xb0] sm:$0xff] }
0x2ff9   :  { %v3137_v15 = vadd.f32 %v6387_v55, %v10182_v27  ;;  %v3253_v55 = vld [vmem:[%s10949_s10 + $0xb8] sm:$0xff] }
0x2ffb   :  { %v3141_v48 = vsel %vm3140_vm6, %v3137_v15, -inf }
0x2ffc   :  { %3142 = vmax.xlane.f32.xlu1 %v3141_v48  ;;  %v10267_v48 = vpack.c.bf16 %v3253_v55, %v3252_v2  ;;  %v3260_v55 = vld [vmem:[%s10949_s10 + $0xf0] sm:$0xff] }
0x300d   :  { %2880 = vrot.lane.b32.xlu1 %v9511_v7, %s9065_s23  ;;  %v10202_v7 = vld [vmem:[%s10948_s9] sm:$0xff] }
0x300e   :  { %3158 = vmatpush1.msra.mxu0 %v10202_v7 }
0x3011   :  { %2889 = vrot.lane.b32.xlu1 %v9870_v52, %s9069_s16  ;;  %v3247_v52 = vld [vmem:[%s10949_s10 + $0x88] sm:$0xff] }
0x3089   :  { %v3143_v10 = vpop.xlane.xlu1 %3142 }
0x308a   :  { %v3144_v18 = vsub.f32 %v3137_v15, %v3143_v10  ;;  %v10264_v15 = vpack.c.bf16 %v3235_v17, %v3234_v5  ;;  %v3236_v10 = vld [vmem:[%s10949_s10 + $0x30] sm:$0xff]  ;;  %v3242_v5 = vld [vmem:[%s10949_s10 + $0x60] sm:$0xff]  ;;  %v3243_v17 = vld [vmem:[%s10949_s10 + $0x68] sm:$0xff] }
0x308b   :  { %v10330_v2 = vpack.c.bf16 %v3243_v17, %v3242_v5  ;;  %v3338_v5 = vld [vmem:[%s10950_s11 + $0x28] sm:$0xff] }
0x308c   :  { %v3145_v19 = vmul.f32 1.442695, %v3144_v18  ;;  %v3237_v18 = vld [vmem:[%s10949_s10 + $0x38] sm:$0xff]  ;;  %v10378_v17 = vpack.c.bf16 %v3338_v5, %v3337_v40 }
0x308e   :  { %8932 = vpow2.f32 %v3145_v19  ;;  %v3254_v19 = vld [vmem:[%s10949_s10 + $0xc0] sm:$0xff]  ;;  %10988 = vst [vmem:[#allocation13_spill] sm:$0xff] %v10378_v17 }
0x3098   :  { %v8933_v22 = vpop.eup %8932 }
0x3099   :  { %v3147_v63 = vsel %vm3140_vm6, %v8933_v22, 0.0 }
0x309a   :  { %3148 = vadd.xlane.f32.xlu0 %v3147_v63  ;;  %v10282_v63 = vpack.c.bf16 %v3237_v18, %v3236_v10  ;;  %v3261_v10 = vld [vmem:[%s10949_s10 + $0xf8] sm:$0xff] }
0x309b   :  { %v10340_v18 = vpack.c.bf16 %v3261_v10, %v3260_v55  ;;  %v2881_v10 = vpop.permute.xlu1 %2880 }
0x30b0   :  { %2886 = vrot.lane.b32.xlu0 %v9795_v42, %s9065_s23  ;;  %v3246_v42 = vld [vmem:[%s10949_s10 + $0x80] sm:$0xff] }
0x30b1   :  { %v10213_v26 = vpack.c.bf16 %v3247_v52, %v3246_v42  ;;  %v3238_v52 = vld [vmem:[%s10949_s10 + $0x40] sm:$0xff] }
0x30b3   :  { %8195 = vmatprep.subr.bf16.mxu0 %v10213_v26 }
0x30b4   :  { %2883 = vrot.lane.b32.xlu0 %v9581_v14, %s9069_s16  ;;  %v3230_v14 = vld [vmem:[%s10949_s10] sm:$0xff] }
0x30b5   :  { %v10228_v39 = vpack.c.bf16 %v3231_v36, %v3230_v14  ;;  %v3256_v14 = vld [vmem:[%s10949_s10 + $0xd0] sm:$0xff]  ;;  %v3257_v36 = vld [vmem:[%s10949_s10 + $0xd8] sm:$0xff] }
0x30b6   :  { %v10303_v44 = vpack.c.bf16 %v3257_v36, %v3256_v14  ;;  %v3334_v14 = vld [vmem:[%s10950_s11 + $0x8] sm:$0xff]  ;;  %v3335_v36 = vld [vmem:[%s10950_s11 + $0x10] sm:$0xff] }
0x3127   :  { %v3149_v35 = vpop.xlane.xlu0 %3148 }
0x3128   :  { %8934 = vrcp.f32 %v3149_v35  ;;  %v3239_v35 = vld [vmem:[%s10949_s10 + $0x48] sm:$0xff] }
0x3129   :  { %v10300_v43 = vpack.c.bf16 %v3239_v35, %v3238_v52  ;;  %v3333_v35 = vld [vmem:[%s10950_s11] sm:$0xff] }
0x312b   :  { %v2887_v55 = vpop.permute.xlu0 %2886 }
0x3132   :  { %v8935_v12 = vpop.eup %8934 }
0x3133   :  { %v3151_v49 = vmul.f32 %v8935_v12, %v8933_v22  ;;  %v3255_v22 = vld [vmem:[%s10949_s10 + $0xc8] sm:$0xff]  ;;  %v3240_v12 = vld [vmem:[%s10949_s10 + $0x50] sm:$0xff] }
0x3134   :  { %v10285_v42 = vpack.c.bf16 %v3255_v22, %v3254_v19  ;;  %v3244_v19 = vld [vmem:[%s10949_s10 + $0x70] sm:$0xff]  ;;  %v3245_v22 = vld [vmem:[%s10949_s10 + $0x78] sm:$0xff] }
0x3135   :  { %6005 = vmatmul.mubr.msk.f32.vlgmr.msra.gmra.mrb[34].mxu0 %vm3140_vm6, %v3151_v49  ;;  %v3241_v49 = vld [vmem:[%s10949_s10 + $0x58] sm:$0xff]  ;;  %v10348_v52 = vpack.c.bf16 %v3245_v22, %v3244_v19  ;;  %v2896_v19 = vsel %vm447_vm3, %v9721_v32, %v2887_v55  ;;  %v2884_v22 = vpop.permute.xlu0 %2883 }
0x3136   :  { %8197 = vmatpush3.bf16.msra.mxu0 %v10228_v39  ;;  %v10318_v4 = vpack.c.bf16 %v3241_v49, %v3240_v12  ;;  %v10362_v12 = vpack.c.bf16 %v3334_v14, %v3333_v35  ;;  %v3336_v49 = vld [vmem:[%s10950_s11 + $0x18] sm:$0xff]  ;;  %v2890_v35 = vpop.permute.xlu1 %2889  ;;  %v2892_v14 = vsel %vm447_vm3, %v9442_v8, %v2881_v10  ;;  %v3339_v8 = vld [vmem:[%s10950_s11 + $0x30] sm:$0xff]  ;;  %v10428_v10 = vld [vmem:[%s10940_s1] sm:$0xff] }
0x3137   :  { %8199 = vmatprep.subr.bf16.mxu0 %v10230_v56  ;;  %v10368_v62 = vpack.c.bf16 %v3336_v49, %v3335_v36  ;;  %v2897_v36 = vsel %vm160_vm4, %v2896_v19, %v2890_v35  ;;  %v2893_v49 = vsel %vm160_vm4, %v2892_v14, %v2884_v22  ;;  %v9072_v19 = vmov 0  }
0x3138   :  { %10986 = vst [vmem:[#allocation11_spill] sm:$0xff] %v10362_v12  ;;  %8228 = vmatpush3.bf16.msra.mxu1 %v10362_v12  ;;  %v10391_v5 = vsel %vm2894_vm5, %v2897_v36, %v10003_v58  ;;  %8808 = vset.pattern.permute.xlu1 %v9072_v19 }
0x3139   :  { %10987 = vst [vmem:[#allocation12_spill] sm:$0xff] %v10368_v62  ;;  %8229 = vmatprep.subr.bf16.mxu1 %v10956_v3  ;;  %3344 = vperm.xlu1 %8808, %v10428_v10  }
0x313a   :  { %8201 = vmatpush3.bf16.msra.mxu0 %v10246_v47 }
0x313b   :  { %8203 = vmatprep.subr.bf16.mxu0 %v10249_v0 }
0x313c   :  { %8231 = vmatpush3.bf16.msra.mxu1 %v10368_v62 }
0x313d   :  { %8232 = vmatprep.subr.bf16.mxu1 %v10956_v3 }
0x313e   :  { %8205 = vmatpush3.bf16.msra.mxu0 %v10264_v15 }
0x313f   :  { %8207 = vmatprep.subr.bf16.mxu0 %v10267_v48 }
0x3140   :  { %8234 = vmatpush3.bf16.msra.mxu1 %v10378_v17 }
0x3141   :  { %8235 = vmatprep.subr.bf16.mxu1 %v10956_v3  ;;  %v10395_v3 = vsel %vm2894_vm5, %v2893_v49, %v9650_v20  ;;  %v3340_v20 = vld [vmem:[%s10950_s11 + $0x38] sm:$0xff]  ;;  %v10991_v49 = vmov 0.0  }
0x3142   :  { %8209 = vmatpush3.bf16.msra.mxu0 %v10282_v63  ;;  %v10421_v58 = vpack.c.bf16 %v3340_v20, %v3339_v8  ;;  %v10451_v8 = vld [vmem:[%s10951_s12 + $0x3] ss:$0 sm:$0xff] }
0x3143   :  { %8211 = vmatprep.subr.bf16.mxu0 %v10285_v42 }
0x3144   :  { %10990 = vst [vmem:[#allocation14_spill] sm:$0xff] %v10421_v58  ;;  %8237 = vmatpush3.bf16.msra.mxu1 %v10421_v58 }
0x3145   :  { %8239 = vmatprep.subr.bf16.mxu1 %v9932_v34 }
0x3146   :  { %8213 = vmatpush3.bf16.msra.mxu0 %v10300_v43 }
0x3147   :  { %8215 = vmatprep.subr.bf16.mxu0 %v10303_v44 }
0x314a   :  { %8217 = vmatpush3.bf16.msra.mxu0 %v10318_v4 }
0x314b   :  { %8219 = vmatprep.subr.bf16.mxu0 %v10321_v11 }
0x314e   :  { %8221 = vmatpush3.bf16.msra.mxu0 %v10330_v2 }
0x314f   :  { %8223 = vmatprep.subr.bf16.mxu0 %v10340_v18 }
0x3152   :  { %8225 = vmatpush3.bf16.msra.mxu0 %v10348_v52 }
0x3153   :  { %8255 = vmatprep.subr.bf16.mxu0 %v10025_v9 }
0x3208   :  { %v3223_v40 = vpop.f32.mrb[34].mxu0 }
0x3209   :  { %v3225_v6 = vpop.f32.mrb[35].mxu0  ;;  %v3228_v55 = vmul.f32 %v3223_v40, %v10395_v3  ;;  %v10445_v40 = vld [vmem:[%s10951_s12 + $0x4] ss:$0 sm:$0xff] }
0x320a   :  { %v3229_v32 = vmul.f32 %v3225_v6, %v10391_v5  ;;  %v10989_v6 = vmov 0.0|0.0   ;;  %10992 = vst [vmem:[#allocation15_spill] sm:$0xff] %v10445_v40 }
0x320c   :  { %3326 = vmatprep.mubr.f32.mxu0 %v3229_v32  ;;  %v3345_v32 = vpop.permute.xlu1 %3344 }
0x320d   :  { %3327 = vmatmul.mubr.f32.vlgmr.msra.gmra.mrb[36].mxu0 %v3228_v55  ;;  %v3347_v55 = vmul.f32 %v3345_v32, %v10445_v40 }
0x320e   :  { %8257 = vmatpush3.bf16.msra.mxu0 %v10036_v61 }
0x320f   :  { %8259 = vmatprep.subr.bf16.mxu0 %v10038_v21 }
0x3212   :  { %8261 = vmatpush3.bf16.msra.mxu0 %v10054_v13 }
0x3213   :  { %8263 = vmatprep.subr.bf16.mxu0 %v10057_v16 }
0x3216   :  { %8265 = vmatpush3.bf16.msra.mxu0 %v10072_v23 }
0x3217   :  { %8267 = vmatprep.subr.bf16.mxu0 %v10075_v29 }
0x321a   :  { %8269 = vmatpush3.bf16.msra.mxu0 %v10084_v30 }
0x321b   :  { %8271 = vmatprep.subr.bf16.mxu0 %v10094_v37 }
0x321e   :  { %8273 = vmatpush3.bf16.msra.mxu0 %v10102_v46 }
0x321f   :  { %8275 = vmatprep.subr.bf16.mxu0 %v10112_v45 }
0x3222   :  { %8277 = vmatpush3.bf16.msra.mxu0 %v10120_v28 }
0x3223   :  { %8279 = vmatprep.subr.bf16.mxu0 %v10133_v50 }
0x3226   :  { %8281 = vmatpush3.bf16.msra.mxu0 %v10144_v33 }
0x3227   :  { %8283 = vmatprep.subr.bf16.mxu0 %v10146_v57 }
0x322a   :  { %8285 = vmatpush3.bf16.msra.mxu0 %v10156_v60 }
0x322b   :  { %8318 = vmatprep.subr.bf16.mxu0 %v10989_v6 }
0x32e0   :  { %v6420_v22 = vpop.f32.mrb[36].mxu0 }
0x32e1   :  { %v6421_v35 = vpop.f32.mrb[37].mxu0 }
0x32e2   :  { %v6422_v14 = vadd.f32 %v6421_v35, %v6420_v22 }
0x32e4   :  { %v3332_v36 = vsel %vm447_vm3, %v6422_v14, 0.0 }
0x32e5   :  { %7598 = vmatmul.mubr.msk.f32.vlgmr.msra.gmra.mrb[36].mxu1 %vm160_vm4, %v3332_v36 }
0x32e6   :  { %8241 = vmatpush1.bf16.msra.mxu1 %v9943_v38  ;;  %3518 = vmatprep.mubr.f32.mxu1 %v10991_v49 }
0x32e7   :  { %8243 = vmatprep.subr.bf16.mxu1 %v9945_v41 }
0x32ea   :  { %8245 = vmatpush1.bf16.msra.mxu1 %v9961_v51 }
0x32eb   :  { %8247 = vmatprep.subr.bf16.mxu1 %v9964_v54 }
0x32ee   :  { %8249 = vmatpush1.bf16.msra.mxu1 %v9979_v25 }
0x32ef   :  { %8251 = vmatprep.subr.bf16.mxu1 %v9982_v53 }
0x32f2   :  { %8253 = vmatpush1.bf16.msra.mxu1 %v9991_v59 }
0x32f3   :  { %3613 = vmatprep.subr.mxu1 %v10196_v1 }
0x33b8   :  { %v3417_v20 = vpop.f32.mrb[36].mxu1 }
0x33b9   :  { %v3418_v19 = vadd.f32 %v3417_v20, %v3347_v55  ;;  %v7599_v22 = vpop.f32.mrb[37].mxu1 }
0x33bb   :  { %v3421_v35 = vadd.f32 %v3418_v19, %v10451_v8 }
0x33bd   :  { %8936 = vtanh.f32 %v3421_v35  ;;  %v6007_v36 = vmul.f32 -1.442695, %v3421_v35 }
0x33bf   :  { %8938 = vpow2.f32 %v6007_v36 }
0x33c7   :  { %v8937_v14 = vpop.eup %8936 }
0x33c8   :  { %3431 = vrot.lane.b32.xlu0 %v8937_v14, %s9065_s23 }
0x33c9   :  { %v8939_v1 = vpop.eup %8938 }
0x33ca   :  { %v3425_v59 = vadd.f32 1.0, %v8939_v1 }
0x33cc   :  { %8940 = vrcp.f32 %v3425_v59 }
0x33d6   :  { %v8941_v32 = vpop.eup %8940 }
0x33d7   :  { %v3429_v25 = vmul.f32 0.0, %v8941_v32 }
0x343a   :  { %v3432_v40 = vpop.permute.xlu0 %3431 }
0x343b   :  { %v3434_v53 = vmul.f32 %v8941_v32, %v3432_v40 }
0x343d   :  { %3436 = vrot.lane.b32.xlu1 %v3434_v53, %s9066_s24 }
0x34af   :  { %v3437_v54 = vpop.permute.xlu1 %3436 }
0x34b0   :  { %v10456_v55 = vadd.f32 %v3437_v54, %v3429_v25 }
0x34b2   :  { %8942 = vtanh.f32 %v10456_v55 }
0x34bc   :  { %v8943_v20 = vpop.eup %8942 }
0x34bd   :  { %3442 = vrot.lane.b32.xlu0 %v8943_v20, %s9065_s23 }
0x352f   :  { %v3443_v19 = vpop.permute.xlu0 %3442 }
0x3530   :  { %v3445_v22 = vmul.f32 %v8941_v32, %v3443_v19 }
0x3532   :  { %3447 = vrot.lane.b32.xlu1 %v3445_v22, %s9066_s24 }
0x35a4   :  { %v3448_v1 = vpop.permute.xlu1 %3447 }
0x35a5   :  { %v3450_v59 = vsel %vm447_vm3, %v3448_v1, %v10456_v55 }
0x35a6   :  { %6008 = vmatmul.mubr.msk.f32.vlgmr.msra.gmra.mrb[38].mxu1 %vm160_vm4, %v3450_v59 }
0x35a7   :  { %3614 = vmatpush1.msra.mxu1 %v10202_v7  ;;  %3677 = vmatprep.mubr.f32.mxu1 %v10991_v49 }
0x35a8   :  { %8287 = vmatprep.subr.bf16.mxu1 %v10213_v26 }
0x3679   :  { %v3520_v54 = vpop.f32.mrb[38].mxu1 }
0x367a   :  { %v3525_v25 = vadd.f32 %v3520_v54, %v10171_v31  ;;  %v3522_v53 = vpop.f32.mrb[39].mxu1 }
0x367b   :  { %v3526_v40 = vadd.f32 %v3522_v53, %v10175_v24 }
0x367d   :  { %8944 = vtanh.f32 %v3526_v40 }
0x367e   :  { %8946 = vtanh.f32 %v3525_v25 }
0x3687   :  { %v8945_v35 = vpop.eup %8944 }
0x3688   :  { %v8947_v14 = vpop.eup %8946  ;;  %3593 = vmatprep.mubr.f32.mxu0 %v8945_v35 }
0x3689   :  { %3594 = vmatmul.mubr.f32.vlgmr.msra.gmra.mrb[38].mxu0 %v8947_v14 }
0x368a   :  { %8320 = vmatpush3.bf16.msra.mxu0 %v10362_v12  ;;  %7616 = vmatprep.mubr.msk.f32.mxu0 %vm9063_vm0, %v10991_v49 }
0x368b   :  { %8321 = vmatprep.subr.bf16.mxu0 %v10989_v6 }
0x368e   :  { %8323 = vmatpush3.bf16.msra.mxu0 %v10368_v62 }
0x368f   :  { %8324 = vmatprep.subr.bf16.mxu0 %v10989_v6 }
0x3692   :  { %8326 = vmatpush3.bf16.msra.mxu0 %v10378_v17 }
0x3693   :  { %8327 = vmatprep.subr.bf16.mxu0 %v10989_v6 }
0x3696   :  { %8329 = vmatpush3.bf16.msra.mxu0 %v10421_v58 }
0x3697   :  { %8331 = vmatprep.subr.bf16.mxu0 %v9932_v34 }
0x375c   :  { %v6464_v36 = vpop.f32.mrb[38].mxu0 }
0x375d   :  { %v6465_v32 = vpop.f32.mrb[39].mxu0 }
0x375e   :  { %v6466_v20 = vadd.f32 %v6465_v32, %v6464_v36 }
0x3760   :  { %v3596_v19 = vadd.f32 %v6466_v20, %v10182_v27  ;;  %v9073_v20 = vmov 1  }
0x3761   :  { %8809 = vset.pattern.permute.xlu1 %v9073_v20 }
0x3762   :  { %v3599_v1 = vsel %vm3140_vm6, %v3596_v19, -inf }
0x3763   :  { %3600 = vmax.xlane.f32.xlu0 %v3599_v1 }
0x3779   :  { %3756 = vrot.lane.b32.xlu0 %v3445_v22, %s9065_s23 }
0x37f0   :  { %v3601_v59 = vpop.xlane.xlu0 %3600 }
0x37f1   :  { %v3602_v54 = vsub.f32 %v3596_v19, %v3601_v59 }
0x37f3   :  { %v3603_v25 = vmul.f32 1.442695, %v3602_v54 }
0x37f4   :  { %v3757_v54 = vpop.permute.xlu0 %3756 }
0x37f5   :  { %8948 = vpow2.f32 %v3603_v25 }
0x37ff   :  { %v8949_v53 = vpop.eup %8948 }
0x3800   :  { %v3605_v40 = vsel %vm3140_vm6, %v8949_v53, 0.0 }
0x3801   :  { %3606 = vadd.xlane.f32.xlu1 %v3605_v40  ;;  %v10994_v40 = vld [vmem:[#allocation7_spill] sm:$0xff] }
0x3812   :  { %3761 = vperm.xlu1 %8809, %v10428_v10  }
0x388e   :  { %v3607_v35 = vpop.xlane.xlu1 %3606 }
0x388f   :  { %8950 = vrcp.f32 %v3607_v35  ;;  %v10995_v35 = vld [vmem:[#allocation8_spill] sm:$0xff] }
0x3899   :  { %v8951_v14 = vpop.eup %8950 }
0x389a   :  { %v3609_v34 = vmul.f32 %v8951_v14, %v8949_v53  ;;  %v10993_v53 = vld [vmem:[#allocation6_spill] sm:$0xff]  ;;  %v10996_v14 = vld [vmem:[#allocation9_spill] sm:$0xff] }
0x389c   :  { %6009 = vmatmul.mubr.msk.f32.vlgmr.msra.gmra.mrb[40].mxu1 %vm3140_vm6, %v3609_v34 }
0x389d   :  { %8289 = vmatpush3.bf16.msra.mxu1 %v10228_v39 }
0x389e   :  { %8291 = vmatprep.subr.bf16.mxu1 %v10230_v56 }
0x38a1   :  { %8293 = vmatpush3.bf16.msra.mxu1 %v10246_v47 }
0x38a2   :  { %8295 = vmatprep.subr.bf16.mxu1 %v10249_v0 }
0x38a5   :  { %8297 = vmatpush3.bf16.msra.mxu1 %v10264_v15 }
0x38a6   :  { %8299 = vmatprep.subr.bf16.mxu1 %v10267_v48 }
0x38a9   :  { %8301 = vmatpush3.bf16.msra.mxu1 %v10282_v63 }
0x38aa   :  { %8303 = vmatprep.subr.bf16.mxu1 %v10285_v42 }
0x38ad   :  { %8305 = vmatpush3.bf16.msra.mxu1 %v10300_v43 }
0x38ae   :  { %8307 = vmatprep.subr.bf16.mxu1 %v10303_v44 }
0x38b1   :  { %8309 = vmatpush3.bf16.msra.mxu1 %v10318_v4 }
0x38b2   :  { %8311 = vmatprep.subr.bf16.mxu1 %v10321_v11 }
0x38b5   :  { %8313 = vmatpush3.bf16.msra.mxu1 %v10330_v2 }
0x38b6   :  { %8315 = vmatprep.subr.bf16.mxu1 %v10340_v18 }
0x38b9   :  { %8317 = vmatpush3.bf16.msra.mxu1 %v10348_v52 }
0x38ba   :  { %8347 = vmatprep.subr.bf16.mxu1 %v10025_v9 }
0x396f   :  { %v3679_v34 = vpop.f32.mrb[40].mxu1 }
0x3970   :  { %v3681_v22 = vpop.f32.mrb[41].mxu1  ;;  %v3684_v32 = vmul.f32 %v3679_v34, %v10395_v3  ;;  %v10997_v34 = vld [vmem:[#allocation10_spill] sm:$0xff] }
0x3971   :  { %v3685_v36 = vmul.f32 %v3681_v22, %v10391_v5  ;;  %v3762_v22 = vpop.permute.xlu1 %3761 }
0x3973   :  { %3750 = vmatprep.mubr.f32.mxu1 %v3685_v36  ;;  %v10998_v36 = vld [vmem:[#allocation15_spill] sm:$0xff] }
0x3974   :  { %3751 = vmatmul.mubr.f32.vlgmr.msra.gmra.mrb[42].mxu1 %v3684_v32  ;;  %v3764_v32 = vmul.f32 %v3762_v22, %v10998_v36 }
0x3975   :  { %8349 = vmatpush3.bf16.msra.mxu1 %v10036_v61 }
0x3976   :  { %8351 = vmatprep.subr.bf16.mxu1 %v10038_v21 }
0x3979   :  { %8353 = vmatpush3.bf16.msra.mxu1 %v10054_v13 }
0x397a   :  { %8355 = vmatprep.subr.bf16.mxu1 %v10057_v16 }
0x397d   :  { %8357 = vmatpush3.bf16.msra.mxu1 %v10072_v23 }
0x397e   :  { %8359 = vmatprep.subr.bf16.mxu1 %v10075_v29 }
0x3981   :  { %8361 = vmatpush3.bf16.msra.mxu1 %v10084_v30 }
0x3982   :  { %8363 = vmatprep.subr.bf16.mxu1 %v10094_v37 }
0x3985   :  { %8365 = vmatpush3.bf16.msra.mxu1 %v10102_v46 }
0x3986   :  { %8367 = vmatprep.subr.bf16.mxu1 %v10112_v45 }
0x3989   :  { %8369 = vmatpush3.bf16.msra.mxu1 %v10120_v28 }
0x398a   :  { %8371 = vmatprep.subr.bf16.mxu1 %v10133_v50 }
0x398d   :  { %8373 = vmatpush3.bf16.msra.mxu1 %v10144_v33 }
0x398e   :  { %8375 = vmatprep.subr.bf16.mxu1 %v10146_v57 }
0x3991   :  { %8377 = vmatpush3.bf16.msra.mxu1 %v10156_v60 }
0x3992   :  { %8410 = vmatprep.subr.bf16.mxu1 %v10989_v6 }
0x3a47   :  { %v6499_v19 = vpop.f32.mrb[42].mxu1 }
0x3a48   :  { %v6500_v1 = vpop.f32.mrb[43].mxu1 }
0x3a49   :  { %v6501_v59 = vadd.f32 %v6500_v1, %v6499_v19 }
0x3a4b   :  { %v3759_v25 = vsel %vm447_vm3, %v6501_v59, %v3757_v54 }
0x3a4c   :  { %7617 = vmatmul.mubr.msk.f32.vlgmr.msra.gmra.mrb[40].mxu0 %vm160_vm4, %v3759_v25 }
0x3a4d   :  { %8333 = vmatpush1.bf16.msra.mxu0 %v9943_v38  ;;  %3935 = vmatprep.mubr.f32.mxu0 %v10991_v49 }
0x3a4e   :  { %8335 = vmatprep.subr.bf16.mxu0 %v9945_v41 }
0x3a51   :  { %8337 = vmatpush1.bf16.msra.mxu0 %v9961_v51 }
0x3a52   :  { %8339 = vmatprep.subr.bf16.mxu0 %v10993_v53 }
0x3a55   :  { %8341 = vmatpush1.bf16.msra.mxu0 %v10994_v40 }
0x3a56   :  { %8343 = vmatprep.subr.bf16.mxu0 %v10995_v35 }
0x3a59   :  { %8345 = vmatpush1.bf16.msra.mxu0 %v10996_v14 }
0x3a5a   :  { %4030 = vmatprep.subr.mxu0 %v10997_v34 }
0x3b1f   :  { %v3834_v20 = vpop.f32.mrb[40].mxu0 }
0x3b20   :  { %v3835_v19 = vadd.f32 %v3834_v20, %v3764_v32  ;;  %v7618_v1 = vpop.f32.mrb[41].mxu0 }
0x3b22   :  { %v3838_v59 = vadd.f32 %v3835_v19, %v10451_v8 }
0x3b24   :  { %8952 = vtanh.f32 %v3838_v59  ;;  %v6011_v25 = vmul.f32 -1.442695, %v3838_v59 }
0x3b26   :  { %8954 = vpow2.f32 %v6011_v25 }
0x3b2e   :  { %v8953_v54 = vpop.eup %8952 }
0x3b2f   :  { %3848 = vrot.lane.b32.xlu0 %v8953_v54, %s9065_s23 }
0x3b30   :  { %v8955_v40 = vpop.eup %8954 }
0x3b31   :  { %v3842_v35 = vadd.f32 1.0, %v8955_v40 }
0x3b33   :  { %8956 = vrcp.f32 %v3842_v35 }
0x3b3d   :  { %v8957_v14 = vpop.eup %8956 }
0x3b3e   :  { %v3846_v22 = vmul.f32 %v8957_v14, %v10456_v55 }
0x3ba1   :  { %v3849_v53 = vpop.permute.xlu0 %3848 }
0x3ba2   :  { %v3851_v34 = vmul.f32 %v8957_v14, %v3849_v53 }
0x3ba4   :  { %3853 = vrot.lane.b32.xlu1 %v3851_v34, %s9066_s24 }
0x3c16   :  { %v3854_v32 = vpop.permute.xlu1 %3853 }
0x3c17   :  { %v10535_v20 = vadd.f32 %v3854_v32, %v3846_v22  ;;  %v10999_v22 = vld [vmem:[#allocation5_spill] sm:$0xff] }
0x3c19   :  { %8958 = vtanh.f32 %v10535_v20 }
0x3c23   :  { %v8959_v19 = vpop.eup %8958 }
0x3c24   :  { %3859 = vrot.lane.b32.xlu0 %v8959_v19, %s9065_s23 }
0x3c96   :  { %v3860_v1 = vpop.permute.xlu0 %3859 }
0x3c97   :  { %v3862_v59 = vmul.f32 %v8957_v14, %v3860_v1 }
0x3c99   :  { %3864 = vrot.lane.b32.xlu1 %v3862_v59, %s9066_s24 }
0x3d0b   :  { %v3865_v40 = vpop.permute.xlu1 %3864 }
0x3d0c   :  { %v3867_v53 = vsel %vm447_vm3, %v3865_v40, %v10535_v20 }
0x3d0d   :  { %6012 = vmatmul.mubr.msk.f32.vlgmr.msra.gmra.mrb[42].mxu0 %vm160_vm4, %v3867_v53 }
0x3d0e   :  { %4031 = vmatpush1.msra.mxu0 %v10202_v7  ;;  %4094 = vmatprep.mubr.f32.mxu0 %v10991_v49 }
0x3d0f   :  { %8379 = vmatprep.subr.bf16.mxu0 %v10213_v26 }
0x3de0   :  { %v3937_v55 = vpop.f32.mrb[42].mxu0 }
0x3de1   :  { %v3942_v35 = vadd.f32 %v3937_v55, %v10171_v31  ;;  %v3939_v34 = vpop.f32.mrb[43].mxu0 }
0x3de2   :  { %v3943_v14 = vadd.f32 %v3939_v34, %v10175_v24 }
0x3de4   :  { %8960 = vtanh.f32 %v3943_v14 }
0x3de5   :  { %8962 = vtanh.f32 %v3942_v35 }
0x3dee   :  { %v8961_v54 = vpop.eup %8960 }
0x3def   :  { %v8963_v25 = vpop.eup %8962  ;;  %4010 = vmatprep.mubr.f32.mxu1 %v8961_v54 }
0x3df0   :  { %4011 = vmatmul.mubr.f32.vlgmr.msra.gmra.mrb[44].mxu1 %v8963_v25 }
0x3df1   :  { %8412 = vmatpush3.bf16.msra.mxu1 %v10362_v12  ;;  %7635 = vmatprep.mubr.msk.f32.mxu1 %vm9063_vm0, %v10991_v49 }
0x3df2   :  { %8413 = vmatprep.subr.bf16.mxu1 %v10989_v6 }
0x3df5   :  { %8415 = vmatpush3.bf16.msra.mxu1 %v10368_v62 }
0x3df6   :  { %8416 = vmatprep.subr.bf16.mxu1 %v10989_v6 }
0x3df9   :  { %8418 = vmatpush3.bf16.msra.mxu1 %v10378_v17 }
0x3dfa   :  { %8419 = vmatprep.subr.bf16.mxu1 %v10989_v6 }
0x3dfd   :  { %8421 = vmatpush3.bf16.msra.mxu1 %v10421_v58 }
0x3dfe   :  { %8423 = vmatprep.subr.bf16.mxu1 %v10999_v22 }
0x3ec3   :  { %v6543_v32 = vpop.f32.mrb[44].mxu1 }
0x3ec4   :  { %v6544_v19 = vpop.f32.mrb[45].mxu1 }
0x3ec5   :  { %v6545_v1 = vadd.f32 %v6544_v19, %v6543_v32  ;;  %v9074_v19 = vmov 2  }
0x3ec6   :  { %8810 = vset.pattern.permute.xlu1 %v9074_v19 }
0x3ec7   :  { %v4013_v40 = vadd.f32 %v6545_v1, %v10182_v27 }
0x3ec9   :  { %v4016_v53 = vsel %vm3140_vm6, %v4013_v40, -inf }
0x3eca   :  { %4017 = vmax.xlane.f32.xlu0 %v4016_v53 }
0x3ee0   :  { %4173 = vrot.lane.b32.xlu0 %v3862_v59, %s9065_s23 }
0x3f57   :  { %v4018_v55 = vpop.xlane.xlu0 %4017 }
0x3f58   :  { %v4019_v35 = vsub.f32 %v4013_v40, %v4018_v55 }
0x3f5a   :  { %v4020_v34 = vmul.f32 1.442695, %v4019_v35 }
0x3f5b   :  { %v4174_v55 = vpop.permute.xlu0 %4173 }
0x3f5c   :  { %8964 = vpow2.f32 %v4020_v34  ;;  %v11000_v34 = vld [vmem:[#allocation6_spill] sm:$0xff] }
0x3f66   :  { %v8965_v14 = vpop.eup %8964 }
0x3f67   :  { %v4022_v54 = vsel %vm3140_vm6, %v8965_v14, 0.0 }
0x3f68   :  { %4023 = vadd.xlane.f32.xlu1 %v4022_v54  ;;  %v11002_v54 = vld [vmem:[#allocation8_spill] sm:$0xff] }
0x3f79   :  { %4178 = vperm.xlu1 %8810, %v10428_v10  }
0x3ff5   :  { %v4024_v25 = vpop.xlane.xlu1 %4023 }
0x3ff6   :  { %8966 = vrcp.f32 %v4024_v25  ;;  %v11003_v25 = vld [vmem:[#allocation9_spill] sm:$0xff] }
0x4000   :  { %v8967_v22 = vpop.eup %8966 }
0x4001   :  { %v4026_v58 = vmul.f32 %v8967_v22, %v8965_v14  ;;  %v11001_v14 = vld [vmem:[#allocation7_spill] sm:$0xff] }
0x4003   :  { %6013 = vmatmul.mubr.msk.f32.vlgmr.msra.gmra.mrb[44].mxu0 %vm3140_vm6, %v4026_v58 }
0x4004   :  { %8381 = vmatpush3.bf16.msra.mxu0 %v10228_v39 }
0x4005   :  { %8383 = vmatprep.subr.bf16.mxu0 %v10230_v56 }
0x4008   :  { %8385 = vmatpush3.bf16.msra.mxu0 %v10246_v47 }
0x4009   :  { %8387 = vmatprep.subr.bf16.mxu0 %v10249_v0 }
0x400c   :  { %8389 = vmatpush3.bf16.msra.mxu0 %v10264_v15 }
0x400d   :  { %8391 = vmatprep.subr.bf16.mxu0 %v10267_v48 }
0x4010   :  { %8393 = vmatpush3.bf16.msra.mxu0 %v10282_v63 }
0x4011   :  { %8395 = vmatprep.subr.bf16.mxu0 %v10285_v42 }
0x4014   :  { %8397 = vmatpush3.bf16.msra.mxu0 %v10300_v43 }
0x4015   :  { %8399 = vmatprep.subr.bf16.mxu0 %v10303_v44 }
0x4018   :  { %8401 = vmatpush3.bf16.msra.mxu0 %v10318_v4 }
0x4019   :  { %8403 = vmatprep.subr.bf16.mxu0 %v10321_v11 }
0x401c   :  { %8405 = vmatpush3.bf16.msra.mxu0 %v10330_v2 }
0x401d   :  { %8407 = vmatprep.subr.bf16.mxu0 %v10340_v18 }
0x4020   :  { %8409 = vmatpush3.bf16.msra.mxu0 %v10348_v52 }
0x4021   :  { %8439 = vmatprep.subr.bf16.mxu0 %v10025_v9 }
0x40d6   :  { %v4096_v58 = vpop.f32.mrb[44].mxu0 }
0x40d7   :  { %v4098_v59 = vpop.f32.mrb[45].mxu0  ;;  %v4101_v32 = vmul.f32 %v4096_v58, %v10395_v3  ;;  %v11004_v58 = vld [vmem:[#allocation10_spill] sm:$0xff] }
0x40d8   :  { %v4102_v22 = vmul.f32 %v4098_v59, %v10391_v5  ;;  %v4179_v59 = vpop.permute.xlu1 %4178 }
0x40da   :  { %4167 = vmatprep.mubr.f32.mxu0 %v4102_v22  ;;  %v4181_v22 = vmul.f32 %v4179_v59, %v10998_v36 }
0x40db   :  { %4168 = vmatmul.mubr.f32.vlgmr.msra.gmra.mrb[46].mxu0 %v4101_v32 }
0x40dc   :  { %8441 = vmatpush3.bf16.msra.mxu0 %v10036_v61 }
0x40dd   :  { %8443 = vmatprep.subr.bf16.mxu0 %v10038_v21 }
0x40e0   :  { %8445 = vmatpush3.bf16.msra.mxu0 %v10054_v13 }
0x40e1   :  { %8447 = vmatprep.subr.bf16.mxu0 %v10057_v16 }
0x40e4   :  { %8449 = vmatpush3.bf16.msra.mxu0 %v10072_v23 }
0x40e5   :  { %8451 = vmatprep.subr.bf16.mxu0 %v10075_v29 }
0x40e8   :  { %8453 = vmatpush3.bf16.msra.mxu0 %v10084_v30 }
0x40e9   :  { %8455 = vmatprep.subr.bf16.mxu0 %v10094_v37 }
0x40ec   :  { %8457 = vmatpush3.bf16.msra.mxu0 %v10102_v46 }
0x40ed   :  { %8459 = vmatprep.subr.bf16.mxu0 %v10112_v45 }
0x40f0   :  { %8461 = vmatpush3.bf16.msra.mxu0 %v10120_v28 }
0x40f1   :  { %8463 = vmatprep.subr.bf16.mxu0 %v10133_v50 }
0x40f4   :  { %8465 = vmatpush3.bf16.msra.mxu0 %v10144_v33 }
0x40f5   :  { %8467 = vmatprep.subr.bf16.mxu0 %v10146_v57 }
0x40f8   :  { %8469 = vmatpush3.bf16.msra.mxu0 %v10156_v60 }
0x40f9   :  { %8502 = vmatprep.subr.bf16.mxu0 %v10989_v6 }
0x41ae   :  { %v6578_v1 = vpop.f32.mrb[46].mxu0 }
0x41af   :  { %v6579_v40 = vpop.f32.mrb[47].mxu0 }
0x41b0   :  { %v6580_v53 = vadd.f32 %v6579_v40, %v6578_v1 }
0x41b2   :  { %v4176_v35 = vsel %vm447_vm3, %v6580_v53, %v4174_v55 }
0x41b3   :  { %7636 = vmatmul.mubr.msk.f32.vlgmr.msra.gmra.mrb[46].mxu1 %vm160_vm4, %v4176_v35 }
0x41b4   :  { %8425 = vmatpush1.bf16.msra.mxu1 %v9943_v38  ;;  %4352 = vmatprep.mubr.f32.mxu1 %v10991_v49 }
0x41b5   :  { %8427 = vmatprep.subr.bf16.mxu1 %v9945_v41 }
0x41b8   :  { %8429 = vmatpush1.bf16.msra.mxu1 %v9961_v51 }
0x41b9   :  { %8431 = vmatprep.subr.bf16.mxu1 %v11000_v34 }
0x41bc   :  { %8433 = vmatpush1.bf16.msra.mxu1 %v11001_v14 }
0x41bd   :  { %8435 = vmatprep.subr.bf16.mxu1 %v11002_v54 }
0x41c0   :  { %8437 = vmatpush1.bf16.msra.mxu1 %v11003_v25 }
0x41c1   :  { %4447 = vmatprep.subr.mxu1 %v11004_v58 }
0x4286   :  { %v4251_v32 = vpop.f32.mrb[46].mxu1 }
0x4287   :  { %v4252_v19 = vadd.f32 %v4251_v32, %v4181_v22  ;;  %v7637_v1 = vpop.f32.mrb[47].mxu1 }
0x4289   :  { %v4255_v40 = vadd.f32 %v4252_v19, %v10451_v8 }
0x428b   :  { %8968 = vtanh.f32 %v4255_v40  ;;  %v6015_v55 = vmul.f32 -1.442695, %v4255_v40 }
0x428d   :  { %8970 = vpow2.f32 %v6015_v55 }
0x4295   :  { %v8969_v53 = vpop.eup %8968 }
0x4296   :  { %4265 = vrot.lane.b32.xlu0 %v8969_v53, %s9065_s23 }
0x4297   :  { %v8971_v35 = vpop.eup %8970 }
0x4298   :  { %v4259_v54 = vadd.f32 1.0, %v8971_v35 }
0x429a   :  { %8972 = vrcp.f32 %v4259_v54 }
0x42a4   :  { %v8973_v25 = vpop.eup %8972 }
0x42a5   :  { %v4263_v59 = vmul.f32 %v8973_v25, %v10535_v20 }
0x4308   :  { %v4266_v14 = vpop.permute.xlu0 %4265 }
0x4309   :  { %v4268_v58 = vmul.f32 %v8973_v25, %v4266_v14 }
0x430b   :  { %4270 = vrot.lane.b32.xlu1 %v4268_v58, %s9066_s24 }
0x437d   :  { %v4271_v22 = vpop.permute.xlu1 %4270 }
0x437e   :  { %v10614_v32 = vadd.f32 %v4271_v22, %v4263_v59  ;;  %v11006_v59 = vld [vmem:[#allocation5_spill] sm:$0xff] }
0x4380   :  { %8974 = vtanh.f32 %v10614_v32 }
0x438a   :  { %v8975_v19 = vpop.eup %8974 }
0x438b   :  { %4276 = vrot.lane.b32.xlu0 %v8975_v19, %s9065_s23 }
0x43fd   :  { %v4277_v1 = vpop.permute.xlu0 %4276 }
0x43fe   :  { %v4279_v40 = vmul.f32 %v8973_v25, %v4277_v1 }
0x4400   :  { %4281 = vrot.lane.b32.xlu1 %v4279_v40, %s9066_s24 }
0x4472   :  { %v4282_v54 = vpop.permute.xlu1 %4281 }
0x4473   :  { %v4284_v14 = vsel %vm447_vm3, %v4282_v54, %v10614_v32 }
0x4474   :  { %6016 = vmatmul.mubr.msk.f32.vlgmr.msra.gmra.mrb[48].mxu1 %vm160_vm4, %v4284_v14 }
0x4475   :  { %4448 = vmatpush1.msra.mxu1 %v10202_v7  ;;  %4511 = vmatprep.mubr.f32.mxu1 %v10991_v49  ;;  %v11005_v7 = vld [vmem:[#allocation14_spill] sm:$0xff] }
0x4476   :  { %8471 = vmatprep.subr.bf16.mxu1 %v10213_v26 }
0x4547   :  { %v4354_v20 = vpop.f32.mrb[48].mxu1 }
0x4548   :  { %v4359_v53 = vadd.f32 %v4354_v20, %v10171_v31  ;;  %v4356_v55 = vpop.f32.mrb[49].mxu1 }
0x4549   :  { %v4360_v25 = vadd.f32 %v4356_v55, %v10175_v24 }
0x454b   :  { %8976 = vtanh.f32 %v4360_v25 }
0x454c   :  { %8978 = vtanh.f32 %v4359_v53 }
0x4555   :  { %v8977_v35 = vpop.eup %8976 }
0x4556   :  { %v8979_v58 = vpop.eup %8978  ;;  %4427 = vmatprep.mubr.f32.mxu0 %v8977_v35 }
0x4557   :  { %4428 = vmatmul.mubr.f32.vlgmr.msra.gmra.mrb[48].mxu0 %v8979_v58 }
0x4558   :  { %8504 = vmatpush3.bf16.msra.mxu0 %v10362_v12  ;;  %7654 = vmatprep.mubr.msk.f32.mxu0 %vm9063_vm0, %v10991_v49 }
0x4559   :  { %8505 = vmatprep.subr.bf16.mxu0 %v10989_v6 }
0x455c   :  { %8507 = vmatpush3.bf16.msra.mxu0 %v10368_v62 }
0x455d   :  { %8508 = vmatprep.subr.bf16.mxu0 %v10989_v6 }
0x4560   :  { %8510 = vmatpush3.bf16.msra.mxu0 %v10378_v17 }
0x4561   :  { %8511 = vmatprep.subr.bf16.mxu0 %v10989_v6 }
0x4564   :  { %8513 = vmatpush3.bf16.msra.mxu0 %v11005_v7 }
0x4565   :  { %8515 = vmatprep.subr.bf16.mxu0 %v11006_v59 }
0x462a   :  { %v6622_v22 = vpop.f32.mrb[48].mxu0 }
0x462b   :  { %v6623_v19 = vpop.f32.mrb[49].mxu0 }
0x462c   :  { %v6624_v1 = vadd.f32 %v6623_v19, %v6622_v22  ;;  %v9075_v19 = vmov 3  }
0x462d   :  { %8811 = vset.pattern.permute.xlu1 %v9075_v19 }
0x462e   :  { %v4430_v54 = vadd.f32 %v6624_v1, %v10182_v27 }
0x4630   :  { %v4433_v14 = vsel %vm3140_vm6, %v4430_v54, -inf }
0x4631   :  { %4434 = vmax.xlane.f32.xlu0 %v4433_v14 }
0x4647   :  { %4590 = vrot.lane.b32.xlu0 %v4279_v40, %s9065_s23 }
0x46be   :  { %v4435_v20 = vpop.xlane.xlu0 %4434 }
0x46bf   :  { %v4436_v53 = vsub.f32 %v4430_v54, %v4435_v20 }
0x46c1   :  { %v4437_v55 = vmul.f32 1.442695, %v4436_v53 }
0x46c2   :  { %v4591_v20 = vpop.permute.xlu0 %4590 }
0x46c3   :  { %8980 = vpow2.f32 %v4437_v55  ;;  %v11007_v55 = vld [vmem:[#allocation7_spill] sm:$0xff] }
0x46cd   :  { %v8981_v25 = vpop.eup %8980 }
0x46ce   :  { %v4439_v35 = vsel %vm3140_vm6, %v8981_v25, 0.0 }
0x46cf   :  { %4440 = vadd.xlane.f32.xlu1 %v4439_v35  ;;  %v11009_v35 = vld [vmem:[#allocation9_spill] sm:$0xff] }
0x46e0   :  { %4595 = vperm.xlu1 %8811, %v10428_v10  }
0x475c   :  { %v4441_v58 = vpop.xlane.xlu1 %4440 }
0x475d   :  { %8982 = vrcp.f32 %v4441_v58  ;;  %v10690_v58 = vld [vmem:[%s10948_s9 + $0x8] sm:$0xff] }
0x475e   :  { %11010 = vst [vmem:[#allocation15_spill] sm:$0xff] %v10690_v58 }
0x4767   :  { %v8983_v59 = vpop.eup %8982 }
0x4768   :  { %v4443_v7 = vmul.f32 %v8983_v59, %v8981_v25  ;;  %v11008_v25 = vld [vmem:[#allocation8_spill] sm:$0xff] }
0x476a   :  { %6017 = vmatmul.mubr.msk.f32.vlgmr.msra.gmra.mrb[50].mxu1 %vm3140_vm6, %v4443_v7 }
0x476b   :  { %8473 = vmatpush3.bf16.msra.mxu1 %v10228_v39 }
0x476c   :  { %8475 = vmatprep.subr.bf16.mxu1 %v10230_v56 }
0x476f   :  { %8477 = vmatpush3.bf16.msra.mxu1 %v10246_v47 }
0x4770   :  { %8479 = vmatprep.subr.bf16.mxu1 %v10249_v0 }
0x4773   :  { %8481 = vmatpush3.bf16.msra.mxu1 %v10264_v15 }
0x4774   :  { %8483 = vmatprep.subr.bf16.mxu1 %v10267_v48 }
0x4777   :  { %8485 = vmatpush3.bf16.msra.mxu1 %v10282_v63 }
0x4778   :  { %8487 = vmatprep.subr.bf16.mxu1 %v10285_v42 }
0x477b   :  { %8489 = vmatpush3.bf16.msra.mxu1 %v10300_v43 }
0x477c   :  { %8491 = vmatprep.subr.bf16.mxu1 %v10303_v44 }
0x477f   :  { %8493 = vmatpush3.bf16.msra.mxu1 %v10318_v4 }
0x4780   :  { %8495 = vmatprep.subr.bf16.mxu1 %v10321_v11 }
0x4783   :  { %8497 = vmatpush3.bf16.msra.mxu1 %v10330_v2 }
0x4784   :  { %8499 = vmatprep.subr.bf16.mxu1 %v10340_v18 }
0x4787   :  { %8501 = vmatpush3.bf16.msra.mxu1 %v10348_v52 }
0x4788   :  { %8531 = vmatprep.subr.bf16.mxu1 %v10025_v9 }
0x483d   :  { %v4513_v40 = vpop.f32.mrb[50].mxu1 }
0x483e   :  { %v4515_v7 = vpop.f32.mrb[51].mxu1  ;;  %v4518_v22 = vmul.f32 %v4513_v40, %v10395_v3  ;;  %v4596_v40 = vpop.permute.xlu1 %4595 }
0x483f   :  { %v4519_v59 = vmul.f32 %v4515_v7, %v10391_v5  ;;  %v4598_v7 = vmul.f32 %v4596_v40, %v10998_v36 }
0x4841   :  { %4584 = vmatprep.mubr.f32.mxu1 %v4519_v59 }
0x4842   :  { %4585 = vmatmul.mubr.f32.vlgmr.msra.gmra.mrb[52].mxu1 %v4518_v22 }
0x4843   :  { %8533 = vmatpush3.bf16.msra.mxu1 %v10036_v61 }
0x4844   :  { %8535 = vmatprep.subr.bf16.mxu1 %v10038_v21 }
0x4847   :  { %8537 = vmatpush3.bf16.msra.mxu1 %v10054_v13 }
0x4848   :  { %8539 = vmatprep.subr.bf16.mxu1 %v10057_v16 }
0x484b   :  { %8541 = vmatpush3.bf16.msra.mxu1 %v10072_v23 }
0x484c   :  { %8543 = vmatprep.subr.bf16.mxu1 %v10075_v29 }
0x484f   :  { %8545 = vmatpush3.bf16.msra.mxu1 %v10084_v30 }
0x4850   :  { %8547 = vmatprep.subr.bf16.mxu1 %v10094_v37 }
0x4853   :  { %8549 = vmatpush3.bf16.msra.mxu1 %v10102_v46 }
0x4854   :  { %8551 = vmatprep.subr.bf16.mxu1 %v10112_v45 }
0x4857   :  { %8553 = vmatpush3.bf16.msra.mxu1 %v10120_v28 }
0x4858   :  { %8555 = vmatprep.subr.bf16.mxu1 %v10133_v50 }
0x485b   :  { %8557 = vmatpush3.bf16.msra.mxu1 %v10144_v33 }
0x485c   :  { %8559 = vmatprep.subr.bf16.mxu1 %v10146_v57 }
0x485f   :  { %8561 = vmatpush3.bf16.msra.mxu1 %v10156_v60 }
0x4860   :  { %8594 = vmatprep.subr.bf16.mxu1 %v10989_v6 }
0x4915   :  { %v6657_v1 = vpop.f32.mrb[52].mxu1 }
0x4916   :  { %v6658_v54 = vpop.f32.mrb[53].mxu1 }
0x4917   :  { %v6659_v14 = vadd.f32 %v6658_v54, %v6657_v1 }
0x4919   :  { %v4593_v53 = vsel %vm447_vm3, %v6659_v14, %v4591_v20 }
0x491a   :  { %7655 = vmatmul.mubr.msk.f32.vlgmr.msra.gmra.mrb[50].mxu0 %vm160_vm4, %v4593_v53 }
0x491b   :  { %8517 = vmatpush1.bf16.msra.mxu0 %v9943_v38  ;;  %4769 = vmatprep.mubr.f32.mxu0 %v10991_v49 }
0x491c   :  { %8519 = vmatprep.subr.bf16.mxu0 %v9945_v41 }
0x491f   :  { %8521 = vmatpush1.bf16.msra.mxu0 %v9961_v51 }
0x4920   :  { %8523 = vmatprep.subr.bf16.mxu0 %v11000_v34 }
0x4923   :  { %8525 = vmatpush1.bf16.msra.mxu0 %v11007_v55 }
0x4924   :  { %8527 = vmatprep.subr.bf16.mxu0 %v11008_v25 }
0x4927   :  { %8529 = vmatpush1.bf16.msra.mxu0 %v11009_v35 }
0x4928   :  { %4864 = vmatprep.subr.mxu0 %v10690_v58 }
0x49ed   :  { %v4668_v59 = vpop.f32.mrb[50].mxu0 }
0x49ee   :  { %v4669_v22 = vadd.f32 %v4668_v59, %v4598_v7  ;;  %v7656_v19 = vpop.f32.mrb[51].mxu0 }
0x49f0   :  { %v4672_v1 = vadd.f32 %v4669_v22, %v10451_v8 }
0x49f2   :  { %8984 = vtanh.f32 %v4672_v1  ;;  %v6019_v14 = vmul.f32 -1.442695, %v4672_v1 }
0x49f4   :  { %8986 = vpow2.f32 %v6019_v14 }
0x49fc   :  { %v8985_v54 = vpop.eup %8984 }
0x49fd   :  { %4682 = vrot.lane.b32.xlu0 %v8985_v54, %s9065_s23 }
0x49fe   :  { %v8987_v20 = vpop.eup %8986 }
0x49ff   :  { %v4676_v53 = vadd.f32 1.0, %v8987_v20 }
0x4a01   :  { %8988 = vrcp.f32 %v4676_v53 }
0x4a0b   :  { %v8989_v35 = vpop.eup %8988 }
0x4a0c   :  { %v4680_v40 = vmul.f32 %v8989_v35, %v10614_v32  ;;  %v10709_v32 = vld [vmem:[%s10948_s9] sm:$0xff] }
0x4a6f   :  { %v4683_v25 = vpop.permute.xlu0 %4682 }
0x4a70   :  { %v4685_v58 = vmul.f32 %v8989_v35, %v4683_v25 }
0x4a72   :  { %4687 = vrot.lane.b32.xlu1 %v4685_v58, %s9066_s24 }
0x4ae4   :  { %v4688_v7 = vpop.permute.xlu1 %4687 }
0x4ae5   :  { %v10698_v59 = vadd.f32 %v4688_v7, %v4680_v40  ;;  %v11011_v40 = vld [vmem:[#allocation14_spill] sm:$0xff]  ;;  %v11012_v7 = vld [vmem:[#allocation5_spill] sm:$0xff] }
0x4ae7   :  { %8990 = vtanh.f32 %v10698_v59 }
0x4af1   :  { %v8991_v8 = vpop.eup %8990 }
0x4af2   :  { %4693 = vrot.lane.b32.xlu0 %v8991_v8, %s9065_s23 }
0x4b64   :  { %v4694_v22 = vpop.permute.xlu0 %4693 }
0x4b65   :  { %v4696_v19 = vmul.f32 %v8989_v35, %v4694_v22 }
0x4b67   :  { %4698 = vrot.lane.b32.xlu1 %v4696_v19, %s9066_s24 }
0x4bd9   :  { %v4699_v1 = vpop.permute.xlu1 %4698 }
0x4bda   :  { %v4701_v25 = vsel %vm447_vm3, %v4699_v1, %v10698_v59 }
0x4bdb   :  { %6020 = vmatmul.mubr.msk.f32.vlgmr.msra.gmra.mrb[52].mxu0 %vm160_vm4, %v4701_v25 }
0x4bdc   :  { %4865 = vmatpush1.msra.mxu0 %v10709_v32  ;;  %4928 = vmatprep.mubr.f32.mxu0 %v10991_v49 }
0x4bdd   :  { %8563 = vmatprep.subr.bf16.mxu0 %v10213_v26 }
0x4cae   :  { %v4771_v35 = vpop.f32.mrb[52].mxu0 }
0x4caf   :  { %v4776_v58 = vadd.f32 %v4771_v35, %v10171_v31  ;;  %v4773_v54 = vpop.f32.mrb[53].mxu0 }
0x4cb0   :  { %v4777_v14 = vadd.f32 %v4773_v54, %v10175_v24 }
0x4cb2   :  { %8992 = vtanh.f32 %v4777_v14 }
0x4cb3   :  { %8994 = vtanh.f32 %v4776_v58 }
0x4cbc   :  { %v8993_v20 = vpop.eup %8992 }
0x4cbd   :  { %v8995_v53 = vpop.eup %8994  ;;  %4844 = vmatprep.mubr.f32.mxu1 %v8993_v20 }
0x4cbe   :  { %4845 = vmatmul.mubr.f32.vlgmr.msra.gmra.mrb[54].mxu1 %v8995_v53 }
0x4cbf   :  { %8596 = vmatpush3.bf16.msra.mxu1 %v10362_v12  ;;  %7673 = vmatprep.mubr.msk.f32.mxu1 %vm9063_vm0, %v10991_v49 }
0x4cc0   :  { %8597 = vmatprep.subr.bf16.mxu1 %v10989_v6 }
0x4cc3   :  { %8599 = vmatpush3.bf16.msra.mxu1 %v10368_v62 }
0x4cc4   :  { %8600 = vmatprep.subr.bf16.mxu1 %v10989_v6 }
0x4cc7   :  { %8602 = vmatpush3.bf16.msra.mxu1 %v10378_v17 }
0x4cc8   :  { %8603 = vmatprep.subr.bf16.mxu1 %v10989_v6 }
0x4ccb   :  { %8605 = vmatpush3.bf16.msra.mxu1 %v11011_v40 }
0x4ccc   :  { %8607 = vmatprep.subr.bf16.mxu1 %v11012_v7 }
0x4d91   :  { %v6701_v8 = vpop.f32.mrb[54].mxu1 }
0x4d92   :  { %v6702_v22 = vpop.f32.mrb[55].mxu1 }
0x4d93   :  { %v6703_v1 = vadd.f32 %v6702_v22, %v6701_v8  ;;  %v9076_v8 = vmov 4  }
0x4d94   :  { %8812 = vset.pattern.permute.xlu1 %v9076_v8 }
0x4d95   :  { %v4847_v25 = vadd.f32 %v6703_v1, %v10182_v27 }
0x4d97   :  { %v4850_v35 = vsel %vm3140_vm6, %v4847_v25, -inf }
0x4d98   :  { %4851 = vmax.xlane.f32.xlu0 %v4850_v35 }
0x4dae   :  { %5007 = vrot.lane.b32.xlu0 %v4696_v19, %s9065_s23 }
0x4e25   :  { %v4852_v58 = vpop.xlane.xlu0 %4851 }
0x4e26   :  { %v4853_v54 = vsub.f32 %v4847_v25, %v4852_v58 }
0x4e28   :  { %v4854_v14 = vmul.f32 1.442695, %v4853_v54  ;;  %v11014_v54 = vld [vmem:[#allocation9_spill] sm:$0xff] }
0x4e29   :  { %v5008_v35 = vpop.permute.xlu0 %5007 }
0x4e2a   :  { %8996 = vpow2.f32 %v4854_v14  ;;  %v11015_v14 = vld [vmem:[#allocation15_spill] sm:$0xff] }
0x4e34   :  { %v8997_v20 = vpop.eup %8996 }
0x4e35   :  { %v4856_v53 = vsel %vm3140_vm6, %v8997_v20, 0.0 }
0x4e36   :  { %4857 = vadd.xlane.f32.xlu1 %v4856_v53 }
0x4e47   :  { %5012 = vperm.xlu1 %8812, %v10428_v10   ;;  %v11013_v10 = vld [vmem:[#allocation8_spill] sm:$0xff] }
0x4ec3   :  { %v4858_v40 = vpop.xlane.xlu1 %4857 }
0x4ec4   :  { %8998 = vrcp.f32 %v4858_v40 }
0x4ece   :  { %v8999_v7 = vpop.eup %8998 }
0x4ecf   :  { %v4860_v17 = vmul.f32 %v8999_v7, %v8997_v20  ;;  %v5013_v20 = vpop.permute.xlu1 %5012 }
0x4ed0   :  { %v5015_v53 = vmul.f32 %v5013_v20, %v10998_v36 }
0x4ed1   :  { %6021 = vmatmul.mubr.msk.f32.vlgmr.msra.gmra.mrb[54].mxu0 %vm3140_vm6, %v4860_v17 }
0x4ed2   :  { %8565 = vmatpush3.bf16.msra.mxu0 %v10228_v39 }
0x4ed3   :  { %8567 = vmatprep.subr.bf16.mxu0 %v10230_v56 }
0x4ed6   :  { %8569 = vmatpush3.bf16.msra.mxu0 %v10246_v47 }
0x4ed7   :  { %8571 = vmatprep.subr.bf16.mxu0 %v10249_v0 }
0x4eda   :  { %8573 = vmatpush3.bf16.msra.mxu0 %v10264_v15 }
0x4edb   :  { %8575 = vmatprep.subr.bf16.mxu0 %v10267_v48 }
0x4ede   :  { %8577 = vmatpush3.bf16.msra.mxu0 %v10282_v63 }
0x4edf   :  { %8579 = vmatprep.subr.bf16.mxu0 %v10285_v42 }
0x4ee2   :  { %8581 = vmatpush3.bf16.msra.mxu0 %v10300_v43 }
0x4ee3   :  { %8583 = vmatprep.subr.bf16.mxu0 %v10303_v44 }
0x4ee6   :  { %8585 = vmatpush3.bf16.msra.mxu0 %v10318_v4 }
0x4ee7   :  { %8587 = vmatprep.subr.bf16.mxu0 %v10321_v11 }
0x4eea   :  { %8589 = vmatpush3.bf16.msra.mxu0 %v10330_v2 }
0x4eeb   :  { %8591 = vmatprep.subr.bf16.mxu0 %v10340_v18 }
0x4eee   :  { %8593 = vmatpush3.bf16.msra.mxu0 %v10348_v52 }
0x4eef   :  { %8623 = vmatprep.subr.bf16.mxu0 %v10025_v9 }
0x4fa4   :  { %v4930_v17 = vpop.f32.mrb[54].mxu0 }
0x4fa5   :  { %v4932_v19 = vpop.f32.mrb[55].mxu0  ;;  %v4935_v7 = vmul.f32 %v4930_v17, %v10395_v3 }
0x4fa6   :  { %v4936_v40 = vmul.f32 %v4932_v19, %v10391_v5 }
0x4fa8   :  { %5001 = vmatprep.mubr.f32.mxu0 %v4936_v40 }
0x4fa9   :  { %5002 = vmatmul.mubr.f32.vlgmr.msra.gmra.mrb[56].mxu0 %v4935_v7  ;;  %v10781_v7 = vld [vmem:[%s10951_s12 + $0x3] ss:$0 sm:$0xff] }
0x4faa   :  { %8625 = vmatpush3.bf16.msra.mxu0 %v10036_v61 }
0x4fab   :  { %8627 = vmatprep.subr.bf16.mxu0 %v10038_v21 }
0x4fae   :  { %8629 = vmatpush3.bf16.msra.mxu0 %v10054_v13 }
0x4faf   :  { %8631 = vmatprep.subr.bf16.mxu0 %v10057_v16 }
0x4fb2   :  { %8633 = vmatpush3.bf16.msra.mxu0 %v10072_v23 }
0x4fb3   :  { %8635 = vmatprep.subr.bf16.mxu0 %v10075_v29 }
0x4fb6   :  { %8637 = vmatpush3.bf16.msra.mxu0 %v10084_v30 }
0x4fb7   :  { %8639 = vmatprep.subr.bf16.mxu0 %v10094_v37 }
0x4fba   :  { %8641 = vmatpush3.bf16.msra.mxu0 %v10102_v46 }
0x4fbb   :  { %8643 = vmatprep.subr.bf16.mxu0 %v10112_v45 }
0x4fbe   :  { %8645 = vmatpush3.bf16.msra.mxu0 %v10120_v28 }
0x4fbf   :  { %8647 = vmatprep.subr.bf16.mxu0 %v10133_v50 }
0x4fc2   :  { %8649 = vmatpush3.bf16.msra.mxu0 %v10144_v33 }
0x4fc3   :  { %8651 = vmatprep.subr.bf16.mxu0 %v10146_v57 }
0x4fc6   :  { %8653 = vmatpush3.bf16.msra.mxu0 %v10156_v60 }
0x4fc7   :  { %8686 = vmatprep.subr.bf16.mxu0 %v10989_v6 }
0x507c   :  { %v6736_v22 = vpop.f32.mrb[56].mxu0 }
0x507d   :  { %v6737_v1 = vpop.f32.mrb[57].mxu0 }
0x507e   :  { %v6738_v25 = vadd.f32 %v6737_v1, %v6736_v22 }
0x5080   :  { %v5010_v58 = vsel %vm447_vm3, %v6738_v25, %v5008_v35 }
0x5081   :  { %7674 = vmatmul.mubr.msk.f32.vlgmr.msra.gmra.mrb[56].mxu1 %vm160_vm4, %v5010_v58 }
0x5082   :  { %8609 = vmatpush1.bf16.msra.mxu1 %v9943_v38  ;;  %5186 = vmatprep.mubr.f32.mxu1 %v10991_v49 }
0x5083   :  { %8611 = vmatprep.subr.bf16.mxu1 %v9945_v41 }
0x5086   :  { %8613 = vmatpush1.bf16.msra.mxu1 %v9961_v51 }
0x5087   :  { %8615 = vmatprep.subr.bf16.mxu1 %v11000_v34 }
0x508a   :  { %8617 = vmatpush1.bf16.msra.mxu1 %v11007_v55 }
0x508b   :  { %8619 = vmatprep.subr.bf16.mxu1 %v11013_v10 }
0x508e   :  { %8621 = vmatpush1.bf16.msra.mxu1 %v11014_v54 }
0x508f   :  { %5281 = vmatprep.subr.mxu1 %v11015_v14 }
0x5154   :  { %v5085_v17 = vpop.f32.mrb[56].mxu1 }
0x5155   :  { %v5086_v19 = vadd.f32 %v5085_v17, %v5015_v53  ;;  %v7675_v40 = vpop.f32.mrb[57].mxu1 }
0x5157   :  { %v5089_v8 = vadd.f32 %v10781_v7, %v5086_v19 }
0x5159   :  { %9000 = vtanh.f32 %v5089_v8  ;;  %v6023_v1 = vmul.f32 -1.442695, %v5089_v8 }
0x515b   :  { %9002 = vpow2.f32 %v6023_v1 }
0x5163   :  { %v9001_v22 = vpop.eup %9000 }
0x5164   :  { %5099 = vrot.lane.b32.xlu0 %v9001_v22, %s9065_s23 }
0x5165   :  { %v9003_v25 = vpop.eup %9002 }
0x5166   :  { %v5093_v35 = vadd.f32 1.0, %v9003_v25 }
0x5168   :  { %9004 = vrcp.f32 %v5093_v35 }
0x5172   :  { %v9005_v36 = vpop.eup %9004 }
0x5173   :  { %v5097_v53 = vmul.f32 %v9005_v36, %v10698_v59 }
0x51d6   :  { %v5100_v58 = vpop.permute.xlu0 %5099 }
0x51d7   :  { %v5102_v20 = vmul.f32 %v9005_v36, %v5100_v58 }
0x51d9   :  { %5104 = vrot.lane.b32.xlu1 %v5102_v20, %s9066_s24 }
0x524b   :  { %v5105_v17 = vpop.permute.xlu1 %5104 }
0x524c   :  { %v10787_v40 = vadd.f32 %v5105_v17, %v5097_v53  ;;  %v11016_v17 = vld [vmem:[#allocation13_spill] sm:$0xff] }
0x524e   :  { %9006 = vtanh.f32 %v10787_v40 }
0x5258   :  { %v9007_v19 = vpop.eup %9006 }
0x5259   :  { %5110 = vrot.lane.b32.xlu0 %v9007_v19, %s9065_s23  ;;  %v11017_v19 = vld [vmem:[#allocation14_spill] sm:$0xff] }
0x52cb   :  { %v5111_v8 = vpop.permute.xlu0 %5110 }
0x52cc   :  { %v5113_v22 = vmul.f32 %v9005_v36, %v5111_v8  ;;  %v11018_v8 = vld [vmem:[#allocation5_spill] sm:$0xff] }
0x52ce   :  { %5115 = vrot.lane.b32.xlu1 %v5113_v22, %s9066_s24 }
0x5340   :  { %v5116_v1 = vpop.permute.xlu1 %5115 }
0x5341   :  { %v5118_v25 = vsel %vm447_vm3, %v5116_v1, %v10787_v40 }
0x5342   :  { %6024 = vmatmul.mubr.msk.f32.vlgmr.msra.gmra.mrb[58].mxu1 %vm160_vm4, %v5118_v25 }
0x5343   :  { %5282 = vmatpush1.msra.mxu1 %v10709_v32  ;;  %5345 = vmatprep.mubr.f32.mxu1 %v10991_v49 }
0x5344   :  { %8655 = vmatprep.subr.bf16.mxu1 %v10213_v26 }
0x5415   :  { %v5188_v59 = vpop.f32.mrb[58].mxu1 }
0x5416   :  { %v5193_v35 = vadd.f32 %v5188_v59, %v10171_v31  ;;  %v5190_v58 = vpop.f32.mrb[59].mxu1 }
0x5417   :  { %v5194_v36 = vadd.f32 %v5190_v58, %v10175_v24 }
0x5419   :  { %9008 = vtanh.f32 %v5194_v36 }
0x541a   :  { %9010 = vtanh.f32 %v5193_v35 }
0x5423   :  { %v9009_v20 = vpop.eup %9008 }
0x5424   :  { %v9011_v53 = vpop.eup %9010  ;;  %5261 = vmatprep.mubr.f32.mxu0 %v9009_v20 }
0x5425   :  { %5262 = vmatmul.mubr.f32.vlgmr.msra.gmra.mrb[58].mxu0 %v9011_v53 }
0x5426   :  { %8688 = vmatpush3.bf16.msra.mxu0 %v10362_v12  ;;  %7692 = vmatprep.mubr.msk.f32.mxu0 %vm9063_vm0, %v10991_v49 }
0x5427   :  { %8689 = vmatprep.subr.bf16.mxu0 %v10989_v6 }
0x542a   :  { %8691 = vmatpush3.bf16.msra.mxu0 %v10368_v62 }
0x542b   :  { %8692 = vmatprep.subr.bf16.mxu0 %v10989_v6 }
0x542e   :  { %8694 = vmatpush3.bf16.msra.mxu0 %v11016_v17 }
0x542f   :  { %8695 = vmatprep.subr.bf16.mxu0 %v10989_v6 }
0x5432   :  { %8697 = vmatpush3.bf16.msra.mxu0 %v11017_v19 }
0x5433   :  { %8699 = vmatprep.subr.bf16.mxu0 %v11018_v8 }
0x54f8   :  { %v6780_v1 = vpop.f32.mrb[58].mxu0 }
0x54f9   :  { %v6781_v25 = vpop.f32.mrb[59].mxu0 }
0x54fa   :  { %v6782_v59 = vadd.f32 %v6781_v25, %v6780_v1 }
0x54fc   :  { %v5264_v35 = vadd.f32 %v6782_v59, %v10182_v27 }
0x54fe   :  { %v5267_v58 = vsel %vm3140_vm6, %v5264_v35, -inf }
0x54ff   :  { %5268 = vmax.xlane.f32.xlu0 %v5267_v58 }
0x5515   :  { %5424 = vrot.lane.b32.xlu0 %v5113_v22, %s9065_s23 }
0x558c   :  { %v5269_v36 = vpop.xlane.xlu0 %5268 }
0x558d   :  { %v5270_v20 = vsub.f32 %v5264_v35, %v5269_v36 }
0x558f   :  { %v5271_v53 = vmul.f32 1.442695, %v5270_v20 }
0x5591   :  { %9012 = vpow2.f32 %v5271_v53 }
0x559b   :  { %v9013_v17 = vpop.eup %9012 }
0x559c   :  { %v5273_v62 = vsel %vm3140_vm6, %v9013_v17, 0.0 }
0x559d   :  { %5274 = vadd.xlane.f32.xlu1 %v5273_v62 }
0x562a   :  { %v5275_v19 = vpop.xlane.xlu1 %5274 }
0x562b   :  { %9014 = vrcp.f32 %v5275_v19 }
0x5635   :  { %v9015_v8 = vpop.eup %9014 }
0x5636   :  { %v5277_v12 = vmul.f32 %v9015_v8, %v9013_v17 }
0x5638   :  { %6025 = vmatmul.mubr.msk.f32.vlgmr.msra.gmra.mrb[60].mxu1 %vm3140_vm6, %v5277_v12 }
0x5639   :  { %8657 = vmatpush3.bf16.msra.mxu1 %v10228_v39 }
0x563a   :  { %8659 = vmatprep.subr.bf16.mxu1 %v10230_v56 }
0x563d   :  { %8661 = vmatpush3.bf16.msra.mxu1 %v10246_v47 }
0x563e   :  { %8663 = vmatprep.subr.bf16.mxu1 %v10249_v0 }
0x5641   :  { %8665 = vmatpush3.bf16.msra.mxu1 %v10264_v15 }
0x5642   :  { %8667 = vmatprep.subr.bf16.mxu1 %v10267_v48 }
0x5645   :  { %8669 = vmatpush3.bf16.msra.mxu1 %v10282_v63 }
0x5646   :  { %8671 = vmatprep.subr.bf16.mxu1 %v10285_v42 }
0x5649   :  { %8673 = vmatpush3.bf16.msra.mxu1 %v10300_v43 }
0x564a   :  { %8675 = vmatprep.subr.bf16.mxu1 %v10303_v44 }
0x564d   :  { %8677 = vmatpush3.bf16.msra.mxu1 %v10318_v4 }
0x564e   :  { %8679 = vmatprep.subr.bf16.mxu1 %v10321_v11 }
0x5651   :  { %8681 = vmatpush3.bf16.msra.mxu1 %v10330_v2 }
0x5652   :  { %8683 = vmatprep.subr.bf16.mxu1 %v10340_v18 }
0x5655   :  { %8685 = vmatpush3.bf16.msra.mxu1 %v10348_v52 }
0x5656   :  { %8715 = vmatprep.subr.bf16.mxu1 %v10025_v9  ;;  %v9077_v9 = vmov 5  }
0x5657   :  { %8813 = vset.pattern.permute.xlu1 %v9077_v9 }
0x570b   :  { %v5347_v12 = vpop.f32.mrb[60].mxu1 }
0x570c   :  { %v5349_v62 = vpop.f32.mrb[61].mxu1  ;;  %v5352_v17 = vmul.f32 %v5347_v12, %v10395_v3  ;;  %v11019_v12 = vld [vmem:[#allocation11_spill] sm:$0xff] }
0x570d   :  { %v5353_v22 = vmul.f32 %v5349_v62, %v10391_v5 }
0x570f   :  { %5418 = vmatprep.mubr.f32.mxu1 %v5353_v22 }
0x5710   :  { %5419 = vmatmul.mubr.f32.vlgmr.msra.gmra.mrb[62].mxu1 %v5352_v17 }
0x5711   :  { %8717 = vmatpush3.bf16.msra.mxu1 %v10036_v61  ;;  %v10852_v61 = vld [vmem:[%s10940_s1] sm:$0xff] }
0x5712   :  { %8719 = vmatprep.subr.bf16.mxu1 %v10038_v21  ;;  %5429 = vperm.xlu1 %8813, %v10852_v61  }
0x5715   :  { %8721 = vmatpush3.bf16.msra.mxu1 %v10054_v13 }
0x5716   :  { %8723 = vmatprep.subr.bf16.mxu1 %v10057_v16 }
0x5719   :  { %8725 = vmatpush3.bf16.msra.mxu1 %v10072_v23  ;;  %v5425_v23 = vpop.permute.xlu0 %5424 }
0x571a   :  { %8727 = vmatprep.subr.bf16.mxu1 %v10075_v29 }
0x571d   :  { %8729 = vmatpush3.bf16.msra.mxu1 %v10084_v30 }
0x571e   :  { %8731 = vmatprep.subr.bf16.mxu1 %v10094_v37 }
0x5721   :  { %8733 = vmatpush3.bf16.msra.mxu1 %v10102_v46 }
0x5722   :  { %8735 = vmatprep.subr.bf16.mxu1 %v10112_v45 }
0x5725   :  { %8737 = vmatpush3.bf16.msra.mxu1 %v10120_v28 }
0x5726   :  { %8739 = vmatprep.subr.bf16.mxu1 %v10133_v50 }
0x5729   :  { %8741 = vmatpush3.bf16.msra.mxu1 %v10144_v33 }
0x572a   :  { %8743 = vmatprep.subr.bf16.mxu1 %v10146_v57 }
0x572d   :  { %8745 = vmatpush3.bf16.msra.mxu1 %v10156_v60 }
0x572e   :  { %8778 = vmatprep.subr.bf16.mxu1 %v10989_v6 }
0x5791   :  { %v5430_v30 = vpop.permute.xlu1 %5429 }
0x57e3   :  { %v6815_v21 = vpop.f32.mrb[62].mxu1 }
0x57e4   :  { %v6816_v13 = vpop.f32.mrb[63].mxu1 }
0x57e5   :  { %v6817_v16 = vadd.f32 %v6816_v13, %v6815_v21 }
0x57e7   :  { %v5427_v29 = vsel %vm447_vm3, %v6817_v16, %v5425_v23 }
0x57e8   :  { %7693 = vmatmul.mubr.msk.f32.vlgmr.msra.gmra.mrb[60].mxu0 %vm160_vm4, %v5427_v29 }
0x57e9   :  { %8701 = vmatpush1.bf16.msra.mxu0 %v9943_v38  ;;  %5603 = vmatprep.mubr.f32.mxu0 %v10991_v49  ;;  %v10869_v38 = vld [vmem:[%s10951_s12 + $0x4] ss:$0 sm:$0xff] }
0x57ea   :  { %8703 = vmatprep.subr.bf16.mxu0 %v9945_v41  ;;  %v5432_v41 = vmul.f32 %v10869_v38, %v5430_v30 }
0x57ed   :  { %8705 = vmatpush1.bf16.msra.mxu0 %v9961_v51 }
0x57ee   :  { %8707 = vmatprep.subr.bf16.mxu0 %v11000_v34 }
0x57f1   :  { %8709 = vmatpush1.bf16.msra.mxu0 %v11007_v55 }
0x57f2   :  { %8711 = vmatprep.subr.bf16.mxu0 %v11013_v10 }
0x57f5   :  { %8713 = vmatpush1.bf16.msra.mxu0 %v11014_v54 }
0x57f6   :  { %5698 = vmatprep.subr.mxu0 %v11015_v14 }
0x58bb   :  { %v5502_v37 = vpop.f32.mrb[60].mxu0 }
0x58bc   :  { %v5503_v51 = vadd.f32 %v5502_v37, %v5432_v41  ;;  %v7694_v46 = vpop.f32.mrb[61].mxu0 }
0x58be   :  { %v5506_v45 = vadd.f32 %v10781_v7, %v5503_v51 }
0x58c0   :  { %9016 = vtanh.f32 %v5506_v45  ;;  %v6027_v50 = vmul.f32 -1.442695, %v5506_v45 }
0x58c2   :  { %9018 = vpow2.f32 %v6027_v50 }
0x58ca   :  { %v9017_v28 = vpop.eup %9016 }
0x58cb   :  { %5516 = vrot.lane.b32.xlu0 %v9017_v28, %s9065_s23 }
0x58cc   :  { %v9019_v33 = vpop.eup %9018 }
0x58cd   :  { %v5510_v57 = vadd.f32 1.0, %v9019_v33 }
0x58cf   :  { %9020 = vrcp.f32 %v5510_v57  ;;  %v5957_v57 = vld [vmem:[%s10951_s12 + $0x5] ss:$0 sm:$0xff] }
0x58d9   :  { %v9021_v60 = vpop.eup %9020 }
0x58da   :  { %v5514_v10 = vmul.f32 %v9021_v60, %v10787_v40 }
0x593d   :  { %v5517_v34 = vpop.permute.xlu0 %5516 }
0x593e   :  { %v5519_v55 = vmul.f32 %v9021_v60, %v5517_v34 }
0x5940   :  { %5521 = vrot.lane.b32.xlu1 %v5519_v55, %s9066_s24 }
0x59b2   :  { %v5522_v54 = vpop.permute.xlu1 %5521 }
0x59b3   :  { %v10876_v14 = vadd.f32 %v5522_v54, %v5514_v10 }
0x59b5   :  { %9022 = vtanh.f32 %v10876_v14 }
0x59bf   :  { %v9023_v19 = vpop.eup %9022 }
0x59c0   :  { %5527 = vrot.lane.b32.xlu0 %v9023_v19, %s9065_s23 }
0x5a32   :  { %v5528_v1 = vpop.permute.xlu0 %5527 }
0x5a33   :  { %v5530_v25 = vmul.f32 %v9021_v60, %v5528_v1 }
0x5a35   :  { %5532 = vrot.lane.b32.xlu1 %v5530_v25, %s9066_s24 }
0x5aa7   :  { %v5533_v59 = vpop.permute.xlu1 %5532 }
0x5aa8   :  { %v5535_v35 = vsel %vm447_vm3, %v5533_v59, %v10876_v14 }
0x5aa9   :  { %6028 = vmatmul.mubr.msk.f32.vlgmr.msra.gmra.mrb[62].mxu0 %vm160_vm4, %v5535_v35 }
0x5aaa   :  { %5699 = vmatpush1.msra.mxu0 %v10709_v32  ;;  %5762 = vmatprep.mubr.f32.mxu0 %v10991_v49 }
0x5aab   :  { %8747 = vmatprep.subr.bf16.mxu0 %v10213_v26  ;;  %v11020_v26 = vld [vmem:[#allocation12_spill] sm:$0xff] }
0x5b7c   :  { %v5605_v40 = vpop.f32.mrb[62].mxu0 }
0x5b7d   :  { %v5610_v58 = vadd.f32 %v5605_v40, %v10171_v31  ;;  %v5607_v36 = vpop.f32.mrb[63].mxu0  ;;  %v11021_v31 = vld [vmem:[#allocation13_spill] sm:$0xff] }
0x5b7e   :  { %v5611_v20 = vadd.f32 %v5607_v36, %v10175_v24  ;;  %v11022_v24 = vld [vmem:[#allocation14_spill] sm:$0xff] }
0x5b80   :  { %9024 = vtanh.f32 %v5611_v20 }
0x5b81   :  { %9026 = vtanh.f32 %v5610_v58 }
0x5b8a   :  { %v9025_v53 = vpop.eup %9024 }
0x5b8b   :  { %v9027_v8 = vpop.eup %9026  ;;  %5678 = vmatprep.mubr.f32.mxu1 %v9025_v53 }
0x5b8c   :  { %5679 = vmatmul.mubr.f32.vlgmr.msra.gmra.mrb[64].mxu1 %v9027_v8 }
0x5b8d   :  { %8780 = vmatpush3.bf16.msra.mxu1 %v11019_v12  ;;  %7711 = vmatprep.mubr.msk.f32.mxu1 %vm9063_vm0, %v10991_v49 }
0x5b8e   :  { %8781 = vmatprep.subr.bf16.mxu1 %v10989_v6 }
0x5b91   :  { %8783 = vmatpush3.bf16.msra.mxu1 %v11020_v26 }
0x5b92   :  { %8784 = vmatprep.subr.bf16.mxu1 %v10989_v6 }
0x5b95   :  { %8786 = vmatpush3.bf16.msra.mxu1 %v11021_v31 }
0x5b96   :  { %8787 = vmatprep.subr.bf16.mxu1 %v10989_v6 }
0x5b99   :  { %8789 = vmatpush3.bf16.msra.mxu1 %v11022_v24 }
0x5c5f   :  { %v6859_v32 = vpop.f32.mrb[64].mxu1 }
0x5c60   :  { %v6860_v62 = vpop.f32.mrb[65].mxu1 }
0x5c61   :  { %v6861_v22 = vadd.f32 %v6860_v62, %v6859_v32 }
0x5c63   :  { %v5681_v17 = vadd.f32 %v6861_v22, %v10182_v27 }
0x5c65   :  { %v5684_v9 = vsel %vm3140_vm6, %v5681_v17, -inf }
0x5c66   :  { %5685 = vmax.xlane.f32.xlu0 %v5684_v9 }
0x5c7c   :  { %5841 = vrot.lane.b32.xlu0 %v5530_v25, %s9065_s23 }
0x5cf3   :  { %v5686_v49 = vpop.xlane.xlu0 %5685 }
0x5cf4   :  { %v5687_v21 = vsub.f32 %v5681_v17, %v5686_v49 }
0x5cf6   :  { %v5688_v13 = vmul.f32 1.442695, %v5687_v21 }
0x5cf8   :  { %9028 = vpow2.f32 %v5688_v13 }
0x5d02   :  { %v9029_v16 = vpop.eup %9028 }
0x5d03   :  { %v5690_v23 = vsel %vm3140_vm6, %v9029_v16, 0.0 }
0x5d04   :  { %5691 = vadd.xlane.f32.xlu1 %v5690_v23 }
0x5d91   :  { %v5692_v6 = vpop.xlane.xlu1 %5691 }
0x5d92   :  { %9030 = vrcp.f32 %v5692_v6 }
0x5d9c   :  { %v9031_v29 = vpop.eup %9030 }
0x5d9d   :  { %v5694_v30 = vmul.f32 %v9031_v29, %v9029_v16 }
0x5d9f   :  { %6029 = vmatmul.mubr.msk.f32.vlgmr.msra.gmra.mrb[64].mxu0 %vm3140_vm6, %v5694_v30 }
0x5da0   :  { %8749 = vmatpush3.bf16.msra.mxu0 %v10228_v39 }
0x5da1   :  { %8751 = vmatprep.subr.bf16.mxu0 %v10230_v56 }
0x5da4   :  { %8753 = vmatpush3.bf16.msra.mxu0 %v10246_v47 }
0x5da5   :  { %8755 = vmatprep.subr.bf16.mxu0 %v10249_v0  ;;  %v9078_v0 = vmov 6  }
0x5da6   :  { %8814 = vset.pattern.permute.xlu1 %v9078_v0  ;;  %8815 = vset.pattern.permute.xlu0 %v9078_v0 }
0x5da7   :  { %5846 = vperm.xlu1 %8814, %v10852_v61  }
0x5da8   :  { %8757 = vmatpush3.bf16.msra.mxu0 %v10264_v15 }
0x5da9   :  { %8759 = vmatprep.subr.bf16.mxu0 %v10267_v48 }
0x5dac   :  { %8761 = vmatpush3.bf16.msra.mxu0 %v10282_v63 }
0x5dad   :  { %8763 = vmatprep.subr.bf16.mxu0 %v10285_v42  ;;  %v5842_v42 = vpop.permute.xlu0 %5841 }
0x5db0   :  { %8765 = vmatpush3.bf16.msra.mxu0 %v10300_v43 }
0x5db1   :  { %8767 = vmatprep.subr.bf16.mxu0 %v10303_v44 }
0x5db4   :  { %8769 = vmatpush3.bf16.msra.mxu0 %v10318_v4 }
0x5db5   :  { %8771 = vmatprep.subr.bf16.mxu0 %v10321_v11 }
0x5db8   :  { %8773 = vmatpush3.bf16.msra.mxu0 %v10330_v2 }
0x5db9   :  { %8775 = vmatprep.subr.bf16.mxu0 %v10340_v18 }
0x5dbc   :  { %8777 = vmatpush3.bf16.msra.mxu0 %v10348_v52 }
0x5e26   :  { %v5847_v44 = vpop.permute.xlu1 %5846 }
0x5e27   :  { %v5849_v4 = vmul.f32 %v10869_v38, %v5847_v44 }
0x5e72   :  { %v5764_v27 = vpop.f32.mrb[64].mxu0 }
0x5e73   :  { %v5766_v39 = vpop.f32.mrb[65].mxu0  ;;  %v5769_v47 = vmul.f32 %v5764_v27, %v10395_v3 }
0x5e74   :  { %v5770_v56 = vmul.f32 %v5766_v39, %v10391_v5 }
0x5e76   :  { %5835 = vmatprep.mubr.f32.mxu0 %v5770_v56 }
0x5e77   :  { %5836 = vmatmul.mubr.f32.vlgmr.msra.gmra.mrb[66].mxu0 %v5769_v47 }
0x5f4a   :  { %v6894_v15 = vpop.f32.mrb[66].mxu0 }
0x5f4b   :  { %v6895_v48 = vpop.f32.mrb[67].mxu0 }
0x5f4c   :  { %v6896_v63 = vadd.f32 %v6895_v48, %v6894_v15 }
0x5f4e   :  { %v5844_v43 = vsel %vm447_vm3, %v6896_v63, %v5842_v42 }
0x5f4f   :  { %7712 = vmatmul.mubr.msk.f32.vlgmr.msra.gmra.mrb[66].mxu1 %vm160_vm4, %v5844_v43 }
0x6022   :  { %v5919_v11 = vpop.f32.mrb[66].mxu1 }
0x6023   :  { %v5920_v3 = vadd.f32 %v5919_v11, %v5849_v4  ;;  %v7713_v2 = vpop.f32.mrb[67].mxu1 }
0x6025   :  { %v5923_v18 = vadd.f32 %v10781_v7, %v5920_v3 }
0x6027   :  { %9032 = vtanh.f32 %v5923_v18  ;;  %v6031_v5 = vmul.f32 -1.442695, %v5923_v18 }
0x6029   :  { %9034 = vpow2.f32 %v6031_v5 }
0x6031   :  { %v9033_v52 = vpop.eup %9032 }
0x6032   :  { %5933 = vrot.lane.b32.xlu0 %v9033_v52, %s9065_s23 }
0x6033   :  { %v9035_v61 = vpop.eup %9034 }
0x6034   :  { %v5927_v41 = vadd.f32 1.0, %v9035_v61 }
0x6036   :  { %9036 = vrcp.f32 %v5927_v41 }
0x6040   :  { %v9037_v37 = vpop.eup %9036 }
0x6041   :  { %v5931_v38 = vmul.f32 %v9037_v37, %v10876_v14  ;;  %v5962_v14 = vstv %s5972_s3 }
0x60a4   :  { %v5934_v51 = vpop.permute.xlu0 %5933 }
0x60a5   :  { %v5936_v46 = vmul.f32 %v9037_v37, %v5934_v51 }
0x60a7   :  { %5938 = vrot.lane.b32.xlu1 %v5936_v46, %s9066_s24 }
0x6119   :  { %v5939_v45 = vpop.permute.xlu1 %5938 }
0x611a   :  { %v5941_v28 = vadd.f32 %v5939_v45, %v5931_v38 }
0x611c   :  { %9038 = vtanh.f32 %v5941_v28 }
0x6126   :  { %v9039_v7 = vpop.eup %9038 }
0x6127   :  { %5944 = vrot.lane.b32.xlu0 %v9039_v7, %s9065_s23 }
0x612b   :  { %5953 = vrot.lane.b32.xlu0 %v6896_v63, %s9066_s24 }
0x6199   :  { %v5945_v50 = vpop.permute.xlu0 %5944 }
0x619a   :  { %v5947_v33 = vmul.f32 %v9037_v37, %v5945_v50 }
0x619c   :  { %5949 = vrot.lane.b32.xlu1 %v5947_v33, %s9066_s24 }
0x619d   :  { %v5954_v60 = vpop.permute.xlu0 %5953 }
0x620e   :  { %v5950_v34 = vpop.permute.xlu1 %5949 }
0x620f   :  { %v5956_v55 = vsel %vm447_vm3, %v5950_v34, %v5954_v60 }
0x6210   :  { %v5958_v10 = vmul.f32 %v5957_v57, %v5956_v55 }
0x6212   :  { %v5959_v54 = vsel %vm160_vm4, %v5958_v10, 0.0 }
0x6213   :  { %5960 = vadd.xlane.f32.xlu1 %v5959_v54 }
0x62a0   :  { %v5961_v19 = vpop.xlane.xlu1 %5960 }
0x62a1   :  { %v5963_v1 = vadd.f32 %v5962_v14, %v5961_v19 }
0x62a3   :  { %5965 = vst.msk [vmem:[%s10953_s14] sm:$0xff] %vm5964_vm7, %v5963_v1 }
0x62a4   :  { %5970 = vsyncpa [#allocation3], 1 }

</bundles_post_ra>
